<compile_context>
chip_gen: v6e
topology: v6e:2x2x1
jax: 0.10.0
libtpu: 0.0.40
codegen_flags: <defaults>
</compile_context>

<pallas_src>
import jax
import jax.numpy as jnp
from jax.experimental import pallas as pl
from jax.experimental.pallas import tpu as pltpu

# ----------------------------- config ----------------------------------------
BIAS = True
KERNEL_SIZE1 = (3, 1)
KERNEL_SIZE2 = (3, 1)
NUMBER_OF_POINTS = 16
K1 = KERNEL_SIZE1[0]
K2 = KERNEL_SIZE2[0]
DIM_INT = NUMBER_OF_POINTS - K1 + 1 - K2 + 1  # 12
IN_CHANNELS1 = 4
OUT_CHANNELS1 = 32
OUT_CHANNELS2 = 64
LATENT_DIM = 8
COND_DIM = 4
FC1_DIM = 2048
MAX_BATCH_TILE = 128


def _round_up(x, m):
    return (x + m - 1) // m * m


# --------------------------- in-kernel conv helpers ----------------------------
def _conv_core(xb, w_ref, b_ref, k):
    """Valid cross-correlation along axis 0 of channels-last xb (H, TB, Cin) bf16:
    y[t] = bias + sum_i xb[t+i] @ W[i];  f32 accumulation on the MXU."""
    hin, tb, cin = xb.shape
    hout = hin - k + 1
    cout = w_ref.shape[2]
    acc = jnp.zeros((hout * tb, cout), jnp.float32)
    for i in range(k):                              # static slices, no shift matrices
        xs = xb[i:i + hout].reshape(hout * tb, cin)
        acc = acc + jnp.dot(xs, w_ref[i], preferred_element_type=jnp.float32)
    acc = acc + b_ref[...]                          # (1, Cout) broadcast, f32
    return acc.reshape(hout, tb, cout)


def _conv(x, w_ref, b_ref, k):
    """'valid' Conv2d with (k,1) kernel on channels-last x (H, TB, Cin) f32."""
    return _conv_core(x.astype(jnp.bfloat16), w_ref, b_ref, k)


def _convt(x, w_ref, b_ref, k):
    """stride-1 ConvTranspose2d with (k,1) kernel: zero-pad (k-1) rows each side,
    then valid conv with taps pre-reversed in prepare_params."""
    xb = x.astype(jnp.bfloat16)
    z = jnp.zeros((k - 1,) + xb.shape[1:], jnp.bfloat16)
    return _conv_core(jnp.concatenate([z, xb, z], axis=0), w_ref, b_ref, k)


# ----------------------------- fused decoder kernel ----------------------------
def _decoder_kernel(x_ref, w1_ref, b1_ref, w2_ref, b2_ref,
                    wt1_ref, bt1_ref, c1_ref, cb1_ref,
                    wt2_ref, bt2_ref, c2_ref, cb2_ref,
                    wt3_ref, bt3_ref, wt4_ref, bt4_ref,
                    o_ref):
    # ---- fc1 -> relu -> fc2 -> relu (bf16 weights, f32 accumulation) ----
    x = x_ref[...].astype(jnp.bfloat16)                                   # (TB, 12)
    h = jnp.dot(x, w1_ref[...], preferred_element_type=jnp.float32)
    h = jnp.maximum(h + b1_ref[...], 0.0)                                 # (TB, 2048)
    h2 = jnp.dot(h.astype(jnp.bfloat16), w2_ref[...],
                 preferred_element_type=jnp.float32)
    h2 = jnp.maximum(h2 + b2_ref[...], 0.0)                               # (TB, 768)

    # fc2 columns are pre-permuted (t-major, c-minor): each contiguous 64-wide
    # slice is one time step -> channels-last (dimInt, TB, C2) activation.
    x3 = jnp.stack([h2[:, t * OUT_CHANNELS2:(t + 1) * OUT_CHANNELS2]
                    for t in range(DIM_INT)], axis=0)                     # (12, TB, 64)
    skip = x3

    y = _convt(x3, wt1_ref, bt1_ref, K1)                                  # (14, TB, 32)
    y = jnp.maximum(_conv(y, c1_ref, cb1_ref, K1) + skip, 0.0)            # (12, TB, 64)
    y = _convt(y, wt2_ref, bt2_ref, K1)                                   # (14, TB, 32)
    y = jnp.maximum(_conv(y, c2_ref, cb2_ref, K2), 0.0)                   # (12, TB, 64)
    y = _convt(y, wt3_ref, bt3_ref, K2)                                   # (14, TB, 4)
    y = _convt(y, wt4_ref, bt4_ref, K2)                                   # (16, TB, 4)
    o_ref[...] = y.astype(o_ref.dtype)


def _const_spec(a):
    nd = a.ndim
    return pl.BlockSpec(a.shape, lambda i, _nd=nd: (0,) * _nd)


# ----------------------------- decoder forward ---------------------------------
@jax.jit
def decoder_forward(p, z, cond):
    b = z.shape[0]
    x = jnp.concatenate([z, cond], axis=1)                                # (B, 12)
    tb = min(MAX_BATCH_TILE, _round_up(b, 8))
    b_pad = _round_up(b, tb)
    if b_pad != b:
        x = jnp.pad(x, ((0, b_pad - b), (0, 0)))
    din = x.shape[1]

    weights = (p["fc1_w"], p["fc1_b"], p["fc2_w"], p["fc2_b"]) + p["conv"]

    flops_ps = 2 * (din * FC1_DIM + FC1_DIM * OUT_CHANNELS2 * DIM_INT
                    + (DIM_INT + K1 - 1) * K1 * OUT_CHANNELS2 * 32
                    + DIM_INT * K1 * 32 * 64
                    + (DIM_INT + K1 - 1) * K1 * 64 * OUT_CHANNELS1
                    + DIM_INT * K2 * OUT_CHANNELS1 * 64
                    + (DIM_INT + K2 - 1) * K2 * 64 * IN_CHANNELS1
                    + NUMBER_OF_POINTS * K2 * IN_CHANNELS1 * IN_CHANNELS1)
    w_bytes = sum(int(w.size) * w.dtype.itemsize for w in weights)
    cost = pl.CostEstimate(
        flops=b_pad * flops_ps,
        transcendentals=0,
        bytes_accessed=w_bytes + int(x.size) * 4
        + b_pad * NUMBER_OF_POINTS * IN_CHANNELS1 * 4)

    out = pl.pallas_call(
        _decoder_kernel,
        out_shape=jax.ShapeDtypeStruct(
            (NUMBER_OF_POINTS, b_pad, IN_CHANNELS1), jnp.float32),
        grid=(b_pad // tb,),
        in_specs=[pl.BlockSpec((tb, din), lambda i: (i, 0))]
                 + [_const_spec(w) for w in weights],
        out_specs=pl.BlockSpec((NUMBER_OF_POINTS, tb, IN_CHANNELS1),
                               lambda i: (0, i, 0)),
        compiler_params=pltpu.CompilerParams(
            dimension_semantics=("parallel",),
            vmem_limit_bytes=32 * 1024 * 1024),
        cost_estimate=cost,
    )(x, *weights)                                                        # (16, B_pad, 4)

    # kernel output is (t, b, c); back to torch NCHW (B, in_channels1, points, 1)
    out = jnp.transpose(out[:, :b, :], (1, 2, 0))
    return out[:, :, :, None]


# ----------------------------- params ------------------------------------------
def init_params(key):
    """Random parameters in the original torch layouts."""
    ks = jax.random.split(key, 16)

    def w(k, shape, scale=0.05):
        return (scale * jax.random.normal(k, shape)).astype(jnp.float32)

    def cb(k, n):  # conv bias honours the `bias` config flag
        return w(k, (n,)) if BIAS else jnp.zeros((n,), jnp.float32)

    din = LATENT_DIM + COND_DIM
    p = {}
    p["fc1_w"] = w(ks[0], (din, FC1_DIM))
    p["fc1_b"] = w(ks[1], (FC1_DIM,))
    p["fc2_w"] = w(ks[2], (FC1_DIM, OUT_CHANNELS2 * DIM_INT))
    p["fc2_b"] = w(ks[3], (OUT_CHANNELS2 * DIM_INT,))
    # torch layouts: ConvTranspose2d (Cin, Cout, kH, kW); Conv2d (Cout, Cin, kH, kW)
    p["ct1_w"] = w(ks[4], (OUT_CHANNELS2, 32, K1, 1));           p["ct1_b"] = cb(ks[5], 32)
    p["c1_w"] = w(ks[6], (64, 32, K1, 1));                       p["c1_b"] = cb(ks[7], 64)
    p["ct2_w"] = w(ks[8], (64, OUT_CHANNELS1, K1, 1));           p["ct2_b"] = cb(ks[9], OUT_CHANNELS1)
    p["c2_w"] = w(ks[10], (64, OUT_CHANNELS1, K2, 1));           p["c2_b"] = cb(ks[11], 64)
    p["ct3_w"] = w(ks[12], (64, IN_CHANNELS1, K2, 1));           p["ct3_b"] = cb(ks[13], IN_CHANNELS1)
    p["ct4_w"] = w(ks[14], (IN_CHANNELS1, IN_CHANNELS1, K2, 1)); p["ct4_b"] = cb(ks[15], IN_CHANNELS1)
    return p


def prepare_params(p):
    """One-time torch-layout -> kernel-layout conversion (hoisted out of forward)."""

    def conv_taps(wt):   # Conv2d (Cout, Cin, k, 1) -> (k, Cin, Cout), bf16
        return jnp.transpose(wt[:, :, :, 0], (2, 1, 0)).astype(jnp.bfloat16)

    def convt_taps(wt):  # ConvTranspose2d (Cin, Cout, k, 1) -> (k, Cin, Cout), tap-REVERSED
        t = jnp.transpose(wt[:, :, :, 0], (2, 0, 1))
        return t[::-1].astype(jnp.bfloat16)       # so convT == pad + forward valid conv

    def rowb(b):
        return b.reshape(1, -1).astype(jnp.float32)

    # Permute fc2 output columns from torch (C2-major, dimInt-minor) ordering to
    # (dimInt-major, C2-minor): contiguous 64-wide slices of fc2 output become
    # time steps of the channels-last activation for free.
    w2p = (p["fc2_w"].reshape(FC1_DIM, OUT_CHANNELS2, DIM_INT)
           .transpose(0, 2, 1).reshape(FC1_DIM, OUT_CHANNELS2 * DIM_INT))
    b2p = p["fc2_b"].reshape(OUT_CHANNELS2, DIM_INT).T.reshape(1, -1)

    return {
        "fc1_w": p["fc1_w"].astype(jnp.bfloat16),
        "fc1_b": rowb(p["fc1_b"]),
        "fc2_w": w2p.astype(jnp.bfloat16),
        "fc2_b": b2p.astype(jnp.float32),
        "conv": (
            convt_taps(p["ct1_w"]), rowb(p["ct1_b"]),
            conv_taps(p["c1_w"]), rowb(p["c1_b"]),
            convt_taps(p["ct2_w"]), rowb(p["ct2_b"]),
            conv_taps(p["c2_w"]), rowb(p["c2_b"]),
            convt_taps(p["ct3_w"]), rowb(p["ct3_b"]),
            convt_taps(p["ct4_w"]), rowb(p["ct4_b"]),
        ),
    }


# ------------------------------- main -------------------------------------------
if __name__ == "__main__":
    key = jax.random.PRNGKey(0)
    kp, kz, kc = jax.random.split(key, 3)
    params = prepare_params(init_params(kp))
    z = jax.random.normal(kz, (2, LATENT_DIM), jnp.float32)
    cond = jax.random.normal(kc, (2, COND_DIM), jnp.float32)

    out = jax.block_until_ready(decoder_forward(params, z, cond))
    assert out.shape == (2, IN_CHANNELS1, NUMBER_OF_POINTS, 1), out.shape
    assert bool(jnp.all(jnp.isfinite(out)))
    print("KERNEL_OK")
</pallas_src>

<mosaic_0001>
module attributes {stable_mosaic.version = 11 : i64} {
  func.func @_decoder_kernel(%arg0: i32, %arg1: memref<8x12xf32, #tpu.memory_space<vmem>>, %arg2: memref<12x2048xbf16, #tpu.memory_space<vmem>>, %arg3: memref<1x2048xf32, #tpu.memory_space<vmem>>, %arg4: memref<2048x768xbf16, #tpu.memory_space<vmem>>, %arg5: memref<1x768xf32, #tpu.memory_space<vmem>>, %arg6: memref<3x64x32xbf16, #tpu.memory_space<vmem>>, %arg7: memref<1x32xf32, #tpu.memory_space<vmem>>, %arg8: memref<3x32x64xbf16, #tpu.memory_space<vmem>>, %arg9: memref<1x64xf32, #tpu.memory_space<vmem>>, %arg10: memref<3x64x32xbf16, #tpu.memory_space<vmem>>, %arg11: memref<1x32xf32, #tpu.memory_space<vmem>>, %arg12: memref<3x32x64xbf16, #tpu.memory_space<vmem>>, %arg13: memref<1x64xf32, #tpu.memory_space<vmem>>, %arg14: memref<3x64x4xbf16, #tpu.memory_space<vmem>>, %arg15: memref<1x4xf32, #tpu.memory_space<vmem>>, %arg16: memref<3x4x4xbf16, #tpu.memory_space<vmem>>, %arg17: memref<1x4xf32, #tpu.memory_space<vmem>>, %arg18: memref<16x8x4xf32, #tpu.memory_space<vmem>>) attributes {dimension_semantics = [#tpu.dimension_semantics<parallel>], iteration_bounds = array<i64: 1>, scalar_prefetch = 0 : i64, scratch_operands = 0 : i64, tpu.core_type = #tpu.core_type<tc>, window_params = [{transform_indices = @transform_0, window_bounds = array<i64: 8, 12>}, {pipeline_mode = #tpu.pipeline_mode<synchronous>, transform_indices = @transform_1, window_bounds = array<i64: 12, 2048>}, {pipeline_mode = #tpu.pipeline_mode<synchronous>, transform_indices = @transform_2, window_bounds = array<i64: 1, 2048>}, {pipeline_mode = #tpu.pipeline_mode<synchronous>, transform_indices = @transform_3, window_bounds = array<i64: 2048, 768>}, {pipeline_mode = #tpu.pipeline_mode<synchronous>, transform_indices = @transform_4, window_bounds = array<i64: 1, 768>}, {pipeline_mode = #tpu.pipeline_mode<synchronous>, transform_indices = @transform_5, window_bounds = array<i64: 3, 64, 32>}, {pipeline_mode = #tpu.pipeline_mode<synchronous>, transform_indices = @transform_6, window_bounds = array<i64: 1, 32>}, {pipeline_mode = #tpu.pipeline_mode<synchronous>, transform_indices = @transform_7, window_bounds = array<i64: 3, 32, 64>}, {pipeline_mode = #tpu.pipeline_mode<synchronous>, transform_indices = @transform_8, window_bounds = array<i64: 1, 64>}, {pipeline_mode = #tpu.pipeline_mode<synchronous>, transform_indices = @transform_9, window_bounds = array<i64: 3, 64, 32>}, {pipeline_mode = #tpu.pipeline_mode<synchronous>, transform_indices = @transform_10, window_bounds = array<i64: 1, 32>}, {pipeline_mode = #tpu.pipeline_mode<synchronous>, transform_indices = @transform_11, window_bounds = array<i64: 3, 32, 64>}, {pipeline_mode = #tpu.pipeline_mode<synchronous>, transform_indices = @transform_12, window_bounds = array<i64: 1, 64>}, {pipeline_mode = #tpu.pipeline_mode<synchronous>, transform_indices = @transform_13, window_bounds = array<i64: 3, 64, 4>}, {pipeline_mode = #tpu.pipeline_mode<synchronous>, transform_indices = @transform_14, window_bounds = array<i64: 1, 4>}, {pipeline_mode = #tpu.pipeline_mode<synchronous>, transform_indices = @transform_15, window_bounds = array<i64: 3, 4, 4>}, {pipeline_mode = #tpu.pipeline_mode<synchronous>, transform_indices = @transform_16, window_bounds = array<i64: 1, 4>}, {transform_indices = @transform_17, window_bounds = array<i64: 16, 8, 4>}]} {
    %c0 = arith.constant 0 : index
    %c0_0 = arith.constant 0 : index
    %0 = vector.load %arg1[%c0, %c0_0] : memref<8x12xf32, #tpu.memory_space<vmem>>, vector<8x12xf32>
    %1 = arith.truncf %0 : vector<8x12xf32> to vector<8x12xbf16>
    %c0_1 = arith.constant 0 : index
    %c0_2 = arith.constant 0 : index
    %2 = vector.load %arg2[%c0_1, %c0_2] : memref<12x2048xbf16, #tpu.memory_space<vmem>>, vector<12x2048xbf16>
    %cst = arith.constant dense<0.000000e+00> : vector<8x2048xf32>
    %3 = tpu.matmul %1, %2, %cst {dimension_numbers = #tpu.dot_dimension_numbers<[1], [0], [0], [1], [0, 0, 1, 1], [], []>} : vector<8x12xbf16>, vector<12x2048xbf16>, vector<8x2048xf32> -> vector<8x2048xf32>
    %c0_3 = arith.constant 0 : index
    %c0_4 = arith.constant 0 : index
    %4 = vector.load %arg3[%c0_3, %c0_4] : memref<1x2048xf32, #tpu.memory_space<vmem>>, vector<1x2048xf32>
    %5 = vector.broadcast %4 : vector<1x2048xf32> to vector<8x2048xf32>
    %6 = arith.addf %3, %5 : vector<8x2048xf32>
    %cst_5 = arith.constant 0.000000e+00 : f32
    %7 = vector.broadcast %cst_5 : f32 to vector<8x2048xf32>
    %8 = arith.maximumf %6, %7 : vector<8x2048xf32>
    %9 = arith.truncf %8 : vector<8x2048xf32> to vector<8x2048xbf16>
    %c0_6 = arith.constant 0 : index
    %c0_7 = arith.constant 0 : index
    %10 = vector.load %arg4[%c0_6, %c0_7] : memref<2048x768xbf16, #tpu.memory_space<vmem>>, vector<2048x768xbf16>
    %cst_8 = arith.constant dense<0.000000e+00> : vector<8x768xf32>
    %11 = tpu.matmul %9, %10, %cst_8 {dimension_numbers = #tpu.dot_dimension_numbers<[1], [0], [0], [1], [0, 0, 1, 1], [], []>} : vector<8x2048xbf16>, vector<2048x768xbf16>, vector<8x768xf32> -> vector<8x768xf32>
    %c0_9 = arith.constant 0 : index
    %c0_10 = arith.constant 0 : index
    %12 = vector.load %arg5[%c0_9, %c0_10] : memref<1x768xf32, #tpu.memory_space<vmem>>, vector<1x768xf32>
    %13 = vector.broadcast %12 : vector<1x768xf32> to vector<8x768xf32>
    %14 = arith.addf %11, %13 : vector<8x768xf32>
    %cst_11 = arith.constant 0.000000e+00 : f32
    %15 = vector.broadcast %cst_11 : f32 to vector<8x768xf32>
    %16 = arith.maximumf %14, %15 : vector<8x768xf32>
    %17 = vector.extract_strided_slice %16 {offsets = [0, 0], sizes = [8, 64], strides = [1, 1]} : vector<8x768xf32> to vector<8x64xf32>
    %18 = vector.extract_strided_slice %16 {offsets = [0, 64], sizes = [8, 64], strides = [1, 1]} : vector<8x768xf32> to vector<8x64xf32>
    %19 = vector.extract_strided_slice %16 {offsets = [0, 128], sizes = [8, 64], strides = [1, 1]} : vector<8x768xf32> to vector<8x64xf32>
    %20 = vector.extract_strided_slice %16 {offsets = [0, 192], sizes = [8, 64], strides = [1, 1]} : vector<8x768xf32> to vector<8x64xf32>
    %21 = vector.extract_strided_slice %16 {offsets = [0, 256], sizes = [8, 64], strides = [1, 1]} : vector<8x768xf32> to vector<8x64xf32>
    %22 = vector.extract_strided_slice %16 {offsets = [0, 320], sizes = [8, 64], strides = [1, 1]} : vector<8x768xf32> to vector<8x64xf32>
    %23 = vector.extract_strided_slice %16 {offsets = [0, 384], sizes = [8, 64], strides = [1, 1]} : vector<8x768xf32> to vector<8x64xf32>
    %24 = vector.extract_strided_slice %16 {offsets = [0, 448], sizes = [8, 64], strides = [1, 1]} : vector<8x768xf32> to vector<8x64xf32>
    %25 = vector.extract_strided_slice %16 {offsets = [0, 512], sizes = [8, 64], strides = [1, 1]} : vector<8x768xf32> to vector<8x64xf32>
    %26 = vector.extract_strided_slice %16 {offsets = [0, 576], sizes = [8, 64], strides = [1, 1]} : vector<8x768xf32> to vector<8x64xf32>
    %27 = vector.extract_strided_slice %16 {offsets = [0, 640], sizes = [8, 64], strides = [1, 1]} : vector<8x768xf32> to vector<8x64xf32>
    %28 = vector.extract_strided_slice %16 {offsets = [0, 704], sizes = [8, 64], strides = [1, 1]} : vector<8x768xf32> to vector<8x64xf32>
    %29 = vector.shape_cast %17 : vector<8x64xf32> to vector<1x8x64xf32>
    %30 = vector.shape_cast %18 : vector<8x64xf32> to vector<1x8x64xf32>
    %31 = vector.shape_cast %19 : vector<8x64xf32> to vector<1x8x64xf32>
    %32 = vector.shape_cast %20 : vector<8x64xf32> to vector<1x8x64xf32>
    %33 = vector.shape_cast %21 : vector<8x64xf32> to vector<1x8x64xf32>
    %34 = vector.shape_cast %22 : vector<8x64xf32> to vector<1x8x64xf32>
    %35 = vector.shape_cast %23 : vector<8x64xf32> to vector<1x8x64xf32>
    %36 = vector.shape_cast %24 : vector<8x64xf32> to vector<1x8x64xf32>
    %37 = vector.shape_cast %25 : vector<8x64xf32> to vector<1x8x64xf32>
    %38 = vector.shape_cast %26 : vector<8x64xf32> to vector<1x8x64xf32>
    %39 = vector.shape_cast %27 : vector<8x64xf32> to vector<1x8x64xf32>
    %40 = vector.shape_cast %28 : vector<8x64xf32> to vector<1x8x64xf32>
    %41 = tpu.concatenate %29, %30, %31, %32, %33, %34, %35, %36, %37, %38, %39, %40 in 0 : vector<1x8x64xf32>, vector<1x8x64xf32>, vector<1x8x64xf32>, vector<1x8x64xf32>, vector<1x8x64xf32>, vector<1x8x64xf32>, vector<1x8x64xf32>, vector<1x8x64xf32>, vector<1x8x64xf32>, vector<1x8x64xf32>, vector<1x8x64xf32>, vector<1x8x64xf32> -> vector<12x8x64xf32>
    %42 = arith.truncf %41 : vector<12x8x64xf32> to vector<12x8x64xbf16>
    %cst_12 = arith.constant 0.000000e+00 : bf16
    %43 = vector.broadcast %cst_12 : bf16 to vector<2x8x64xbf16>
    %44 = tpu.concatenate %43, %42, %43 in 0 : vector<2x8x64xbf16>, vector<12x8x64xbf16>, vector<2x8x64xbf16> -> vector<16x8x64xbf16>
    %cst_13 = arith.constant 0.000000e+00 : f32
    %45 = vector.broadcast %cst_13 : f32 to vector<112x32xf32>
    %46 = vector.extract_strided_slice %44 {offsets = [0, 0, 0], sizes = [14, 8, 64], strides = [1, 1, 1]} : vector<16x8x64xbf16> to vector<14x8x64xbf16>
    %47 = vector.shape_cast %46 : vector<14x8x64xbf16> to vector<112x64xbf16>
    %c0_14 = arith.constant 0 : index
    %c0_15 = arith.constant 0 : index
    %c0_16 = arith.constant 0 : index
    %48 = vector.load %arg6[%c0_14, %c0_15, %c0_16] : memref<3x64x32xbf16, #tpu.memory_space<vmem>>, vector<1x64x32xbf16>
    %49 = vector.shape_cast %48 : vector<1x64x32xbf16> to vector<64x32xbf16>
    %cst_17 = arith.constant dense<0.000000e+00> : vector<112x32xf32>
    %50 = tpu.matmul %47, %49, %cst_17 {dimension_numbers = #tpu.dot_dimension_numbers<[1], [0], [0], [1], [0, 0, 1, 1], [], []>} : vector<112x64xbf16>, vector<64x32xbf16>, vector<112x32xf32> -> vector<112x32xf32>
    %51 = arith.addf %45, %50 : vector<112x32xf32>
    %52 = vector.extract_strided_slice %44 {offsets = [1, 0, 0], sizes = [14, 8, 64], strides = [1, 1, 1]} : vector<16x8x64xbf16> to vector<14x8x64xbf16>
    %53 = vector.shape_cast %52 : vector<14x8x64xbf16> to vector<112x64xbf16>
    %c1 = arith.constant 1 : index
    %c0_18 = arith.constant 0 : index
    %c0_19 = arith.constant 0 : index
    %54 = vector.load %arg6[%c1, %c0_18, %c0_19] : memref<3x64x32xbf16, #tpu.memory_space<vmem>>, vector<1x64x32xbf16>
    %55 = vector.shape_cast %54 : vector<1x64x32xbf16> to vector<64x32xbf16>
    %cst_20 = arith.constant dense<0.000000e+00> : vector<112x32xf32>
    %56 = tpu.matmul %53, %55, %cst_20 {dimension_numbers = #tpu.dot_dimension_numbers<[1], [0], [0], [1], [0, 0, 1, 1], [], []>} : vector<112x64xbf16>, vector<64x32xbf16>, vector<112x32xf32> -> vector<112x32xf32>
    %57 = arith.addf %51, %56 : vector<112x32xf32>
    %58 = vector.extract_strided_slice %44 {offsets = [2, 0, 0], sizes = [14, 8, 64], strides = [1, 1, 1]} : vector<16x8x64xbf16> to vector<14x8x64xbf16>
    %59 = vector.shape_cast %58 : vector<14x8x64xbf16> to vector<112x64xbf16>
    %c2 = arith.constant 2 : index
    %c0_21 = arith.constant 0 : index
    %c0_22 = arith.constant 0 : index
    %60 = vector.load %arg6[%c2, %c0_21, %c0_22] : memref<3x64x32xbf16, #tpu.memory_space<vmem>>, vector<1x64x32xbf16>
    %61 = vector.shape_cast %60 : vector<1x64x32xbf16> to vector<64x32xbf16>
    %cst_23 = arith.constant dense<0.000000e+00> : vector<112x32xf32>
    %62 = tpu.matmul %59, %61, %cst_23 {dimension_numbers = #tpu.dot_dimension_numbers<[1], [0], [0], [1], [0, 0, 1, 1], [], []>} : vector<112x64xbf16>, vector<64x32xbf16>, vector<112x32xf32> -> vector<112x32xf32>
    %63 = arith.addf %57, %62 : vector<112x32xf32>
    %c0_24 = arith.constant 0 : index
    %c0_25 = arith.constant 0 : index
    %64 = vector.load %arg7[%c0_24, %c0_25] : memref<1x32xf32, #tpu.memory_space<vmem>>, vector<1x32xf32>
    %65 = vector.broadcast %64 : vector<1x32xf32> to vector<112x32xf32>
    %66 = arith.addf %63, %65 : vector<112x32xf32>
    %67 = vector.shape_cast %66 : vector<112x32xf32> to vector<14x8x32xf32>
    %68 = arith.truncf %67 : vector<14x8x32xf32> to vector<14x8x32xbf16>
    %cst_26 = arith.constant 0.000000e+00 : f32
    %69 = vector.broadcast %cst_26 : f32 to vector<96x64xf32>
    %70 = vector.extract_strided_slice %68 {offsets = [0, 0, 0], sizes = [12, 8, 32], strides = [1, 1, 1]} : vector<14x8x32xbf16> to vector<12x8x32xbf16>
    %71 = vector.shape_cast %70 : vector<12x8x32xbf16> to vector<96x32xbf16>
    %c0_27 = arith.constant 0 : index
    %c0_28 = arith.constant 0 : index
    %c0_29 = arith.constant 0 : index
    %72 = vector.load %arg8[%c0_27, %c0_28, %c0_29] : memref<3x32x64xbf16, #tpu.memory_space<vmem>>, vector<1x32x64xbf16>
    %73 = vector.shape_cast %72 : vector<1x32x64xbf16> to vector<32x64xbf16>
    %cst_30 = arith.constant dense<0.000000e+00> : vector<96x64xf32>
    %74 = tpu.matmul %71, %73, %cst_30 {dimension_numbers = #tpu.dot_dimension_numbers<[1], [0], [0], [1], [0, 0, 1, 1], [], []>} : vector<96x32xbf16>, vector<32x64xbf16>, vector<96x64xf32> -> vector<96x64xf32>
    %75 = arith.addf %69, %74 : vector<96x64xf32>
    %76 = vector.extract_strided_slice %68 {offsets = [1, 0, 0], sizes = [12, 8, 32], strides = [1, 1, 1]} : vector<14x8x32xbf16> to vector<12x8x32xbf16>
    %77 = vector.shape_cast %76 : vector<12x8x32xbf16> to vector<96x32xbf16>
    %c1_31 = arith.constant 1 : index
    %c0_32 = arith.constant 0 : index
    %c0_33 = arith.constant 0 : index
    %78 = vector.load %arg8[%c1_31, %c0_32, %c0_33] : memref<3x32x64xbf16, #tpu.memory_space<vmem>>, vector<1x32x64xbf16>
    %79 = vector.shape_cast %78 : vector<1x32x64xbf16> to vector<32x64xbf16>
    %cst_34 = arith.constant dense<0.000000e+00> : vector<96x64xf32>
    %80 = tpu.matmul %77, %79, %cst_34 {dimension_numbers = #tpu.dot_dimension_numbers<[1], [0], [0], [1], [0, 0, 1, 1], [], []>} : vector<96x32xbf16>, vector<32x64xbf16>, vector<96x64xf32> -> vector<96x64xf32>
    %81 = arith.addf %75, %80 : vector<96x64xf32>
    %82 = vector.extract_strided_slice %68 {offsets = [2, 0, 0], sizes = [12, 8, 32], strides = [1, 1, 1]} : vector<14x8x32xbf16> to vector<12x8x32xbf16>
    %83 = vector.shape_cast %82 : vector<12x8x32xbf16> to vector<96x32xbf16>
    %c2_35 = arith.constant 2 : index
    %c0_36 = arith.constant 0 : index
    %c0_37 = arith.constant 0 : index
    %84 = vector.load %arg8[%c2_35, %c0_36, %c0_37] : memref<3x32x64xbf16, #tpu.memory_space<vmem>>, vector<1x32x64xbf16>
    %85 = vector.shape_cast %84 : vector<1x32x64xbf16> to vector<32x64xbf16>
    %cst_38 = arith.constant dense<0.000000e+00> : vector<96x64xf32>
    %86 = tpu.matmul %83, %85, %cst_38 {dimension_numbers = #tpu.dot_dimension_numbers<[1], [0], [0], [1], [0, 0, 1, 1], [], []>} : vector<96x32xbf16>, vector<32x64xbf16>, vector<96x64xf32> -> vector<96x64xf32>
    %87 = arith.addf %81, %86 : vector<96x64xf32>
    %c0_39 = arith.constant 0 : index
    %c0_40 = arith.constant 0 : index
    %88 = vector.load %arg9[%c0_39, %c0_40] : memref<1x64xf32, #tpu.memory_space<vmem>>, vector<1x64xf32>
    %89 = vector.broadcast %88 : vector<1x64xf32> to vector<96x64xf32>
    %90 = arith.addf %87, %89 : vector<96x64xf32>
    %91 = vector.shape_cast %90 : vector<96x64xf32> to vector<12x8x64xf32>
    %92 = arith.addf %91, %41 : vector<12x8x64xf32>
    %cst_41 = arith.constant 0.000000e+00 : f32
    %93 = vector.broadcast %cst_41 : f32 to vector<12x8x64xf32>
    %94 = arith.maximumf %92, %93 : vector<12x8x64xf32>
    %95 = arith.truncf %94 : vector<12x8x64xf32> to vector<12x8x64xbf16>
    %cst_42 = arith.constant 0.000000e+00 : bf16
    %96 = vector.broadcast %cst_42 : bf16 to vector<2x8x64xbf16>
    %97 = tpu.concatenate %96, %95, %96 in 0 : vector<2x8x64xbf16>, vector<12x8x64xbf16>, vector<2x8x64xbf16> -> vector<16x8x64xbf16>
    %cst_43 = arith.constant 0.000000e+00 : f32
    %98 = vector.broadcast %cst_43 : f32 to vector<112x32xf32>
    %99 = vector.extract_strided_slice %97 {offsets = [0, 0, 0], sizes = [14, 8, 64], strides = [1, 1, 1]} : vector<16x8x64xbf16> to vector<14x8x64xbf16>
    %100 = vector.shape_cast %99 : vector<14x8x64xbf16> to vector<112x64xbf16>
    %c0_44 = arith.constant 0 : index
    %c0_45 = arith.constant 0 : index
    %c0_46 = arith.constant 0 : index
    %101 = vector.load %arg10[%c0_44, %c0_45, %c0_46] : memref<3x64x32xbf16, #tpu.memory_space<vmem>>, vector<1x64x32xbf16>
    %102 = vector.shape_cast %101 : vector<1x64x32xbf16> to vector<64x32xbf16>
    %cst_47 = arith.constant dense<0.000000e+00> : vector<112x32xf32>
    %103 = tpu.matmul %100, %102, %cst_47 {dimension_numbers = #tpu.dot_dimension_numbers<[1], [0], [0], [1], [0, 0, 1, 1], [], []>} : vector<112x64xbf16>, vector<64x32xbf16>, vector<112x32xf32> -> vector<112x32xf32>
    %104 = arith.addf %98, %103 : vector<112x32xf32>
    %105 = vector.extract_strided_slice %97 {offsets = [1, 0, 0], sizes = [14, 8, 64], strides = [1, 1, 1]} : vector<16x8x64xbf16> to vector<14x8x64xbf16>
    %106 = vector.shape_cast %105 : vector<14x8x64xbf16> to vector<112x64xbf16>
    %c1_48 = arith.constant 1 : index
    %c0_49 = arith.constant 0 : index
    %c0_50 = arith.constant 0 : index
    %107 = vector.load %arg10[%c1_48, %c0_49, %c0_50] : memref<3x64x32xbf16, #tpu.memory_space<vmem>>, vector<1x64x32xbf16>
    %108 = vector.shape_cast %107 : vector<1x64x32xbf16> to vector<64x32xbf16>
    %cst_51 = arith.constant dense<0.000000e+00> : vector<112x32xf32>
    %109 = tpu.matmul %106, %108, %cst_51 {dimension_numbers = #tpu.dot_dimension_numbers<[1], [0], [0], [1], [0, 0, 1, 1], [], []>} : vector<112x64xbf16>, vector<64x32xbf16>, vector<112x32xf32> -> vector<112x32xf32>
    %110 = arith.addf %104, %109 : vector<112x32xf32>
    %111 = vector.extract_strided_slice %97 {offsets = [2, 0, 0], sizes = [14, 8, 64], strides = [1, 1, 1]} : vector<16x8x64xbf16> to vector<14x8x64xbf16>
    %112 = vector.shape_cast %111 : vector<14x8x64xbf16> to vector<112x64xbf16>
    %c2_52 = arith.constant 2 : index
    %c0_53 = arith.constant 0 : index
    %c0_54 = arith.constant 0 : index
    %113 = vector.load %arg10[%c2_52, %c0_53, %c0_54] : memref<3x64x32xbf16, #tpu.memory_space<vmem>>, vector<1x64x32xbf16>
    %114 = vector.shape_cast %113 : vector<1x64x32xbf16> to vector<64x32xbf16>
    %cst_55 = arith.constant dense<0.000000e+00> : vector<112x32xf32>
    %115 = tpu.matmul %112, %114, %cst_55 {dimension_numbers = #tpu.dot_dimension_numbers<[1], [0], [0], [1], [0, 0, 1, 1], [], []>} : vector<112x64xbf16>, vector<64x32xbf16>, vector<112x32xf32> -> vector<112x32xf32>
    %116 = arith.addf %110, %115 : vector<112x32xf32>
    %c0_56 = arith.constant 0 : index
    %c0_57 = arith.constant 0 : index
    %117 = vector.load %arg11[%c0_56, %c0_57] : memref<1x32xf32, #tpu.memory_space<vmem>>, vector<1x32xf32>
    %118 = vector.broadcast %117 : vector<1x32xf32> to vector<112x32xf32>
    %119 = arith.addf %116, %118 : vector<112x32xf32>
    %120 = vector.shape_cast %119 : vector<112x32xf32> to vector<14x8x32xf32>
    %121 = arith.truncf %120 : vector<14x8x32xf32> to vector<14x8x32xbf16>
    %cst_58 = arith.constant 0.000000e+00 : f32
    %122 = vector.broadcast %cst_58 : f32 to vector<96x64xf32>
    %123 = vector.extract_strided_slice %121 {offsets = [0, 0, 0], sizes = [12, 8, 32], strides = [1, 1, 1]} : vector<14x8x32xbf16> to vector<12x8x32xbf16>
    %124 = vector.shape_cast %123 : vector<12x8x32xbf16> to vector<96x32xbf16>
    %c0_59 = arith.constant 0 : index
    %c0_60 = arith.constant 0 : index
    %c0_61 = arith.constant 0 : index
    %125 = vector.load %arg12[%c0_59, %c0_60, %c0_61] : memref<3x32x64xbf16, #tpu.memory_space<vmem>>, vector<1x32x64xbf16>
    %126 = vector.shape_cast %125 : vector<1x32x64xbf16> to vector<32x64xbf16>
    %cst_62 = arith.constant dense<0.000000e+00> : vector<96x64xf32>
    %127 = tpu.matmul %124, %126, %cst_62 {dimension_numbers = #tpu.dot_dimension_numbers<[1], [0], [0], [1], [0, 0, 1, 1], [], []>} : vector<96x32xbf16>, vector<32x64xbf16>, vector<96x64xf32> -> vector<96x64xf32>
    %128 = arith.addf %122, %127 : vector<96x64xf32>
    %129 = vector.extract_strided_slice %121 {offsets = [1, 0, 0], sizes = [12, 8, 32], strides = [1, 1, 1]} : vector<14x8x32xbf16> to vector<12x8x32xbf16>
    %130 = vector.shape_cast %129 : vector<12x8x32xbf16> to vector<96x32xbf16>
    %c1_63 = arith.constant 1 : index
    %c0_64 = arith.constant 0 : index
    %c0_65 = arith.constant 0 : index
    %131 = vector.load %arg12[%c1_63, %c0_64, %c0_65] : memref<3x32x64xbf16, #tpu.memory_space<vmem>>, vector<1x32x64xbf16>
    %132 = vector.shape_cast %131 : vector<1x32x64xbf16> to vector<32x64xbf16>
    %cst_66 = arith.constant dense<0.000000e+00> : vector<96x64xf32>
    %133 = tpu.matmul %130, %132, %cst_66 {dimension_numbers = #tpu.dot_dimension_numbers<[1], [0], [0], [1], [0, 0, 1, 1], [], []>} : vector<96x32xbf16>, vector<32x64xbf16>, vector<96x64xf32> -> vector<96x64xf32>
    %134 = arith.addf %128, %133 : vector<96x64xf32>
    %135 = vector.extract_strided_slice %121 {offsets = [2, 0, 0], sizes = [12, 8, 32], strides = [1, 1, 1]} : vector<14x8x32xbf16> to vector<12x8x32xbf16>
    %136 = vector.shape_cast %135 : vector<12x8x32xbf16> to vector<96x32xbf16>
    %c2_67 = arith.constant 2 : index
    %c0_68 = arith.constant 0 : index
    %c0_69 = arith.constant 0 : index
    %137 = vector.load %arg12[%c2_67, %c0_68, %c0_69] : memref<3x32x64xbf16, #tpu.memory_space<vmem>>, vector<1x32x64xbf16>
    %138 = vector.shape_cast %137 : vector<1x32x64xbf16> to vector<32x64xbf16>
    %cst_70 = arith.constant dense<0.000000e+00> : vector<96x64xf32>
    %139 = tpu.matmul %136, %138, %cst_70 {dimension_numbers = #tpu.dot_dimension_numbers<[1], [0], [0], [1], [0, 0, 1, 1], [], []>} : vector<96x32xbf16>, vector<32x64xbf16>, vector<96x64xf32> -> vector<96x64xf32>
    %140 = arith.addf %134, %139 : vector<96x64xf32>
    %c0_71 = arith.constant 0 : index
    %c0_72 = arith.constant 0 : index
    %141 = vector.load %arg13[%c0_71, %c0_72] : memref<1x64xf32, #tpu.memory_space<vmem>>, vector<1x64xf32>
    %142 = vector.broadcast %141 : vector<1x64xf32> to vector<96x64xf32>
    %143 = arith.addf %140, %142 : vector<96x64xf32>
    %144 = vector.shape_cast %143 : vector<96x64xf32> to vector<12x8x64xf32>
    %cst_73 = arith.constant 0.000000e+00 : f32
    %145 = vector.broadcast %cst_73 : f32 to vector<12x8x64xf32>
    %146 = arith.maximumf %144, %145 : vector<12x8x64xf32>
    %147 = arith.truncf %146 : vector<12x8x64xf32> to vector<12x8x64xbf16>
    %cst_74 = arith.constant 0.000000e+00 : bf16
    %148 = vector.broadcast %cst_74 : bf16 to vector<2x8x64xbf16>
    %149 = tpu.concatenate %148, %147, %148 in 0 : vector<2x8x64xbf16>, vector<12x8x64xbf16>, vector<2x8x64xbf16> -> vector<16x8x64xbf16>
    %cst_75 = arith.constant 0.000000e+00 : f32
    %150 = vector.broadcast %cst_75 : f32 to vector<112x4xf32>
    %151 = vector.extract_strided_slice %149 {offsets = [0, 0, 0], sizes = [14, 8, 64], strides = [1, 1, 1]} : vector<16x8x64xbf16> to vector<14x8x64xbf16>
    %152 = vector.shape_cast %151 : vector<14x8x64xbf16> to vector<112x64xbf16>
    %c0_76 = arith.constant 0 : index
    %c0_77 = arith.constant 0 : index
    %c0_78 = arith.constant 0 : index
    %153 = vector.load %arg14[%c0_76, %c0_77, %c0_78] : memref<3x64x4xbf16, #tpu.memory_space<vmem>>, vector<1x64x4xbf16>
    %154 = vector.shape_cast %153 : vector<1x64x4xbf16> to vector<64x4xbf16>
    %cst_79 = arith.constant dense<0.000000e+00> : vector<112x4xf32>
    %155 = tpu.matmul %152, %154, %cst_79 {dimension_numbers = #tpu.dot_dimension_numbers<[1], [0], [0], [1], [0, 0, 1, 1], [], []>} : vector<112x64xbf16>, vector<64x4xbf16>, vector<112x4xf32> -> vector<112x4xf32>
    %156 = arith.addf %150, %155 : vector<112x4xf32>
    %157 = vector.extract_strided_slice %149 {offsets = [1, 0, 0], sizes = [14, 8, 64], strides = [1, 1, 1]} : vector<16x8x64xbf16> to vector<14x8x64xbf16>
    %158 = vector.shape_cast %157 : vector<14x8x64xbf16> to vector<112x64xbf16>
    %c1_80 = arith.constant 1 : index
    %c0_81 = arith.constant 0 : index
    %c0_82 = arith.constant 0 : index
    %159 = vector.load %arg14[%c1_80, %c0_81, %c0_82] : memref<3x64x4xbf16, #tpu.memory_space<vmem>>, vector<1x64x4xbf16>
    %160 = vector.shape_cast %159 : vector<1x64x4xbf16> to vector<64x4xbf16>
    %cst_83 = arith.constant dense<0.000000e+00> : vector<112x4xf32>
    %161 = tpu.matmul %158, %160, %cst_83 {dimension_numbers = #tpu.dot_dimension_numbers<[1], [0], [0], [1], [0, 0, 1, 1], [], []>} : vector<112x64xbf16>, vector<64x4xbf16>, vector<112x4xf32> -> vector<112x4xf32>
    %162 = arith.addf %156, %161 : vector<112x4xf32>
    %163 = vector.extract_strided_slice %149 {offsets = [2, 0, 0], sizes = [14, 8, 64], strides = [1, 1, 1]} : vector<16x8x64xbf16> to vector<14x8x64xbf16>
    %164 = vector.shape_cast %163 : vector<14x8x64xbf16> to vector<112x64xbf16>
    %c2_84 = arith.constant 2 : index
    %c0_85 = arith.constant 0 : index
    %c0_86 = arith.constant 0 : index
    %165 = vector.load %arg14[%c2_84, %c0_85, %c0_86] : memref<3x64x4xbf16, #tpu.memory_space<vmem>>, vector<1x64x4xbf16>
    %166 = vector.shape_cast %165 : vector<1x64x4xbf16> to vector<64x4xbf16>
    %cst_87 = arith.constant dense<0.000000e+00> : vector<112x4xf32>
    %167 = tpu.matmul %164, %166, %cst_87 {dimension_numbers = #tpu.dot_dimension_numbers<[1], [0], [0], [1], [0, 0, 1, 1], [], []>} : vector<112x64xbf16>, vector<64x4xbf16>, vector<112x4xf32> -> vector<112x4xf32>
    %168 = arith.addf %162, %167 : vector<112x4xf32>
    %c0_88 = arith.constant 0 : index
    %c0_89 = arith.constant 0 : index
    %169 = vector.load %arg15[%c0_88, %c0_89] : memref<1x4xf32, #tpu.memory_space<vmem>>, vector<1x4xf32>
    %170 = vector.broadcast %169 : vector<1x4xf32> to vector<112x4xf32>
    %171 = arith.addf %168, %170 : vector<112x4xf32>
    %172 = vector.shape_cast %171 : vector<112x4xf32> to vector<14x8x4xf32>
    %173 = arith.truncf %172 : vector<14x8x4xf32> to vector<14x8x4xbf16>
    %cst_90 = arith.constant 0.000000e+00 : bf16
    %174 = vector.broadcast %cst_90 : bf16 to vector<2x8x4xbf16>
    %175 = tpu.concatenate %174, %173, %174 in 0 : vector<2x8x4xbf16>, vector<14x8x4xbf16>, vector<2x8x4xbf16> -> vector<18x8x4xbf16>
    %cst_91 = arith.constant 0.000000e+00 : f32
    %176 = vector.broadcast %cst_91 : f32 to vector<128x4xf32>
    %177 = vector.extract_strided_slice %175 {offsets = [0, 0, 0], sizes = [16, 8, 4], strides = [1, 1, 1]} : vector<18x8x4xbf16> to vector<16x8x4xbf16>
    %178 = vector.shape_cast %177 : vector<16x8x4xbf16> to vector<128x4xbf16>
    %c0_92 = arith.constant 0 : index
    %c0_93 = arith.constant 0 : index
    %c0_94 = arith.constant 0 : index
    %179 = vector.load %arg16[%c0_92, %c0_93, %c0_94] : memref<3x4x4xbf16, #tpu.memory_space<vmem>>, vector<1x4x4xbf16>
    %180 = vector.shape_cast %179 : vector<1x4x4xbf16> to vector<4x4xbf16>
    %cst_95 = arith.constant dense<0.000000e+00> : vector<128x4xf32>
    %181 = tpu.matmul %178, %180, %cst_95 {dimension_numbers = #tpu.dot_dimension_numbers<[1], [0], [0], [1], [0, 0, 1, 1], [], []>} : vector<128x4xbf16>, vector<4x4xbf16>, vector<128x4xf32> -> vector<128x4xf32>
    %182 = arith.addf %176, %181 : vector<128x4xf32>
    %183 = vector.extract_strided_slice %175 {offsets = [1, 0, 0], sizes = [16, 8, 4], strides = [1, 1, 1]} : vector<18x8x4xbf16> to vector<16x8x4xbf16>
    %184 = vector.shape_cast %183 : vector<16x8x4xbf16> to vector<128x4xbf16>
    %c1_96 = arith.constant 1 : index
    %c0_97 = arith.constant 0 : index
    %c0_98 = arith.constant 0 : index
    %185 = vector.load %arg16[%c1_96, %c0_97, %c0_98] : memref<3x4x4xbf16, #tpu.memory_space<vmem>>, vector<1x4x4xbf16>
    %186 = vector.shape_cast %185 : vector<1x4x4xbf16> to vector<4x4xbf16>
    %cst_99 = arith.constant dense<0.000000e+00> : vector<128x4xf32>
    %187 = tpu.matmul %184, %186, %cst_99 {dimension_numbers = #tpu.dot_dimension_numbers<[1], [0], [0], [1], [0, 0, 1, 1], [], []>} : vector<128x4xbf16>, vector<4x4xbf16>, vector<128x4xf32> -> vector<128x4xf32>
    %188 = arith.addf %182, %187 : vector<128x4xf32>
    %189 = vector.extract_strided_slice %175 {offsets = [2, 0, 0], sizes = [16, 8, 4], strides = [1, 1, 1]} : vector<18x8x4xbf16> to vector<16x8x4xbf16>
    %190 = vector.shape_cast %189 : vector<16x8x4xbf16> to vector<128x4xbf16>
    %c2_100 = arith.constant 2 : index
    %c0_101 = arith.constant 0 : index
    %c0_102 = arith.constant 0 : index
    %191 = vector.load %arg16[%c2_100, %c0_101, %c0_102] : memref<3x4x4xbf16, #tpu.memory_space<vmem>>, vector<1x4x4xbf16>
    %192 = vector.shape_cast %191 : vector<1x4x4xbf16> to vector<4x4xbf16>
    %cst_103 = arith.constant dense<0.000000e+00> : vector<128x4xf32>
    %193 = tpu.matmul %190, %192, %cst_103 {dimension_numbers = #tpu.dot_dimension_numbers<[1], [0], [0], [1], [0, 0, 1, 1], [], []>} : vector<128x4xbf16>, vector<4x4xbf16>, vector<128x4xf32> -> vector<128x4xf32>
    %194 = arith.addf %188, %193 : vector<128x4xf32>
    %c0_104 = arith.constant 0 : index
    %c0_105 = arith.constant 0 : index
    %195 = vector.load %arg17[%c0_104, %c0_105] : memref<1x4xf32, #tpu.memory_space<vmem>>, vector<1x4xf32>
    %196 = vector.broadcast %195 : vector<1x4xf32> to vector<128x4xf32>
    %197 = arith.addf %194, %196 : vector<128x4xf32>
    %198 = vector.shape_cast %197 : vector<128x4xf32> to vector<16x8x4xf32>
    %c0_106 = arith.constant 0 : index
    %c0_107 = arith.constant 0 : index
    %c0_108 = arith.constant 0 : index
    %199 = vector.load %arg18[%c0_106, %c0_107, %c0_108] : memref<16x8x4xf32, #tpu.memory_space<vmem>>, vector<16x8x4xf32>
    tpu.vector_store %arg18[%c0_106, %c0_107, %c0_108], %198 {strides = array<i32>} : memref<16x8x4xf32, #tpu.memory_space<vmem>>, vector<16x8x4xf32>,
    return
  }
  func.func @transform_0(%arg0: i32) -> (i32, i32) {
    %c0_i32 = arith.constant 0 : i32
    %c0_i32_0 = arith.constant 0 : i32
    return %arg0, %c0_i32 : i32, i32
  }
  func.func @transform_1(%arg0: i32) -> (i32, i32) {
    %c0_i32 = arith.constant 0 : i32
    %c0_i32_0 = arith.constant 0 : i32
    %c0_i32_1 = arith.constant 0 : i32
    return %c0_i32, %c0_i32_0 : i32, i32
  }
  func.func @transform_2(%arg0: i32) -> (i32, i32) {
    %c0_i32 = arith.constant 0 : i32
    %c0_i32_0 = arith.constant 0 : i32
    %c0_i32_1 = arith.constant 0 : i32
    return %c0_i32, %c0_i32_0 : i32, i32
  }
  func.func @transform_3(%arg0: i32) -> (i32, i32) {
    %c0_i32 = arith.constant 0 : i32
    %c0_i32_0 = arith.constant 0 : i32
    %c0_i32_1 = arith.constant 0 : i32
    return %c0_i32, %c0_i32_0 : i32, i32
  }
  func.func @transform_4(%arg0: i32) -> (i32, i32) {
    %c0_i32 = arith.constant 0 : i32
    %c0_i32_0 = arith.constant 0 : i32
    %c0_i32_1 = arith.constant 0 : i32
    return %c0_i32, %c0_i32_0 : i32, i32
  }
  func.func @transform_5(%arg0: i32) -> (i32, i32, i32) {
    %c0_i32 = arith.constant 0 : i32
    %c0_i32_0 = arith.constant 0 : i32
    %c0_i32_1 = arith.constant 0 : i32
    %c0_i32_2 = arith.constant 0 : i32
    return %c0_i32, %c0_i32_0, %c0_i32_1 : i32, i32, i32
  }
  func.func @transform_6(%arg0: i32) -> (i32, i32) {
    %c0_i32 = arith.constant 0 : i32
    %c0_i32_0 = arith.constant 0 : i32
    %c0_i32_1 = arith.constant 0 : i32
    return %c0_i32, %c0_i32_0 : i32, i32
  }
  func.func @transform_7(%arg0: i32) -> (i32, i32, i32) {
    %c0_i32 = arith.constant 0 : i32
    %c0_i32_0 = arith.constant 0 : i32
    %c0_i32_1 = arith.constant 0 : i32
    %c0_i32_2 = arith.constant 0 : i32
    return %c0_i32, %c0_i32_0, %c0_i32_1 : i32, i32, i32
  }
  func.func @transform_8(%arg0: i32) -> (i32, i32) {
    %c0_i32 = arith.constant 0 : i32
    %c0_i32_0 = arith.constant 0 : i32
    %c0_i32_1 = arith.constant 0 : i32
    return %c0_i32, %c0_i32_0 : i32, i32
  }
  func.func @transform_9(%arg0: i32) -> (i32, i32, i32) {
    %c0_i32 = arith.constant 0 : i32
    %c0_i32_0 = arith.constant 0 : i32
    %c0_i32_1 = arith.constant 0 : i32
    %c0_i32_2 = arith.constant 0 : i32
    return %c0_i32, %c0_i32_0, %c0_i32_1 : i32, i32, i32
  }
  func.func @transform_10(%arg0: i32) -> (i32, i32) {
    %c0_i32 = arith.constant 0 : i32
    %c0_i32_0 = arith.constant 0 : i32
    %c0_i32_1 = arith.constant 0 : i32
    return %c0_i32, %c0_i32_0 : i32, i32
  }
  func.func @transform_11(%arg0: i32) -> (i32, i32, i32) {
    %c0_i32 = arith.constant 0 : i32
    %c0_i32_0 = arith.constant 0 : i32
    %c0_i32_1 = arith.constant 0 : i32
    %c0_i32_2 = arith.constant 0 : i32
    return %c0_i32, %c0_i32_0, %c0_i32_1 : i32, i32, i32
  }
  func.func @transform_12(%arg0: i32) -> (i32, i32) {
    %c0_i32 = arith.constant 0 : i32
    %c0_i32_0 = arith.constant 0 : i32
    %c0_i32_1 = arith.constant 0 : i32
    return %c0_i32, %c0_i32_0 : i32, i32
  }
  func.func @transform_13(%arg0: i32) -> (i32, i32, i32) {
    %c0_i32 = arith.constant 0 : i32
    %c0_i32_0 = arith.constant 0 : i32
    %c0_i32_1 = arith.constant 0 : i32
    %c0_i32_2 = arith.constant 0 : i32
    return %c0_i32, %c0_i32_0, %c0_i32_1 : i32, i32, i32
  }
  func.func @transform_14(%arg0: i32) -> (i32, i32) {
    %c0_i32 = arith.constant 0 : i32
    %c0_i32_0 = arith.constant 0 : i32
    %c0_i32_1 = arith.constant 0 : i32
    return %c0_i32, %c0_i32_0 : i32, i32
  }
  func.func @transform_15(%arg0: i32) -> (i32, i32, i32) {
    %c0_i32 = arith.constant 0 : i32
    %c0_i32_0 = arith.constant 0 : i32
    %c0_i32_1 = arith.constant 0 : i32
    %c0_i32_2 = arith.constant 0 : i32
    return %c0_i32, %c0_i32_0, %c0_i32_1 : i32, i32, i32
  }
  func.func @transform_16(%arg0: i32) -> (i32, i32) {
    %c0_i32 = arith.constant 0 : i32
    %c0_i32_0 = arith.constant 0 : i32
    %c0_i32_1 = arith.constant 0 : i32
    return %c0_i32, %c0_i32_0 : i32, i32
  }
  func.func @transform_17(%arg0: i32) -> (i32, i32, i32) {
    %c0_i32 = arith.constant 0 : i32
    %c0_i32_0 = arith.constant 0 : i32
    %c0_i32_1 = arith.constant 0 : i32
    return %c0_i32, %arg0, %c0_i32_0 : i32, i32, i32
  }
}

</mosaic_0001>

<bundles_post_ra>
// kernel: decoder_forward.1
= control target key start
LH: loop header
LB: loop body
LE: loop exit
PB: predicated region body
PF: predicated region fallthrough
CT: control target
= control target key end

     0   :  { %s13988_s0 = inlined_call_operand.vmem [shape: f32[8,12], index: 0, kind: input, shape index: {}]   ;;  %s13989_s1 = inlined_call_operand.hbm [shape: bf16[12,2048], index: 1, kind: input, shape index: {}]   ;;  %s13990_s2 = inlined_call_operand.hbm [shape: f32[1,2048], index: 2, kind: input, shape index: {}]   ;;  %s13991_s3 = inlined_call_operand.hbm [shape: bf16[2048,768], index: 3, kind: input, shape index: {}]   ;;  %s13992_s4 = inlined_call_operand.hbm [shape: f32[1,768], index: 4, kind: input, shape index: {}]   ;;  %s13993_s5 = inlined_call_operand.vmem [shape: bf16[3,64,32], index: 5, kind: input, shape index: {}]   ;;  %s13994_s6 = inlined_call_operand.hbm [shape: f32[1,32], index: 6, kind: input, shape index: {}]   ;;  %s13995_s7 = inlined_call_operand.hbm [shape: bf16[3,32,64], index: 7, kind: input, shape index: {}]   ;;  %s13996_s8 = inlined_call_operand.hbm [shape: f32[1,64], index: 8, kind: input, shape index: {}]   ;;  %s13997_s9 = inlined_call_operand.vmem [shape: bf16[3,64,32], index: 9, kind: input, shape index: {}]   ;;  %s13998_s10 = inlined_call_operand.hbm [shape: f32[1,32], index: 10, kind: input, shape index: {}]   ;;  %s13999_s11 = inlined_call_operand.hbm [shape: bf16[3,32,64], index: 11, kind: input, shape index: {}]   ;;  %s14000_s12 = inlined_call_operand.hbm [shape: f32[1,64], index: 12, kind: input, shape index: {}]   ;;  %s14001_s13 = inlined_call_operand.vmem [shape: bf16[3,64,4], index: 13, kind: input, shape index: {}]   ;;  %s14002_s14 = inlined_call_operand.hbm [shape: f32[1,4], index: 14, kind: input, shape index: {}]   ;;  %s14003_s15 = inlined_call_operand.hbm [shape: bf16[3,4,4], index: 15, kind: input, shape index: {}]   ;;  %s14004_s16 = inlined_call_operand.hbm [shape: f32[1,4], index: 16, kind: input, shape index: {}]   ;;  %s14005_s17 = inlined_call_operand.vmem [shape: f32[16,8,4], index: 17, kind: output, shape index: {}]  }
   0x1   :  { %14006 = sst [smem:[#allocation29_spill]] %s13988_s0 }
   0x2   :  { %14007 = sst [smem:[#allocation30_spill]] %s13989_s1 }
   0x3   :  { %22 = vsyncpa [#allocation3], 0 }
   0x4   :  { %23 = vsyncpa [#allocation5], 0 }
   0x5   :  { %24 = vsyncpa [#allocation8], 0 }
   0x6   :  { %25 = vsyncpa [#allocation11], 0 }
   0x7   :  { %26 = vsyncpa [#allocation14], 0 }
   0x8   :  { %27 = vsyncpa [#allocation17], 0 }
   0x9   :  { %28 = vsyncpa [#allocation20], 0  ;;  %s12599_s24 = smov [#allocation4]   ;;  %s12600_s26 = smov [#allocation7]  }
   0xa   :  { %s49_s25 = sshll.u32 %s12599_s24, 4  ;;  %s71_s27 = sshll.u32 %s12600_s26, 4  ;;  %s50_s25 = int_to_ptr.vmem [resolvable:$true] %s49_s25  ;;  %s72_s27 = int_to_ptr.vmem [resolvable:$true] %s71_s27 }
   0xb   :  { %s12333_s28 = scalar_lea.vmem %s50_s25, 256  ;;  %p12338_p1 = scmp.lt.s32.totalorder %s50_s25, %s50_s25 }
   0xc   :  { %p12334_p0 = scmp.ne.s32.totalorder %s50_s25, %s12333_s28  ;;  %p12339_p2 = scmp.lt.s32.totalorder %s12333_s28, %s12333_s28 }
   0xe   :  { %p12340_p3 = por %p12339_p2, %p12338_p1 }
  0x10   :  { %p12341_p4 = pnand %p12340_p3, %p12334_p0 }
  0x12   :  { %12344 = shalt.err (!%p12341_p4)
}
  0x13   :  { %52 = dma.hbm_to_vmem [thread:$0]  %s13990_s2, 256, %s50_s25, [#allocation5]  }
  0x14   :  { %s12353_s30 = scalar_lea.vmem %s72_s27, 96  ;;  %p12358_p6 = scmp.lt.s32.totalorder %s72_s27, %s72_s27 }
  0x15   :  { %p12354_p5 = scmp.ne.s32.totalorder %s72_s27, %s12353_s30  ;;  %p12359_p7 = scmp.lt.s32.totalorder %s12353_s30, %s12353_s30 }
  0x17   :  { %p12360_p8 = por %p12359_p7, %p12358_p6 }
  0x19   :  { %p12361_p9 = pnand %p12360_p8, %p12354_p5 }
  0x1b   :  { %12364 = shalt.err (!%p12361_p9)
}
  0x1c   :  { %74 = dma.hbm_to_vmem [thread:$0]  %s13992_s4, 96, %s72_s27, [#allocation8]  }
  0x1d   :  { %s12601_s1 = smov [#allocation10]  }
  0x1e   :  { %s92_s20 = sshll.u32 %s12601_s1, 4  ;;  %s93_s20 = int_to_ptr.vmem [resolvable:$true] %s92_s20 }
  0x1f   :  { %s12373_s21 = scalar_lea.vmem %s93_s20, 768  ;;  %p12378_p11 = scmp.lt.s32.totalorder %s93_s20, %s93_s20 }
  0x20   :  { %p12374_p10 = scmp.ne.s32.totalorder %s93_s20, %s12373_s21  ;;  %p12379_p12 = scmp.lt.s32.totalorder %s12373_s21, %s12373_s21 }
  0x22   :  { %p12380_p13 = por %p12379_p12, %p12378_p11 }
  0x24   :  { %p12381_p0 = pnand %p12380_p13, %p12374_p10 }
  0x26   :  { %12384 = shalt.err (!%p12381_p0)
}
  0x27   :  { %s12602_s2 = smov 64   ;;  %s12603_s22 = smov 4  }
  0x28   :  { %98 = dma.hbm_to_vmem [thread:$0]  %s13995_s7, 768, %s93_s20, [#allocation11], %s12602_s2, %s12602_s2, %s12603_s22  }
  0x29   :  { %s12604_s4 = smov [#allocation13]   ;;  %s12605_s26 = smov [#allocation16]  }
  0x2a   :  { %s117_s25 = sshll.u32 %s12604_s4, 4  ;;  %s139_s27 = sshll.u32 %s12605_s26, 4  ;;  %s118_s25 = int_to_ptr.vmem [resolvable:$true] %s117_s25  ;;  %s140_s27 = int_to_ptr.vmem [resolvable:$true] %s139_s27 }
  0x2b   :  { %s12393_s28 = scalar_lea.vmem %s118_s25, 16  ;;  %s12397_s29 = scalar_lea.vmem %s118_s25, 32 }
  0x2c   :  { %p12394_p1 = scmp.ne.s32.totalorder %s118_s25, %s12393_s28  ;;  %p12398_p2 = scmp.lt.s32.totalorder %s118_s25, %s118_s25 }
  0x2d   :  { %p12399_p3 = scmp.lt.s32.totalorder %s12397_s29, %s12393_s28 }
  0x2f   :  { %p12400_p4 = por %p12399_p3, %p12398_p2 }
  0x31   :  { %p12401_p5 = pnand %p12400_p4, %p12394_p1 }
  0x33   :  { %12404 = shalt.err (!%p12401_p5)
}
  0x34   :  { %120 = dma.hbm_to_vmem [thread:$0]  %s13998_s10, 16, %s118_s25, [#allocation14]  }
  0x35   :  { %s12413_s18 = scalar_lea.vmem %s140_s27, 16  ;;  %s12417_s7 = scalar_lea.vmem %s140_s27, 32 }
  0x36   :  { %p12414_p6 = scmp.ne.s32.totalorder %s140_s27, %s12413_s18  ;;  %p12418_p7 = scmp.lt.s32.totalorder %s140_s27, %s140_s27 }
  0x37   :  { %p12419_p8 = scmp.lt.s32.totalorder %s12417_s7, %s12413_s18 }
  0x39   :  { %p12420_p9 = por %p12419_p8, %p12418_p7 }
  0x3b   :  { %p12421_p10 = pnand %p12420_p9, %p12414_p6 }
  0x3d   :  { %12424 = shalt.err (!%p12421_p10)
}
  0x3e   :  { %142 = dma.hbm_to_vmem [thread:$0]  %s14000_s12, 16, %s140_s27, [#allocation17]  }
  0x3f   :  { %s12606_s20 = smov [#allocation19]  }
  0x40   :  { %s160_s21 = sshll.u32 %s12606_s20, 4  ;;  %s161_s21 = int_to_ptr.vmem [resolvable:$true] %s160_s21 }
  0x41   :  { %s12433_s23 = scalar_lea.vmem %s161_s21, 96  ;;  %p12438_p12 = scmp.lt.s32.totalorder %s161_s21, %s161_s21 }
  0x42   :  { %p12434_p11 = scmp.ne.s32.totalorder %s161_s21, %s12433_s23  ;;  %p12439_p13 = scmp.lt.s32.totalorder %s12433_s23, %s12433_s23 }
  0x44   :  { %p12440_p0 = por %p12439_p13, %p12438_p12 }
  0x46   :  { %p12441_p1 = pnand %p12440_p0, %p12434_p11 }
  0x48   :  { %12444 = shalt.err (!%p12441_p1)
}
  0x49   :  { %s12607_s10 = smov 32   ;;  %s12608_s24 = smov 2  }
  0x4a   :  { %166 = dma.hbm_to_vmem [thread:$0]  %s14003_s15, 96, %s161_s21, [#allocation20], %s12607_s10, %s12607_s10, %s12608_s24  }
  0x4b   :  { %s12609_s26 = smov [#allocation2]   ;;  %s12610_s12 = smov [#allocation6]  }
  0x4c   :  { %s36_s28 = sshll.u32 %s12609_s26, 4  ;;  %s58_s27 = sshll.u32 %s12610_s12, 4  ;;  %s37_s28 = int_to_ptr.vmem [resolvable:$true] %s36_s28  ;;  %s59_s27 = int_to_ptr.vmem [resolvable:$true] %s58_s27 }
  0x4d   :  { %s12453_s29 = scalar_lea.vmem %s37_s28, 2048  ;;  %p12458_p3 = scmp.lt.s32.totalorder %s37_s28, %s37_s28 }
  0x4e   :  { %p12454_p2 = scmp.ne.s32.totalorder %s37_s28, %s12453_s29  ;;  %p12459_p4 = scmp.lt.s32.totalorder %s12453_s29, %s12453_s29 }
  0x50   :  { %p12460_p5 = por %p12459_p4, %p12458_p3 }
  0x52   :  { %p12461_p6 = pnand %p12460_p5, %p12454_p2 }
  0x54   :  { %12464 = shalt.err (!%p12461_p6)
}
  0x55   :  { %s12611_s0 = smov 1024   ;;  %s14008_s7 = sld [smem:[#allocation30_spill]] }
  0x56   :  { %s12473_s15 = scalar_lea.vmem %s59_s27, 98304  ;;  %p12478_p8 = scmp.lt.s32.totalorder %s59_s27, %s59_s27 }
  0x57   :  { %p12474_p7 = scmp.ne.s32.totalorder %s59_s27, %s12473_s15  ;;  %p12479_p9 = scmp.lt.s32.totalorder %s12473_s15, %s12473_s15 }
  0x59   :  { %p12480_p10 = por %p12479_p9, %p12478_p8 }
  0x5b   :  { %42 = dma.hbm_to_vmem [thread:$0]  %s14008_s7, 2048, %s37_s28, [#allocation3], %s12611_s0, %s12611_s0, %s12602_s2  }
  0x5c   :  { %p12481_p11 = pnand %p12480_p10, %p12474_p7 }
  0x5e   :  { %12484 = shalt.err (!%p12481_p11)
}
  0x5f   :  { %s12612_s19 = smov 384   ;;  %s12613_s1 = smov 24  }
  0x60   :  { %64 = dma.hbm_to_vmem [thread:$0]  %s13991_s3, 98304, %s59_s27, [#allocation5], %s12612_s19, %s12612_s19, %s12613_s1  }
  0x61   :  { %s12614_s23 = smov [#allocation9]   ;;  %s12615_s24 = smov [#allocation12]  }
  0x62   :  { %s83_s10 = sshll.u32 %s12614_s23, 4  ;;  %s105_s4 = sshll.u32 %s12615_s24, 4  ;;  %s84_s10 = int_to_ptr.vmem [resolvable:$true] %s83_s10  ;;  %s106_s4 = int_to_ptr.vmem [resolvable:$true] %s105_s4 }
  0x63   :  { %s12493_s25 = scalar_lea.vmem %s84_s10, 16  ;;  %s12497_s26 = scalar_lea.vmem %s84_s10, 32 }
  0x64   :  { %p12494_p12 = scmp.ne.s32.totalorder %s84_s10, %s12493_s25  ;;  %p12498_p13 = scmp.lt.s32.totalorder %s84_s10, %s84_s10 }
  0x65   :  { %p12499_p0 = scmp.lt.s32.totalorder %s12497_s26, %s12493_s25 }
  0x67   :  { %p12500_p1 = por %p12499_p0, %p12498_p13 }
  0x69   :  { %p12501_p2 = pnand %p12500_p1, %p12494_p12 }
  0x6b   :  { %12504 = shalt.err (!%p12501_p2)
}
  0x6c   :  { %86 = dma.hbm_to_vmem [thread:$0]  %s13994_s6, 16, %s84_s10, [#allocation8]  }
  0x6d   :  { %s12513_s29 = scalar_lea.vmem %s106_s4, 16  ;;  %s12517_s3 = scalar_lea.vmem %s106_s4, 32 }
  0x6e   :  { %p12514_p3 = scmp.ne.s32.totalorder %s106_s4, %s12513_s29  ;;  %p12518_p4 = scmp.lt.s32.totalorder %s106_s4, %s106_s4 }
  0x6f   :  { %p12519_p5 = scmp.lt.s32.totalorder %s12517_s3, %s12513_s29 }
  0x71   :  { %p12520_p6 = por %p12519_p5, %p12518_p4 }
  0x73   :  { %p12521_p7 = pnand %p12520_p6, %p12514_p3 }
  0x75   :  { %12524 = shalt.err (!%p12521_p7)
}
  0x76   :  { %108 = dma.hbm_to_vmem [thread:$0]  %s13996_s8, 16, %s106_s4, [#allocation11]  }
  0x77   :  { %s12616_s30 = smov [#allocation15]   ;;  %s12617_s7 = smov [#allocation18]  }
  0x78   :  { %s126_s18 = sshll.u32 %s12616_s30, 4  ;;  %s151_s15 = sshll.u32 %s12617_s7, 4  ;;  %s127_s18 = int_to_ptr.vmem [resolvable:$true] %s126_s18  ;;  %s152_s15 = int_to_ptr.vmem [resolvable:$true] %s151_s15 }
  0x79   :  { %s12533_s19 = scalar_lea.vmem %s127_s18, 768  ;;  %p12538_p9 = scmp.lt.s32.totalorder %s127_s18, %s127_s18 }
  0x7a   :  { %p12534_p8 = scmp.ne.s32.totalorder %s127_s18, %s12533_s19  ;;  %p12539_p10 = scmp.lt.s32.totalorder %s12533_s19, %s12533_s19 }
  0x7c   :  { %p12540_p11 = por %p12539_p10, %p12538_p9 }
  0x7e   :  { %p12541_p12 = pnand %p12540_p11, %p12534_p8 }
  0x80   :  { %12544 = shalt.err (!%p12541_p12)
}
  0x81   :  { %132 = dma.hbm_to_vmem [thread:$0]  %s13999_s11, 768, %s127_s18, [#allocation14], %s12602_s2, %s12602_s2, %s12603_s22  }
  0x82   :  { %s12553_s8 = scalar_lea.vmem %s152_s15, 16  ;;  %s12557_s20 = scalar_lea.vmem %s152_s15, 32 }
  0x83   :  { %p12554_p13 = scmp.ne.s32.totalorder %s152_s15, %s12553_s8  ;;  %p12558_p0 = scmp.lt.s32.totalorder %s152_s15, %s152_s15 }
  0x84   :  { %p12559_p1 = scmp.lt.s32.totalorder %s12557_s20, %s12553_s8 }
  0x86   :  { %p12560_p2 = por %p12559_p1, %p12558_p0 }
  0x88   :  { %p12561_p3 = pnand %p12560_p2, %p12554_p13 }
  0x8a   :  { %12564 = shalt.err (!%p12561_p3)
}
  0x8b   :  { %154 = dma.hbm_to_vmem [thread:$0]  %s14002_s14, 16, %s152_s15, [#allocation17]  }
  0x8c   :  { %s12618_s10 = smov [#allocation21]  }
  0x8d   :  { %s173_s24 = sshll.u32 %s12618_s10, 4  ;;  %s174_s24 = int_to_ptr.vmem [resolvable:$true] %s173_s24 }
  0x8e   :  { %s12573_s4 = scalar_lea.vmem %s174_s24, 16  ;;  %s12577_s25 = scalar_lea.vmem %s174_s24, 32 }
  0x8f   :  { %p12574_p4 = scmp.ne.s32.totalorder %s174_s24, %s12573_s4  ;;  %p12578_p5 = scmp.lt.s32.totalorder %s174_s24, %s174_s24 }
  0x90   :  { %p12579_p6 = scmp.lt.s32.totalorder %s12577_s25, %s12573_s4 }
  0x92   :  { %p12580_p7 = por %p12579_p6, %p12578_p5 }
  0x94   :  { %p12581_p8 = pnand %p12580_p7, %p12574_p4 }
  0x96   :  { %12584 = shalt.err (!%p12581_p8)
}
  0x97   :  { %176 = dma.hbm_to_vmem [thread:$0]  %s14004_s16, 16, %s174_s24, [#allocation20]  }
  0x98   :  { %12585 = dma.done.wait [#allocation3], 2048  }
  0x99   :  { %12586 = vsyncadd [#allocation3], 4294965248 }
  0x9a   :  { %12587 = dma.done.wait [#allocation5], 98560  }
  0x9b   :  { %12588 = vsyncadd [#allocation5], 4294868736 }
  0x9c   :  { %12589 = dma.done.wait [#allocation8], 112  }
  0x9d   :  { %12590 = vsyncadd [#allocation8], 4294967184 }
  0x9e   :  { %12591 = dma.done.wait [#allocation11], 784  }
  0x9f   :  { %12592 = vsyncadd [#allocation11], 4294966512 }
  0xa0   :  { %12593 = dma.done.wait [#allocation14], 784  }
  0xa1   :  { %12594 = vsyncadd [#allocation14], 4294966512 }
  0xa2   :  { %12595 = dma.done.wait [#allocation17], 32  }
  0xa3   :  { %12596 = vsyncadd [#allocation17], 4294967264 }
  0xa4   :  { %12597 = dma.done.wait [#allocation20], 112  }
  0xa5   :  { %12598 = vsyncadd [#allocation20], 4294967184  ;;  %v12619_v0 = vmov 0   ;;  %v219_v1 = vld [vmem:[#allocation2] sm:$0xff]  ;;  %vm387_vm0 = vcmask 1045504   ;;  %v220_v3 = vld [vmem:[#allocation2 + $0x8] sm:$0xff] }
  0xa6   :  { %468 = vmatprep.mubr.bf16.mxu0 %v12619_v0  ;;  %509 = vmatprep.mubr.bf16.mxu1 %v12619_v0  ;;  %v227_v2 = vld [vmem:[#allocation2 + $0x40] sm:$0x33]  ;;  %v228_v5 = vld [vmem:[#allocation2 + $0x48] sm:$0x33]  ;;  %s14009_s26 = sld [smem:[#allocation29_spill]]  ;;  %v221_v8 = vld [vmem:[#allocation2 + $0x10] sm:$0xff] }
  0xa7   :  { %v9272_v4 = vcombine.high %v219_v1, %v227_v2  ;;  %v9271_v6 = vcombine.low %v219_v1, %v227_v2  ;;  %v9274_v9 = vcombine.high %v220_v3, %v228_v5  ;;  %v9273_v10 = vcombine.low %v220_v3, %v228_v5  ;;  %v229_v12 = vld [vmem:[#allocation2 + $0x50] sm:$0x33]  ;;  %v222_v13 = vld [vmem:[#allocation2 + $0x18] sm:$0xff]  ;;  %v223_v19 = vld [vmem:[#allocation2 + $0x20] sm:$0xff] }
  0xa8   :  { %v230_v14 = vld [vmem:[#allocation2 + $0x58] sm:$0x33]  ;;  %v9276_v16 = vcombine.high %v221_v8, %v229_v12  ;;  %v9275_v17 = vcombine.low %v221_v8, %v229_v12  ;;  %v231_v20 = vld [vmem:[#allocation2 + $0x60] sm:$0x33]  ;;  %vm383_vm1 = vcmask 97280   ;;  %v224_v23 = vld [vmem:[#allocation2 + $0x28] sm:$0xff] }
  0xa9   :  { %9287 = vmatprep.subr.msk.bf16.mxu0 %vm387_vm0, %v9272_v4  ;;  %v389_v15 = vsel %vm387_vm0, %v9271_v6, 0  ;;  %v9278_v18 = vcombine.high %v222_v13, %v230_v14  ;;  %9289 = vmatprep.subr.msk.bf16.mxu1 %vm387_vm0, %v9274_v9  ;;  %v395_v21 = vsel %vm387_vm0, %v9273_v10, 0  ;;  %v9277_v22 = vcombine.low %v222_v13, %v230_v14  ;;  %v232_v24 = vld [vmem:[#allocation2 + $0x68] sm:$0x33]  ;;  %v225_v31 = vld [vmem:[#allocation2 + $0x30] sm:$0xff]  ;;  %v226_v33 = vld [vmem:[#allocation2 + $0x38] sm:$0xff] }
  0xaa   :  { %451 = vmatpush1.bf16.msra.mxu0 %v389_v15  ;;  %492 = vmatpush1.bf16.msra.mxu1 %v395_v21  ;;  %v401_v25 = vsel %vm387_vm0, %v9275_v17, 0  ;;  %v9280_v27 = vcombine.high %v223_v19, %v231_v20  ;;  %v9282_v28 = vcombine.high %v224_v23, %v232_v24  ;;  %v9279_v29 = vcombine.low %v223_v19, %v231_v20  ;;  %v233_v32 = vld [vmem:[#allocation2 + $0x70] sm:$0x33]  ;;  %v234_v34 = vld [vmem:[#allocation2 + $0x78] sm:$0x33] }
  0xab   :  { %9291 = vmatprep.subr.msk.bf16.mxu0 %vm387_vm0, %v9276_v16  ;;  %9293 = vmatprep.subr.msk.bf16.mxu1 %vm387_vm0, %v9278_v18  ;;  %v407_v26 = vsel %vm387_vm0, %v9277_v22, 0  ;;  %v9281_v30 = vcombine.low %v224_v23, %v232_v24  ;;  %v9284_v37 = vcombine.high %v225_v31, %v233_v32  ;;  %v9286_v38 = vcombine.high %v226_v33, %v234_v34  ;;  %v11125_v43 = vld [vmem:[#allocation6 + $0x154] ss:$24 sps:$4 sm:$0xff]   ;;  %v11123_v45 = vld [vmem:[#allocation6 + $0x150] ss:$24 sps:$4 sm:$0xff]  }
  0xac   :  { %v217_v7 = vld [vmem:[%s14009_s26] sm:$0xff]  ;;  %v413_v35 = vsel %vm387_vm0, %v9279_v29, 0  ;;  %v9283_v39 = vcombine.low %v225_v31, %v233_v32  ;;  %v9285_v40 = vcombine.low %v226_v33, %v234_v34  ;;  %v11131_v47 = vld [vmem:[#allocation6 + $0x124] ss:$24 sps:$4 sm:$0xff]   ;;  %v11129_v49 = vld [vmem:[#allocation6 + $0x120] ss:$24 sps:$4 sm:$0xff]  }
  0xad   :  { %v12763_v11 = vpack.c.bf16 %v217_v7, %v217_v7  ;;  %v419_v36 = vsel %vm387_vm0, %v9281_v30, 0  ;;  %v11128_v44 = vld [vmem:[#allocation6 + $0x454] ss:$24 sps:$4 sm:$0xff]   ;;  %v11126_v46 = vld [vmem:[#allocation6 + $0x450] ss:$24 sps:$4 sm:$0xff]   ;;  %vm12621_vm2 = vmmov 0  }
  0xae   :  { %v425_v41 = vsel %vm387_vm0, %v9283_v39, 0  ;;  %v431_v42 = vsel %vm387_vm0, %v9285_v40, 0  ;;  %v11134_v48 = vld [vmem:[#allocation6 + $0x424] ss:$24 sps:$4 sm:$0xff]   ;;  %v11132_v50 = vld [vmem:[#allocation6 + $0x420] ss:$24 sps:$4 sm:$0xff]  }
  0xaf   :  { %9288 = vmatmul.mubr.msk.bf16.vlgmr.msra.gmra.mxu0 %vm383_vm1, %v12763_v11  ;;  %9290 = vmatmul.mubr.msk.bf16.vlgmr.msra.gmra.mxu1 %vm383_vm1, %v12763_v11  ;;  %v11137_v51 = vld [vmem:[#allocation6 + $0xf4] ss:$24 sps:$4 sm:$0xff]   ;;  %v11135_v53 = vld [vmem:[#allocation6 + $0xf0] ss:$24 sps:$4 sm:$0xff]   ;;  %v11143_v55 = vld [vmem:[#allocation6 + $0xc4] ss:$24 sps:$4 sm:$0xff]  }
  0xb0   :  { %533 = vmatpush1.bf16.msra.mxu0 %v401_v25  ;;  %550 = vmatprep.mubr.bf16.mxu0 %v12619_v0  ;;  %v11140_v52 = vld [vmem:[#allocation6 + $0x3f4] ss:$24 sps:$4 sm:$0xff]   ;;  %v11138_v54 = vld [vmem:[#allocation6 + $0x3f0] ss:$24 sps:$4 sm:$0xff]   ;;  %v11146_v56 = vld [vmem:[#allocation6 + $0x3c4] ss:$24 sps:$4 sm:$0xff]  }
  0xb1   :  { %574 = vmatpush1.bf16.msra.mxu1 %v407_v26  ;;  %591 = vmatprep.mubr.bf16.mxu1 %v12619_v0  ;;  %v11141_v57 = vld [vmem:[#allocation6 + $0xc0] ss:$24 sps:$4 sm:$0xff]   ;;  %v11149_v59 = vld [vmem:[#allocation6 + $0x94] ss:$24 sps:$4 sm:$0xff]   ;;  %v11147_v60 = vld [vmem:[#allocation6 + $0x90] ss:$24 sps:$4 sm:$0xff]  }
  0xb2   :  { %9295 = vmatprep.subr.msk.bf16.mxu0 %vm387_vm0, %v9280_v27  ;;  %9297 = vmatprep.subr.msk.bf16.mxu1 %vm387_vm0, %v9282_v28  ;;  %v11144_v58 = vld [vmem:[#allocation6 + $0x3c0] ss:$24 sps:$4 sm:$0xff]   ;;  %v11152_v61 = vld [vmem:[#allocation6 + $0x394] ss:$24 sps:$4 sm:$0xff]   ;;  %v11150_v62 = vld [vmem:[#allocation6 + $0x390] ss:$24 sps:$4 sm:$0xff]  }
  0xb3   :  { %v11155_v63 = vld [vmem:[#allocation6 + $0x64] ss:$24 sps:$4 sm:$0xff]   ;;  %v11153_v2 = vld [vmem:[#allocation6 + $0x60] ss:$24 sps:$4 sm:$0xff]   ;;  %v11161_v4 = vld [vmem:[#allocation6 + $0x34] ss:$24 sps:$4 sm:$0xff]  }
  0xb4   :  { %v11158_v1 = vld [vmem:[#allocation6 + $0x364] ss:$24 sps:$4 sm:$0xff]   ;;  %v11156_v3 = vld [vmem:[#allocation6 + $0x360] ss:$24 sps:$4 sm:$0xff]   ;;  %v11164_v5 = vld [vmem:[#allocation6 + $0x334] ss:$24 sps:$4 sm:$0xff]  }
  0xb5   :  { %v11159_v6 = vld [vmem:[#allocation6 + $0x30] ss:$24 sps:$4 sm:$0xff]   ;;  %v11167_v8 = vld [vmem:[#allocation6 + $0x4] ss:$24 sps:$4 sm:$0xff]   ;;  %v11165_v10 = vld [vmem:[#allocation6] ss:$24 sps:$4 sm:$0xff]  }
  0xb6   :  { %v11162_v7 = vld [vmem:[#allocation6 + $0x330] ss:$24 sps:$4 sm:$0xff]   ;;  %v11170_v9 = vld [vmem:[#allocation6 + $0x304] ss:$24 sps:$4 sm:$0xff]   ;;  %v11173_v12 = vld [vmem:[#allocation6 + $0x2d4] ss:$24 sps:$4 sm:$0xff]  }
  0xb7   :  { %9292 = vmatmul.mubr.msk.bf16.vlgmr.msra.gmra.mxu0 %vm383_vm1, %v12763_v11  ;;  %9294 = vmatmul.mubr.msk.bf16.vlgmr.msra.gmra.mxu1 %vm383_vm1, %v12763_v11  ;;  %v11176_v13 = vld [vmem:[#allocation6 + $0x5d4] ss:$24 sps:$4 sm:$0xff]   ;;  %v11171_v14 = vld [vmem:[#allocation6 + $0x2d0] ss:$24 sps:$4 sm:$0xff]   ;;  %v11179_v16 = vld [vmem:[#allocation6 + $0x2a4] ss:$24 sps:$4 sm:$0xff]  }
  0xb8   :  { %615 = vmatpush1.bf16.msra.mxu0 %v413_v35  ;;  %632 = vmatprep.mubr.bf16.mxu0 %v12619_v0  ;;  %v11174_v15 = vld [vmem:[#allocation6 + $0x5d0] ss:$24 sps:$4 sm:$0xff]   ;;  %v11182_v17 = vld [vmem:[#allocation6 + $0x5a4] ss:$24 sps:$4 sm:$0xff]   ;;  %v11177_v18 = vld [vmem:[#allocation6 + $0x2a0] ss:$24 sps:$4 sm:$0xff]  }
  0xb9   :  { %656 = vmatpush1.bf16.msra.mxu1 %v419_v36  ;;  %673 = vmatprep.mubr.bf16.mxu1 %v12619_v0  ;;  %v11180_v19 = vld [vmem:[#allocation6 + $0x5a0] ss:$24 sps:$4 sm:$0xff]   ;;  %v11185_v20 = vld [vmem:[#allocation6 + $0x274] ss:$24 sps:$4 sm:$0xff]   ;;  %v11183_v22 = vld [vmem:[#allocation6 + $0x270] ss:$24 sps:$4 sm:$0xff]  }
  0xba   :  { %9299 = vmatprep.subr.msk.bf16.mxu0 %vm387_vm0, %v9284_v37  ;;  %9301 = vmatprep.subr.msk.bf16.mxu1 %vm387_vm0, %v9286_v38  ;;  %v11188_v21 = vld [vmem:[#allocation6 + $0x574] ss:$24 sps:$4 sm:$0xff]   ;;  %v11186_v23 = vld [vmem:[#allocation6 + $0x570] ss:$24 sps:$4 sm:$0xff]   ;;  %v11191_v24 = vld [vmem:[#allocation6 + $0x244] ss:$24 sps:$4 sm:$0xff]  }
  0xbb   :  { %v11194_v25 = vld [vmem:[#allocation6 + $0x544] ss:$24 sps:$4 sm:$0xff]   ;;  %v11189_v26 = vld [vmem:[#allocation6 + $0x240] ss:$24 sps:$4 sm:$0xff]   ;;  %v11197_v28 = vld [vmem:[#allocation6 + $0x214] ss:$24 sps:$4 sm:$0xff]  }
  0xbc   :  { %v11192_v27 = vld [vmem:[#allocation6 + $0x540] ss:$24 sps:$4 sm:$0xff]   ;;  %v11200_v29 = vld [vmem:[#allocation6 + $0x514] ss:$24 sps:$4 sm:$0xff]   ;;  %v11195_v30 = vld [vmem:[#allocation6 + $0x210] ss:$24 sps:$4 sm:$0xff]  }
  0xbd   :  { %v11198_v31 = vld [vmem:[#allocation6 + $0x510] ss:$24 sps:$4 sm:$0xff]   ;;  %v11203_v32 = vld [vmem:[#allocation6 + $0x1e4] ss:$24 sps:$4 sm:$0xff]   ;;  %v11201_v34 = vld [vmem:[#allocation6 + $0x1e0] ss:$24 sps:$4 sm:$0xff]  }
  0xbe   :  { %v11206_v33 = vld [vmem:[#allocation6 + $0x4e4] ss:$24 sps:$4 sm:$0xff]   ;;  %v11204_v35 = vld [vmem:[#allocation6 + $0x4e0] ss:$24 sps:$4 sm:$0xff]   ;;  %v11209_v36 = vld [vmem:[#allocation6 + $0x1b4] ss:$24 sps:$4 sm:$0xff]  }
  0xbf   :  { %9296 = vmatmul.mubr.msk.bf16.vlgmr.msra.gmra.mxu0 %vm383_vm1, %v12763_v11  ;;  %9298 = vmatmul.mubr.msk.bf16.vlgmr.msra.gmra.mxu1 %vm383_vm1, %v12763_v11  ;;  %v11212_v37 = vld [vmem:[#allocation6 + $0x4b4] ss:$24 sps:$4 sm:$0xff]   ;;  %v11207_v38 = vld [vmem:[#allocation6 + $0x1b0] ss:$24 sps:$4 sm:$0xff]   ;;  %v11215_v40 = vld [vmem:[#allocation6 + $0x184] ss:$24 sps:$4 sm:$0xff]  }
  0xc0   :  { %697 = vmatpush1.bf16.msra.mxu0 %v425_v41  ;;  %714 = vmatprep.mubr.bf16.mxu0 %v12619_v0  ;;  %v11210_v39 = vld [vmem:[#allocation6 + $0x4b0] ss:$24 sps:$4 sm:$0xff]   ;;  %v11218_v41 = vld [vmem:[#allocation6 + $0x484] ss:$24 sps:$4 sm:$0xff]   ;;  %vm6536_vm3 = vcmask 523264   ;;  %vm7010_vm4 = vcmask 261120  }
  0xc1   :  { %738 = vmatpush1.bf16.msra.mxu1 %v431_v42  ;;  %755 = vmatprep.mubr.bf16.mxu1 %v12619_v0  ;;  %v11213_v42 = vld [vmem:[#allocation6 + $0x180] ss:$24 sps:$4 sm:$0xff]   ;;  %vm8872_vm5 = vcmask 1041408   ;;  %vm8847_vm6 = vcmask 31744  }
  0xc2   :  { %5436 = vmatprep.subr.bf16.mxu0 %v11125_v43  ;;  %5477 = vmatprep.subr.bf16.mxu1 %v11128_v44  ;;  %v11216_v43 = vld [vmem:[#allocation6 + $0x480] ss:$24 sps:$4 sm:$0xff]   ;;  %v11221_v44 = vld [vmem:[#allocation6 + $0x754] ss:$24 sps:$4 sm:$0xff]  }
  0xc7   :  { %9300 = vmatmul.mubr.msk.bf16.vlgmr.msra.gmra.mxu0 %vm383_vm1, %v12763_v11  ;;  %9302 = vmatmul.mubr.msk.bf16.vlgmr.msra.gmra.mxu1 %vm383_vm1, %v12763_v11  ;;  %v11168_v11 = vld [vmem:[#allocation6 + $0x300] ss:$24 sps:$4 sm:$0xff]  }
  0xc8   :  { %5437 = vmatpush1.bf16.msra.mxu0 %v11123_v45  ;;  %5478 = vmatpush1.bf16.msra.mxu1 %v11126_v46  ;;  %v11224_v45 = vld [vmem:[#allocation6 + $0xa54] ss:$24 sps:$4 sm:$0xff]   ;;  %v239_v46 = vlaneseq }
  0xc9   :  { %5438 = vmatprep.subr.bf16.mxu0 %v11131_v47  ;;  %5479 = vmatprep.subr.bf16.mxu1 %v11134_v48  ;;  %v12805_v48 = vld [vmem:[#allocation4] sm:$0xff] }
  0xca   :  { %v12803_v47 = vshrl.u32 %v239_v46, 7 }
  0xcc   :  { %5439 = vmatpush1.bf16.msra.mxu0 %v11129_v49  ;;  %5480 = vmatpush1.bf16.msra.mxu1 %v11132_v50  ;;  %v12808_v49 = vsub.s32 0, %v12803_v47  ;;  %v12811_v50 = vsub.s32 2, %v12803_v47 }
  0xcd   :  { %5440 = vmatprep.subr.bf16.mxu0 %v11137_v51  ;;  %5481 = vmatprep.subr.bf16.mxu1 %v11140_v52  ;;  %v12814_v51 = vsub.s32 1, %v12803_v47  ;;  %v12817_v52 = vsub.s32 3, %v12803_v47 }
  0xd0   :  { %5441 = vmatpush1.bf16.msra.mxu0 %v11135_v53  ;;  %5482 = vmatpush1.bf16.msra.mxu1 %v11138_v54  ;;  %v242_v53 = vrot.slane %v12805_v48, %v12808_v49  ;;  %v250_v54 = vrot.slane %v12805_v48, %v12811_v50 }
  0xd1   :  { %5442 = vmatprep.subr.bf16.mxu0 %v11143_v55  ;;  %5483 = vmatprep.subr.bf16.mxu1 %v11146_v56  ;;  %v246_v55 = vrot.slane %v12805_v48, %v12814_v51 }
  0xd4   :  { %5443 = vmatpush1.bf16.msra.mxu0 %v11141_v57  ;;  %5484 = vmatpush1.bf16.msra.mxu1 %v11144_v58  ;;  %v254_v57 = vrot.slane %v12805_v48, %v12817_v52 }
  0xd5   :  { %5444 = vmatprep.subr.bf16.mxu0 %v11149_v59  ;;  %5485 = vmatprep.subr.bf16.mxu1 %v11152_v61 }
  0xd8   :  { %5445 = vmatpush1.bf16.msra.mxu0 %v11147_v60  ;;  %5486 = vmatpush1.bf16.msra.mxu1 %v11150_v62 }
  0xd9   :  { %5446 = vmatprep.subr.bf16.mxu0 %v11155_v63  ;;  %5487 = vmatprep.subr.bf16.mxu1 %v11158_v1  ;;  %v12828_v1 = vsub.s32 5, %v12803_v47 }
  0xdc   :  { %5447 = vmatpush1.bf16.msra.mxu0 %v11153_v2  ;;  %5488 = vmatpush1.bf16.msra.mxu1 %v11156_v3 }
  0xdd   :  { %5448 = vmatprep.subr.bf16.mxu0 %v11161_v4  ;;  %5489 = vmatprep.subr.bf16.mxu1 %v11164_v5 }
  0xe0   :  { %5449 = vmatpush1.bf16.msra.mxu0 %v11159_v6  ;;  %5490 = vmatpush1.bf16.msra.mxu1 %v11162_v7  ;;  %v269_v6 = vsub.s32 7, %v12803_v47 }
  0xe1   :  { %5450 = vmatprep.subr.bf16.mxu0 %v11167_v8  ;;  %5491 = vmatprep.subr.bf16.mxu1 %v11170_v9  ;;  %v11219_v9 = vld [vmem:[#allocation6 + $0x750] ss:$24 sps:$4 sm:$0xff]  }
  0xe4   :  { %5451 = vmatpush1.bf16.msra.mxu0 %v11165_v10  ;;  %5492 = vmatpush1.bf16.msra.mxu1 %v11168_v11 }
  0xe5   :  { %5452 = vmatprep.subr.bf16.mxu0 %v11173_v12  ;;  %5493 = vmatprep.subr.bf16.mxu1 %v11176_v13  ;;  %v11222_v12 = vld [vmem:[#allocation6 + $0xa50] ss:$24 sps:$4 sm:$0xff]   ;;  %v11227_v13 = vld [vmem:[#allocation6 + $0x724] ss:$24 sps:$4 sm:$0xff]  }
  0xe8   :  { %5453 = vmatpush2.bf16.msra.mxu0 %v11171_v14  ;;  %5494 = vmatpush2.bf16.msra.mxu1 %v11174_v15 }
  0xe9   :  { %5454 = vmatprep.subr.bf16.mxu0 %v11179_v16  ;;  %5495 = vmatprep.subr.bf16.mxu1 %v11182_v17  ;;  %v262_v17 = vrot.slane %v12805_v48, %v12828_v1 }
  0xec   :  { %5455 = vmatpush2.bf16.msra.mxu0 %v11177_v18  ;;  %5496 = vmatpush2.bf16.msra.mxu1 %v11180_v19 }
  0xed   :  { %5456 = vmatprep.subr.bf16.mxu0 %v11185_v20  ;;  %5497 = vmatprep.subr.bf16.mxu1 %v11188_v21  ;;  %v270_v21 = vrot.slane %v12805_v48, %v269_v6 }
  0xf0   :  { %5457 = vmatpush2.bf16.msra.mxu0 %v11183_v22  ;;  %5498 = vmatpush2.bf16.msra.mxu1 %v11186_v23  ;;  %v11230_v22 = vld [vmem:[#allocation6 + $0xa24] ss:$24 sps:$4 sm:$0xff]  }
  0xf1   :  { %5458 = vmatprep.subr.bf16.mxu0 %v11191_v24  ;;  %5499 = vmatprep.subr.bf16.mxu1 %v11194_v25  ;;  %v11225_v24 = vld [vmem:[#allocation6 + $0x720] ss:$24 sps:$4 sm:$0xff]  }
  0xf4   :  { %5459 = vmatpush2.bf16.msra.mxu0 %v11189_v26  ;;  %5500 = vmatpush2.bf16.msra.mxu1 %v11192_v27 }
  0xf5   :  { %5460 = vmatprep.subr.bf16.mxu0 %v11197_v28  ;;  %5501 = vmatprep.subr.bf16.mxu1 %v11200_v29  ;;  %v11228_v28 = vld [vmem:[#allocation6 + $0xa20] ss:$24 sps:$4 sm:$0xff]   ;;  %v11233_v29 = vld [vmem:[#allocation6 + $0x6f4] ss:$24 sps:$4 sm:$0xff]  }
  0xf8   :  { %5461 = vmatpush2.bf16.msra.mxu0 %v11195_v30  ;;  %5502 = vmatpush2.bf16.msra.mxu1 %v11198_v31 }
  0xf9   :  { %5462 = vmatprep.subr.bf16.mxu0 %v11203_v32  ;;  %5503 = vmatprep.subr.bf16.mxu1 %v11206_v33  ;;  %v11231_v32 = vld [vmem:[#allocation6 + $0x6f0] ss:$24 sps:$4 sm:$0xff]   ;;  %v11236_v33 = vld [vmem:[#allocation6 + $0x9f4] ss:$24 sps:$4 sm:$0xff]  }
  0xfc   :  { %5463 = vmatpush2.bf16.msra.mxu0 %v11201_v34  ;;  %5504 = vmatpush2.bf16.msra.mxu1 %v11204_v35 }
  0xfd   :  { %5464 = vmatprep.subr.bf16.mxu0 %v11209_v36  ;;  %5505 = vmatprep.subr.bf16.mxu1 %v11212_v37 }
 0x100   :  { %5465 = vmatpush2.bf16.msra.mxu0 %v11207_v38  ;;  %5506 = vmatpush2.bf16.msra.mxu1 %v11210_v39 }
 0x101   :  { %5466 = vmatprep.subr.bf16.mxu0 %v11215_v40  ;;  %5507 = vmatprep.subr.bf16.mxu1 %v11218_v41  ;;  %v11234_v40 = vld [vmem:[#allocation6 + $0x9f0] ss:$24 sps:$4 sm:$0xff]   ;;  %v11239_v41 = vld [vmem:[#allocation6 + $0x6c4] ss:$24 sps:$4 sm:$0xff]  }
 0x104   :  { %5467 = vmatpush2.bf16.msra.mxu0 %v11213_v42  ;;  %5508 = vmatpush2.bf16.msra.mxu1 %v11216_v43 }
 0x105   :  { %5518 = vmatprep.subr.bf16.mxu0 %v11221_v44  ;;  %5559 = vmatprep.subr.bf16.mxu1 %v11224_v45  ;;  %v11237_v44 = vld [vmem:[#allocation6 + $0x6c0] ss:$24 sps:$4 sm:$0xff]   ;;  %v11242_v45 = vld [vmem:[#allocation6 + $0x9c4] ss:$24 sps:$4 sm:$0xff]  }
 0x16f   :  { %v470_v56 = vpop.f32.mrf.mxu0  ;;  %v511_v59 = vpop.f32.mrf.mxu1 }
 0x170   :  { %v471_v58 = vadd.f32 %v470_v56, %v242_v53  ;;  %v512_v60 = vadd.f32 %v511_v59, %v250_v54  ;;  %v11240_v53 = vld [vmem:[#allocation6 + $0x9c0] ss:$24 sps:$4 sm:$0xff]  }
 0x171   :  { %v472_v61 = vpop.f32.mrf.mxu0  ;;  %v513_v63 = vpop.f32.mrf.mxu1  ;;  %v12870_v59 = vld [vmem:[#allocation4 + $0x8] sm:$0xff] }
 0x172   :  { %v473_v62 = vadd.f32 %v472_v61, %v246_v55  ;;  %v764_v2 = vmax.f32 %v471_v58, 0.0  ;;  %v766_v3 = vmax.f32 %v512_v60, 0.0  ;;  %v514_v4 = vadd.f32 %v513_v63, %v254_v57  ;;  %v11245_v57 = vld [vmem:[#allocation6 + $0x694] ss:$24 sps:$4 sm:$0xff]   ;;  %v11243_v61 = vld [vmem:[#allocation6 + $0x690] ss:$24 sps:$4 sm:$0xff]  }
 0x173   :  { %v474_v5 = vpop.f32.mrf.mxu0  ;;  %v515_v8 = vpop.f32.mrf.mxu1  ;;  %v12865_v55 = vsub.s32 4, %v12803_v47  ;;  %v265_v58 = vsub.s32 6, %v12803_v47 }
 0x174   :  { %v765_v7 = vmax.f32 %v473_v62, 0.0  ;;  %v767_v10 = vmax.f32 %v514_v4, 0.0  ;;  %v12831_v14 = vpack.c.bf16 %v766_v3, %v766_v3  ;;  %v12837_v18 = vpack.c.bf16 %v764_v2, %v764_v2  ;;  %v11248_v62 = vld [vmem:[#allocation6 + $0x994] ss:$24 sps:$4 sm:$0xff]   ;;  %v11246_v8 = vld [vmem:[#allocation6 + $0x990] ss:$24 sps:$4 sm:$0xff]  }
 0x175   :  { %v475_v11 = vpop.f32.mrf.mxu0  ;;  %v516_v16 = vpop.f32.mrf.mxu1  ;;  %v290_v2 = vrot.slane %v12870_v59, %v12865_v55  ;;  %v298_v4 = vrot.slane %v12870_v59, %v265_v58 }
 0x176   :  { %v12833_v15 = vpack.c.bf16 %v765_v7, %v765_v7  ;;  %v12839_v19 = vpack.c.bf16 %v767_v10, %v767_v10  ;;  %v294_v7 = vrot.slane %v12870_v59, %v12828_v1  ;;  %v302_v11 = vrot.slane %v12870_v59, %v269_v6  ;;  %v11255_v6 = vld [vmem:[#allocation6 + $0x630] ss:$24 sps:$4 sm:$0xff]  }
 0x177   :  { %v12841_v20 = vpop.f32.mrf.mxu0  ;;  %v12847_v23 = vpop.f32.mrf.mxu1 }
 0x178   :  { %5468 = vmatprep.mubr.bf16.mxu0 %v12833_v15  ;;  %5509 = vmatprep.mubr.bf16.mxu1 %v12839_v19 }
 0x179   :  { %5469 = vmatmul.mubr.bf16.vlgmr.msra.gmra.mxu0 %v12837_v18  ;;  %v554_v25 = vpop.f32.mrf.mxu0  ;;  %5510 = vmatmul.mubr.bf16.vlgmr.msra.gmra.mxu1 %v12831_v14  ;;  %v595_v27 = vpop.f32.mrf.mxu1 }
 0x17a   :  { %5519 = vmatpush1.bf16.msra.mxu0 %v11219_v9  ;;  %v555_v26 = vadd.f32 %v554_v25, %v262_v17  ;;  %5560 = vmatpush1.bf16.msra.mxu1 %v11222_v12  ;;  %v596_v31 = vadd.f32 %v595_v27, %v270_v21  ;;  %v11251_v9 = vld [vmem:[#allocation6 + $0x664] ss:$24 sps:$4 sm:$0xff]   ;;  %v11249_v12 = vld [vmem:[#allocation6 + $0x660] ss:$24 sps:$4 sm:$0xff]   ;;  %v11257_v27 = vld [vmem:[#allocation6 + $0x634] ss:$24 sps:$4 sm:$0xff]  }
 0x17b   :  { %5520 = vmatprep.subr.bf16.mxu0 %v11227_v13  ;;  %v556_v30 = vpop.f32.mrf.mxu0  ;;  %5561 = vmatprep.subr.bf16.mxu1 %v11230_v22  ;;  %v597_v35 = vpop.f32.mrf.mxu1  ;;  %v11254_v13 = vld [vmem:[#allocation6 + $0x964] ss:$24 sps:$4 sm:$0xff]  }
 0x17c   :  { %v769_v34 = vmax.f32 %v555_v26, 0.0  ;;  %v771_v36 = vmax.f32 %v596_v31, 0.0  ;;  %v11252_v26 = vld [vmem:[#allocation6 + $0x960] ss:$24 sps:$4 sm:$0xff]   ;;  %v11260_v30 = vld [vmem:[#allocation6 + $0x934] ss:$24 sps:$4 sm:$0xff]  }
 0x17d   :  { %v557_v37 = vpop.f32.mrf.mxu0  ;;  %v598_v39 = vpop.f32.mrf.mxu1  ;;  %v11263_v35 = vld [vmem:[#allocation6 + $0x604] ss:$24 sps:$4 sm:$0xff]  }
 0x17e   :  { %5521 = vmatpush1.bf16.msra.mxu0 %v11225_v24  ;;  %v12852_v38 = vpack.c.bf16 %v769_v34, %v769_v34  ;;  %5562 = vmatpush1.bf16.msra.mxu1 %v11228_v28  ;;  %v12854_v42 = vpack.c.bf16 %v771_v36, %v771_v36  ;;  %v11258_v34 = vld [vmem:[#allocation6 + $0x930] ss:$24 sps:$4 sm:$0xff]   ;;  %v11261_v36 = vld [vmem:[#allocation6 + $0x600] ss:$24 sps:$4 sm:$0xff]   ;;  %v11266_v37 = vld [vmem:[#allocation6 + $0x904] ss:$24 sps:$4 sm:$0xff]  }
 0x17f   :  { %5522 = vmatprep.subr.bf16.mxu0 %v11233_v29  ;;  %v12856_v43 = vpop.f32.mrf.mxu0  ;;  %5563 = vmatprep.subr.bf16.mxu1 %v11236_v33  ;;  %v12859_v46 = vpop.f32.mrf.mxu1  ;;  %v11264_v39 = vld [vmem:[#allocation6 + $0x900] ss:$24 sps:$4 sm:$0xff]  }
 0x180   :  { %5550 = vmatprep.mubr.bf16.mxu0 %v12852_v38  ;;  %5591 = vmatprep.mubr.bf16.mxu1 %v12854_v42 }
 0x181   :  { %v12862_v54 = vpop.f32.mrf.mxu0  ;;  %v12867_v56 = vpop.f32.mrf.mxu1 }
 0x182   :  { %5523 = vmatpush1.bf16.msra.mxu0 %v11231_v32  ;;  %5564 = vmatpush1.bf16.msra.mxu1 %v11234_v40  ;;  %v11269_v40 = vld [vmem:[#allocation6 + $0x8d4] ss:$24 sps:$4 sm:$0xff]  }
 0x183   :  { %5524 = vmatprep.subr.bf16.mxu0 %v11239_v41  ;;  %v638_v60 = vpop.f32.mrf.mxu0  ;;  %5565 = vmatprep.subr.bf16.mxu1 %v11242_v45  ;;  %v679_v63 = vpop.f32.mrf.mxu1  ;;  %v11267_v41 = vld [vmem:[#allocation6 + $0x8d0] ss:$24 sps:$4 sm:$0xff]  }
 0x184   :  { %v11270_v45 = vld [vmem:[#allocation6 + $0xbd0] ss:$24 sps:$4 sm:$0xff]   ;;  %v11278_v60 = vld [vmem:[#allocation6 + $0xba4] ss:$24 sps:$4 sm:$0xff]  }
 0x185   :  { %v639_v3 = vpop.f32.mrf.mxu0  ;;  %v680_v5 = vpop.f32.mrf.mxu1  ;;  %v11279_v63 = vld [vmem:[#allocation6 + $0x870] ss:$24 sps:$4 sm:$0xff]  }
 0x186   :  { %5525 = vmatpush1.bf16.msra.mxu0 %v11237_v44  ;;  %5566 = vmatpush1.bf16.msra.mxu1 %v11240_v53  ;;  %v11272_v44 = vld [vmem:[#allocation6 + $0xbd4] ss:$24 sps:$4 sm:$0xff]   ;;  %v11275_v53 = vld [vmem:[#allocation6 + $0x8a4] ss:$24 sps:$4 sm:$0xff]   ;;  %v11282_v3 = vld [vmem:[#allocation6 + $0xb70] ss:$24 sps:$4 sm:$0xff]  }
 0x187   :  { %5526 = vmatprep.subr.bf16.mxu0 %v11245_v57  ;;  %v716_v10 = vpop.f32.mrf.mxu0  ;;  %5567 = vmatprep.subr.bf16.mxu1 %v11248_v62  ;;  %v757_v17 = vpop.f32.mrf.mxu1  ;;  %v11273_v57 = vld [vmem:[#allocation6 + $0x8a0] ss:$24 sps:$4 sm:$0xff]   ;;  %v11281_v62 = vld [vmem:[#allocation6 + $0x874] ss:$24 sps:$4 sm:$0xff]  }
 0x188   :  { %v12882_v16 = vadd.f32 %v716_v10, %v290_v2  ;;  %v12884_v22 = vadd.f32 %v757_v17, %v298_v4  ;;  %v11284_v2 = vld [vmem:[#allocation6 + $0xb74] ss:$24 sps:$4 sm:$0xff]   ;;  %v11287_v4 = vld [vmem:[#allocation6 + $0x844] ss:$24 sps:$4 sm:$0xff]   ;;  %v11285_v5 = vld [vmem:[#allocation6 + $0x840] ss:$24 sps:$4 sm:$0xff]  }
 0x189   :  { %v718_v21 = vpop.f32.mrf.mxu0  ;;  %v759_v25 = vpop.f32.mrf.mxu1  ;;  %v11291_v10 = vld [vmem:[#allocation6 + $0x810] ss:$24 sps:$4 sm:$0xff]   ;;  %v11297_v17 = vld [vmem:[#allocation6 + $0x7e0] ss:$24 sps:$4 sm:$0xff]  }
 0x18a   :  { %5527 = vmatpush1.bf16.msra.mxu0 %v11243_v61  ;;  %v12886_v24 = vadd.f32 %v718_v21, %v294_v7  ;;  %5568 = vmatpush1.bf16.msra.mxu1 %v11246_v8  ;;  %v12888_v29 = vadd.f32 %v759_v25, %v302_v11  ;;  %v11276_v61 = vld [vmem:[#allocation6 + $0xba0] ss:$24 sps:$4 sm:$0xff]   ;;  %v11290_v7 = vld [vmem:[#allocation6 + $0xb44] ss:$24 sps:$4 sm:$0xff]   ;;  %v11296_v11 = vld [vmem:[#allocation6 + $0xb14] ss:$24 sps:$4 sm:$0xff]   ;;  %v266_v25 = vrot.slane %v12805_v48, %v265_v58 }
 0x18b   :  { %5528 = vmatprep.subr.bf16.mxu0 %v11251_v9  ;;  %v720_v28 = vpop.f32.mrf.mxu0  ;;  %5569 = vmatprep.subr.bf16.mxu1 %v11254_v13  ;;  %v761_v31 = vpop.f32.mrf.mxu1  ;;  %v11288_v8 = vld [vmem:[#allocation6 + $0xb40] ss:$24 sps:$4 sm:$0xff]   ;;  %v11293_v9 = vld [vmem:[#allocation6 + $0x814] ss:$24 sps:$4 sm:$0xff]   ;;  %v11299_v13 = vld [vmem:[#allocation6 + $0x7e4] ss:$24 sps:$4 sm:$0xff]  }
 0x18c   :  { %v11302_v21 = vld [vmem:[#allocation6 + $0xae4] ss:$24 sps:$4 sm:$0xff]   ;;  %v11305_v28 = vld [vmem:[#allocation6 + $0x7b4] ss:$24 sps:$4 sm:$0xff]   ;;  %v278_v31 = vrot.slane %v12870_v59, %v12814_v51  ;;  %v594_v47 = vadd.f32 %v12847_v23, %v266_v25  ;;  %v11342_v25 = vld [vmem:[#allocation6 + $0xf90] ss:$24 sps:$4 sm:$0xff]  }
 0x18d   :  { %v721_v32 = vpop.f32.mrf.mxu0  ;;  %v762_v33 = vpop.f32.mrf.mxu1  ;;  %v11317_v23 = vld [vmem:[#allocation6 + $0xd54] ss:$24 sps:$4 sm:$0xff]  }
 0x18e   :  { %5529 = vmatpush1.bf16.msra.mxu0 %v11249_v12  ;;  %5570 = vmatpush1.bf16.msra.mxu1 %v11252_v26  ;;  %v11294_v12 = vld [vmem:[#allocation6 + $0xb10] ss:$24 sps:$4 sm:$0xff]   ;;  %v258_v26 = vrot.slane %v12805_v48, %v12865_v55  ;;  %v286_v32 = vrot.slane %v12870_v59, %v12817_v52  ;;  %v11311_v33 = vld [vmem:[#allocation6 + $0x784] ss:$24 sps:$4 sm:$0xff]  }
 0x18f   :  { %5530 = vmatprep.subr.bf16.mxu0 %v11257_v27  ;;  %5571 = vmatprep.subr.bf16.mxu1 %v11260_v30  ;;  %v11300_v27 = vld [vmem:[#allocation6 + $0xae0] ss:$24 sps:$4 sm:$0xff]   ;;  %v11308_v30 = vld [vmem:[#allocation6 + $0xab4] ss:$24 sps:$4 sm:$0xff]   ;;  %v11306_v48 = vld [vmem:[#allocation6 + $0xab0] ss:$24 sps:$4 sm:$0xff]  }
 0x190   :  { %v553_v58 = vadd.f32 %v12841_v20, %v258_v26  ;;  %v11315_v20 = vld [vmem:[#allocation6 + $0xd50] ss:$24 sps:$4 sm:$0xff]   ;;  %v11347_v26 = vld [vmem:[#allocation6 + $0xc64] ss:$24 sps:$4 sm:$0xff]  }
 0x192   :  { %5531 = vmatpush1.bf16.msra.mxu0 %v11255_v6  ;;  %5572 = vmatpush1.bf16.msra.mxu1 %v11258_v34  ;;  %v11303_v6 = vld [vmem:[#allocation6 + $0x7b0] ss:$24 sps:$4 sm:$0xff]   ;;  %v11309_v34 = vld [vmem:[#allocation6 + $0x780] ss:$24 sps:$4 sm:$0xff]  }
 0x193   :  { %5532 = vmatprep.subr.bf16.mxu0 %v11263_v35  ;;  %5573 = vmatprep.subr.bf16.mxu1 %v11266_v37  ;;  %v11314_v35 = vld [vmem:[#allocation6 + $0xa84] ss:$24 sps:$4 sm:$0xff]   ;;  %v11312_v37 = vld [vmem:[#allocation6 + $0xa80] ss:$24 sps:$4 sm:$0xff]  }
 0x196   :  { %5533 = vmatpush1.bf16.msra.mxu0 %v11261_v36  ;;  %5574 = vmatpush1.bf16.msra.mxu1 %v11264_v39  ;;  %v637_v36 = vadd.f32 %v12862_v54, %v278_v31  ;;  %v678_v39 = vadd.f32 %v12867_v56, %v286_v32  ;;  %v11326_v56 = vld [vmem:[#allocation6 + $0x1024] ss:$24 sps:$4 sm:$0xff]   ;;  %v11351_v31 = vld [vmem:[#allocation6 + $0xc30] ss:$24 sps:$4 sm:$0xff]   ;;  %v11356_v32 = vld [vmem:[#allocation6 + $0xf34] ss:$24 sps:$4 sm:$0xff]  }
 0x197   :  { %5534 = vmatprep.subr.bf16.mxu0 %v11269_v40  ;;  %5575 = vmatprep.subr.bf16.mxu1 %v11272_v44  ;;  %v770_v40 = vmax.f32 %v594_v47, 0.0  ;;  %v11320_v44 = vld [vmem:[#allocation6 + $0x1054] ss:$24 sps:$4 sm:$0xff]   ;;  %v11354_v47 = vld [vmem:[#allocation6 + $0xf30] ss:$24 sps:$4 sm:$0xff]  }
 0x19a   :  { %5535 = vmatpush2.bf16.msra.mxu0 %v11267_v41  ;;  %5576 = vmatpush2.bf16.msra.mxu1 %v11270_v45  ;;  %v768_v41 = vmax.f32 %v553_v58, 0.0  ;;  %v773_v45 = vmax.f32 %v637_v36, 0.0  ;;  %v11359_v58 = vld [vmem:[#allocation6 + $0xc04] ss:$24 sps:$4 sm:$0xff]   ;;  %v11363_v36 = vld [vmem:[#allocation6 + $0xed0] ss:$24 sps:$4 sm:$0xff]  }
 0x19b   :  { %5536 = vmatprep.subr.bf16.mxu0 %v11275_v53  ;;  %5577 = vmatprep.subr.bf16.mxu1 %v11278_v60  ;;  %v11318_v53 = vld [vmem:[#allocation6 + $0x1050] ss:$24 sps:$4 sm:$0xff]   ;;  %v775_v60 = vmax.f32 %v678_v39, 0.0 }
 0x19c   :  { %v12905_v54 = vpack.c.bf16 %v768_v41, %v768_v41  ;;  %v11366_v39 = vld [vmem:[#allocation6 + $0x11d0] ss:$24 sps:$4 sm:$0xff]   ;;  %v11369_v41 = vld [vmem:[#allocation6 + $0xea0] ss:$24 sps:$4 sm:$0xff]  }
 0x19e   :  { %5537 = vmatpush2.bf16.msra.mxu0 %v11273_v57  ;;  %5578 = vmatpush2.bf16.msra.mxu1 %v11276_v61  ;;  %v11323_v57 = vld [vmem:[#allocation6 + $0xd24] ss:$24 sps:$4 sm:$0xff]   ;;  %v12903_v61 = vpack.c.bf16 %v770_v40, %v770_v40 }
 0x19f   :  { %5538 = vmatprep.subr.bf16.mxu0 %v11281_v62  ;;  %5579 = vmatprep.subr.bf16.mxu1 %v11284_v2  ;;  %v12907_v62 = vpack.c.bf16 %v773_v45, %v773_v45  ;;  %v11324_v2 = vld [vmem:[#allocation6 + $0x1020] ss:$24 sps:$4 sm:$0xff]   ;;  %v11371_v40 = vld [vmem:[#allocation6 + $0xea4] ss:$24 sps:$4 sm:$0xff]   ;;  %v11375_v45 = vld [vmem:[#allocation6 + $0xe70] ss:$24 sps:$4 sm:$0xff]  }
 0x1a2   :  { %5539 = vmatpush2.bf16.msra.mxu0 %v11279_v63  ;;  %5580 = vmatpush2.bf16.msra.mxu1 %v11282_v3  ;;  %v11321_v63 = vld [vmem:[#allocation6 + $0xd20] ss:$24 sps:$4 sm:$0xff]   ;;  %v11329_v3 = vld [vmem:[#allocation6 + $0xcf4] ss:$24 sps:$4 sm:$0xff]  }
 0x1a3   :  { %5540 = vmatprep.subr.bf16.mxu0 %v11287_v4  ;;  %5581 = vmatprep.subr.bf16.mxu1 %v11290_v7  ;;  %v12910_v4 = vpack.c.bf16 %v775_v60, %v775_v60  ;;  %v11327_v7 = vld [vmem:[#allocation6 + $0xcf0] ss:$24 sps:$4 sm:$0xff]   ;;  %v11383_v60 = vld [vmem:[#allocation6 + $0xe44] ss:$24 sps:$4 sm:$0xff]  }
 0x1a6   :  { %5541 = vmatpush2.bf16.msra.mxu0 %v11285_v5  ;;  %5582 = vmatpush2.bf16.msra.mxu1 %v11288_v8  ;;  %v11332_v5 = vld [vmem:[#allocation6 + $0xff4] ss:$24 sps:$4 sm:$0xff]   ;;  %v11330_v8 = vld [vmem:[#allocation6 + $0xff0] ss:$24 sps:$4 sm:$0xff]  }
 0x1a7   :  { %5542 = vmatprep.subr.bf16.mxu0 %v11293_v9  ;;  %5583 = vmatprep.subr.bf16.mxu1 %v11296_v11  ;;  %v11335_v9 = vld [vmem:[#allocation6 + $0xcc4] ss:$24 sps:$4 sm:$0xff]   ;;  %v11333_v11 = vld [vmem:[#allocation6 + $0xcc0] ss:$24 sps:$4 sm:$0xff]  }
 0x1aa   :  { %5543 = vmatpush2.bf16.msra.mxu0 %v11291_v10  ;;  %5584 = vmatpush2.bf16.msra.mxu1 %v11294_v12  ;;  %v11338_v10 = vld [vmem:[#allocation6 + $0xfc4] ss:$24 sps:$4 sm:$0xff]   ;;  %v11336_v12 = vld [vmem:[#allocation6 + $0xfc0] ss:$24 sps:$4 sm:$0xff]  }
 0x1ab   :  { %5544 = vmatprep.subr.bf16.mxu0 %v11299_v13  ;;  %5585 = vmatprep.subr.bf16.mxu1 %v11302_v21  ;;  %v11341_v13 = vld [vmem:[#allocation6 + $0xc94] ss:$24 sps:$4 sm:$0xff]  }
 0x1ac   :  { %v11344_v21 = vld [vmem:[#allocation6 + $0xf94] ss:$24 sps:$4 sm:$0xff]  }
 0x1ae   :  { %5545 = vmatpush2.bf16.msra.mxu0 %v11297_v17  ;;  %5586 = vmatpush2.bf16.msra.mxu1 %v11300_v27  ;;  %v11339_v17 = vld [vmem:[#allocation6 + $0xc90] ss:$24 sps:$4 sm:$0xff]   ;;  %v11345_v27 = vld [vmem:[#allocation6 + $0xc60] ss:$24 sps:$4 sm:$0xff]  }
 0x1af   :  { %5546 = vmatprep.subr.bf16.mxu0 %v11305_v28  ;;  %5587 = vmatprep.subr.bf16.mxu1 %v11308_v30  ;;  %v11350_v28 = vld [vmem:[#allocation6 + $0xf64] ss:$24 sps:$4 sm:$0xff]   ;;  %v11353_v30 = vld [vmem:[#allocation6 + $0xc34] ss:$24 sps:$4 sm:$0xff]  }
 0x1b2   :  { %5547 = vmatpush2.bf16.msra.mxu0 %v11303_v6  ;;  %5588 = vmatpush2.bf16.msra.mxu1 %v11306_v48  ;;  %v11348_v6 = vld [vmem:[#allocation6 + $0xf60] ss:$24 sps:$4 sm:$0xff]  }
 0x1b3   :  { %5548 = vmatprep.subr.bf16.mxu0 %v11311_v33  ;;  %5589 = vmatprep.subr.bf16.mxu1 %v11314_v35  ;;  %v11357_v48 = vld [vmem:[#allocation6 + $0xc00] ss:$24 sps:$4 sm:$0xff]   ;;  %v11362_v33 = vld [vmem:[#allocation6 + $0xf04] ss:$24 sps:$4 sm:$0xff]   ;;  %v11365_v35 = vld [vmem:[#allocation6 + $0xed4] ss:$24 sps:$4 sm:$0xff]  }
 0x1b6   :  { %5549 = vmatpush2.bf16.msra.mxu0 %v11309_v34  ;;  %5590 = vmatpush2.bf16.msra.mxu1 %v11312_v37  ;;  %v11360_v34 = vld [vmem:[#allocation6 + $0xf00] ss:$24 sps:$4 sm:$0xff]   ;;  %v11368_v37 = vld [vmem:[#allocation6 + $0x11d4] ss:$24 sps:$4 sm:$0xff]  }
 0x1b7   :  { %5600 = vmatprep.subr.bf16.mxu0 %v11317_v23  ;;  %5641 = vmatprep.subr.bf16.mxu1 %v11320_v44  ;;  %v11374_v23 = vld [vmem:[#allocation6 + $0x11a4] ss:$24 sps:$4 sm:$0xff]   ;;  %v11372_v44 = vld [vmem:[#allocation6 + $0x11a0] ss:$24 sps:$4 sm:$0xff]  }
 0x1b9   :  { %5551 = vmatmul.mubr.bf16.vlgmr.msra.gmra.mxu0 %v12905_v54  ;;  %5592 = vmatmul.mubr.bf16.vlgmr.msra.gmra.mxu1 %v12903_v61 }
 0x1ba   :  { %5601 = vmatpush1.bf16.msra.mxu0 %v11315_v20  ;;  %5642 = vmatpush1.bf16.msra.mxu1 %v11318_v53  ;;  %v11377_v20 = vld [vmem:[#allocation6 + $0xe74] ss:$24 sps:$4 sm:$0xff]  }
 0x1bb   :  { %5602 = vmatprep.subr.bf16.mxu0 %v11323_v57  ;;  %5643 = vmatprep.subr.bf16.mxu1 %v11326_v56  ;;  %v11380_v53 = vld [vmem:[#allocation6 + $0x1174] ss:$24 sps:$4 sm:$0xff]   ;;  %v11378_v57 = vld [vmem:[#allocation6 + $0x1170] ss:$24 sps:$4 sm:$0xff]   ;;  %v11381_v56 = vld [vmem:[#allocation6 + $0xe40] ss:$24 sps:$4 sm:$0xff]  }
 0x1bc   :  { %5632 = vmatprep.mubr.bf16.mxu0 %v12907_v62  ;;  %5673 = vmatprep.mubr.bf16.mxu1 %v12910_v4 }
 0x1be   :  { %5603 = vmatpush1.bf16.msra.mxu0 %v11321_v63  ;;  %5644 = vmatpush1.bf16.msra.mxu1 %v11324_v2  ;;  %v11386_v63 = vld [vmem:[#allocation6 + $0x1144] ss:$24 sps:$4 sm:$0xff]   ;;  %v11384_v2 = vld [vmem:[#allocation6 + $0x1140] ss:$24 sps:$4 sm:$0xff]  }
 0x1bf   :  { %5604 = vmatprep.subr.bf16.mxu0 %v11329_v3  ;;  %5645 = vmatprep.subr.bf16.mxu1 %v11332_v5  ;;  %v11389_v3 = vld [vmem:[#allocation6 + $0xe14] ss:$24 sps:$4 sm:$0xff]   ;;  %v11387_v5 = vld [vmem:[#allocation6 + $0xe10] ss:$24 sps:$4 sm:$0xff]  }
 0x1c2   :  { %5605 = vmatpush1.bf16.msra.mxu0 %v11327_v7  ;;  %5646 = vmatpush1.bf16.msra.mxu1 %v11330_v8  ;;  %v11392_v7 = vld [vmem:[#allocation6 + $0x1114] ss:$24 sps:$4 sm:$0xff]   ;;  %v11390_v8 = vld [vmem:[#allocation6 + $0x1110] ss:$24 sps:$4 sm:$0xff]  }
 0x1c3   :  { %5606 = vmatprep.subr.bf16.mxu0 %v11335_v9  ;;  %5647 = vmatprep.subr.bf16.mxu1 %v11338_v10  ;;  %v11395_v9 = vld [vmem:[#allocation6 + $0xde4] ss:$24 sps:$4 sm:$0xff]   ;;  %v11393_v10 = vld [vmem:[#allocation6 + $0xde0] ss:$24 sps:$4 sm:$0xff]  }
 0x1c6   :  { %5607 = vmatpush1.bf16.msra.mxu0 %v11333_v11  ;;  %5648 = vmatpush1.bf16.msra.mxu1 %v11336_v12  ;;  %v11398_v11 = vld [vmem:[#allocation6 + $0x10e4] ss:$24 sps:$4 sm:$0xff]   ;;  %v282_v12 = vrot.slane %v12870_v59, %v12811_v50 }
 0x1c7   :  { %5608 = vmatprep.subr.bf16.mxu0 %v11341_v13  ;;  %5649 = vmatprep.subr.bf16.mxu1 %v11344_v21  ;;  %v274_v13 = vrot.slane %v12870_v59, %v12808_v49  ;;  %v11401_v21 = vld [vmem:[#allocation6 + $0xdb4] ss:$24 sps:$4 sm:$0xff]   ;;  %v11408_v59 = vld [vmem:[#allocation6 + $0x1080] ss:$24 sps:$4 sm:$0xff]  }
 0x1ca   :  { %5609 = vmatpush1.bf16.msra.mxu0 %v11339_v17  ;;  %5650 = vmatpush1.bf16.msra.mxu1 %v11342_v25  ;;  %v11396_v17 = vld [vmem:[#allocation6 + $0x10e0] ss:$24 sps:$4 sm:$0xff]   ;;  %v11399_v25 = vld [vmem:[#allocation6 + $0xdb0] ss:$24 sps:$4 sm:$0xff]  }
 0x1cb   :  { %5610 = vmatprep.subr.bf16.mxu0 %v11347_v26  ;;  %5651 = vmatprep.subr.bf16.mxu1 %v11350_v28  ;;  %v11404_v26 = vld [vmem:[#allocation6 + $0x10b4] ss:$24 sps:$4 sm:$0xff]   ;;  %v635_v28 = vadd.f32 %v12856_v43, %v274_v13  ;;  %v779_v43 = vmax.f32 %v12888_v29, 0.0  ;;  %v11447_v13 = vld [vmem:[#allocation6 + $0x1230] ss:$24 sps:$4 sm:$0xff]  }
 0x1cc   :  { %v11425_v29 = vld [vmem:[#allocation6 + $0x12f4] ss:$24 sps:$4 sm:$0xff]  }
 0x1ce   :  { %5611 = vmatpush1.bf16.msra.mxu0 %v11345_v27  ;;  %5652 = vmatpush1.bf16.msra.mxu1 %v11348_v6  ;;  %v676_v27 = vadd.f32 %v12859_v46, %v282_v12  ;;  %v11402_v6 = vld [vmem:[#allocation6 + $0x10b0] ss:$24 sps:$4 sm:$0xff]   ;;  %v777_v46 = vmax.f32 %v12886_v24, 0.0  ;;  %v11417_v24 = vld [vmem:[#allocation6 + $0x1320] ss:$24 sps:$4 sm:$0xff]  }
 0x1cf   :  { %5612 = vmatprep.subr.bf16.mxu0 %v11353_v30  ;;  %5653 = vmatprep.subr.bf16.mxu1 %v11356_v32  ;;  %v11407_v30 = vld [vmem:[#allocation6 + $0xd84] ss:$24 sps:$4 sm:$0xff]   ;;  %v11449_v12 = vld [vmem:[#allocation6 + $0x1234] ss:$24 sps:$4 sm:$0xff]  }
 0x1d0   :  { %v11410_v32 = vld [vmem:[#allocation6 + $0x1084] ss:$24 sps:$4 sm:$0xff]  }
 0x1d2   :  { %5613 = vmatpush1.bf16.msra.mxu0 %v11351_v31  ;;  %5654 = vmatpush1.bf16.msra.mxu1 %v11354_v47  ;;  %v11405_v31 = vld [vmem:[#allocation6 + $0xd80] ss:$24 sps:$4 sm:$0xff]   ;;  %v774_v47 = vmax.f32 %v676_v27, 0.0  ;;  %v11458_v27 = vld [vmem:[#allocation6 + $0x1504] ss:$24 sps:$4 sm:$0xff]  }
 0x1d3   :  { %5614 = vmatprep.subr.bf16.mxu0 %v11359_v58  ;;  %5655 = vmatprep.subr.bf16.mxu1 %v11362_v33  ;;  %v772_v58 = vmax.f32 %v635_v28, 0.0  ;;  %v11416_v33 = vld [vmem:[#allocation6 + $0x1654] ss:$24 sps:$4 sm:$0xff]   ;;  %v11456_v28 = vld [vmem:[#allocation6 + $0x1500] ss:$24 sps:$4 sm:$0xff]  }
 0x1d6   :  { %5615 = vmatpush1.bf16.msra.mxu0 %v11357_v48  ;;  %5656 = vmatpush1.bf16.msra.mxu1 %v11360_v34  ;;  %v11413_v48 = vld [vmem:[#allocation6 + $0x1354] ss:$24 sps:$4 sm:$0xff]   ;;  %v11411_v34 = vld [vmem:[#allocation6 + $0x1350] ss:$24 sps:$4 sm:$0xff]  }
 0x1d7   :  { %5616 = vmatprep.subr.bf16.mxu0 %v11365_v35  ;;  %5657 = vmatprep.subr.bf16.mxu1 %v11368_v37  ;;  %v11414_v35 = vld [vmem:[#allocation6 + $0x1650] ss:$24 sps:$4 sm:$0xff]   ;;  %v12923_v37 = vpack.c.bf16 %v774_v47, %v774_v47  ;;  %v11465_v47 = vld [vmem:[#allocation6 + $0x14a0] ss:$24 sps:$4 sm:$0xff]  }
 0x1da   :  { %5617 = vmatpush2.bf16.msra.mxu0 %v11363_v36  ;;  %5658 = vmatpush2.bf16.msra.mxu1 %v11366_v39  ;;  %v11419_v36 = vld [vmem:[#allocation6 + $0x1324] ss:$24 sps:$4 sm:$0xff]  }
 0x1db   :  { %5618 = vmatprep.subr.bf16.mxu0 %v11371_v40  ;;  %5659 = vmatprep.subr.bf16.mxu1 %v11374_v23  ;;  %v11422_v39 = vld [vmem:[#allocation6 + $0x1624] ss:$24 sps:$4 sm:$0xff]   ;;  %v12925_v40 = vpack.c.bf16 %v772_v58, %v772_v58  ;;  %v12929_v23 = vpack.c.bf16 %v779_v43, %v779_v43  ;;  %v11474_v43 = vld [vmem:[#allocation6 + $0x1770] ss:$24 sps:$4 sm:$0xff]  }
 0x1dc   :  { %v11470_v58 = vld [vmem:[#allocation6 + $0x17a4] ss:$24 sps:$4 sm:$0xff]  }
 0x1de   :  { %5619 = vmatpush2.bf16.msra.mxu0 %v11369_v41  ;;  %5660 = vmatpush2.bf16.msra.mxu1 %v11372_v44  ;;  %v12927_v41 = vpack.c.bf16 %v777_v46, %v777_v46  ;;  %v11420_v44 = vld [vmem:[#allocation6 + $0x1620] ss:$24 sps:$4 sm:$0xff]   ;;  %v11471_v46 = vld [vmem:[#allocation6 + $0x1470] ss:$24 sps:$4 sm:$0xff]  }
 0x1df   :  { %5620 = vmatprep.subr.bf16.mxu0 %v11377_v20  ;;  %5661 = vmatprep.subr.bf16.mxu1 %v11380_v53  ;;  %v11428_v20 = vld [vmem:[#allocation6 + $0x15f4] ss:$24 sps:$4 sm:$0xff]   ;;  %v11426_v53 = vld [vmem:[#allocation6 + $0x15f0] ss:$24 sps:$4 sm:$0xff]  }
 0x1e2   :  { %5621 = vmatpush2.bf16.msra.mxu0 %v11375_v45  ;;  %5662 = vmatpush2.bf16.msra.mxu1 %v11378_v57  ;;  %v11423_v45 = vld [vmem:[#allocation6 + $0x12f0] ss:$24 sps:$4 sm:$0xff]   ;;  %v11431_v57 = vld [vmem:[#allocation6 + $0x12c4] ss:$24 sps:$4 sm:$0xff]  }
 0x1e3   :  { %5622 = vmatprep.subr.bf16.mxu0 %v11383_v60  ;;  %5663 = vmatprep.subr.bf16.mxu1 %v11386_v63  ;;  %v11434_v60 = vld [vmem:[#allocation6 + $0x15c4] ss:$24 sps:$4 sm:$0xff]   ;;  %v11432_v63 = vld [vmem:[#allocation6 + $0x15c0] ss:$24 sps:$4 sm:$0xff]  }
 0x1e6   :  { %5623 = vmatpush2.bf16.msra.mxu0 %v11381_v56  ;;  %5664 = vmatpush2.bf16.msra.mxu1 %v11384_v2  ;;  %v11429_v56 = vld [vmem:[#allocation6 + $0x12c0] ss:$24 sps:$4 sm:$0xff]   ;;  %v11437_v2 = vld [vmem:[#allocation6 + $0x1294] ss:$24 sps:$4 sm:$0xff]  }
 0x1e7   :  { %5624 = vmatprep.subr.bf16.mxu0 %v11389_v3  ;;  %5665 = vmatprep.subr.bf16.mxu1 %v11392_v7  ;;  %v11435_v3 = vld [vmem:[#allocation6 + $0x1290] ss:$24 sps:$4 sm:$0xff]  }
 0x1e8   :  { %v11438_v7 = vld [vmem:[#allocation6 + $0x1590] ss:$24 sps:$4 sm:$0xff]  }
 0x1ea   :  { %5625 = vmatpush2.bf16.msra.mxu0 %v11387_v5  ;;  %5666 = vmatpush2.bf16.msra.mxu1 %v11390_v8  ;;  %v11440_v5 = vld [vmem:[#allocation6 + $0x1594] ss:$24 sps:$4 sm:$0xff]   ;;  %v11443_v8 = vld [vmem:[#allocation6 + $0x1264] ss:$24 sps:$4 sm:$0xff]  }
 0x1eb   :  { %5626 = vmatprep.subr.bf16.mxu0 %v11395_v9  ;;  %5667 = vmatprep.subr.bf16.mxu1 %v11398_v11  ;;  %v11441_v9 = vld [vmem:[#allocation6 + $0x1260] ss:$24 sps:$4 sm:$0xff]  }
 0x1ec   :  { %v11444_v11 = vld [vmem:[#allocation6 + $0x1560] ss:$24 sps:$4 sm:$0xff]  }
 0x1ee   :  { %5627 = vmatpush2.bf16.msra.mxu0 %v11393_v10  ;;  %5668 = vmatpush2.bf16.msra.mxu1 %v11396_v17  ;;  %v11446_v10 = vld [vmem:[#allocation6 + $0x1564] ss:$24 sps:$4 sm:$0xff]   ;;  %v11452_v17 = vld [vmem:[#allocation6 + $0x1534] ss:$24 sps:$4 sm:$0xff]  }
 0x1ef   :  { %5628 = vmatprep.subr.bf16.mxu0 %v11401_v21  ;;  %5669 = vmatprep.subr.bf16.mxu1 %v11404_v26  ;;  %v11450_v21 = vld [vmem:[#allocation6 + $0x1530] ss:$24 sps:$4 sm:$0xff]   ;;  %v11453_v26 = vld [vmem:[#allocation6 + $0x1200] ss:$24 sps:$4 sm:$0xff]  }
 0x1f2   :  { %5629 = vmatpush2.bf16.msra.mxu0 %v11399_v25  ;;  %5670 = vmatpush2.bf16.msra.mxu1 %v11402_v6  ;;  %v11455_v25 = vld [vmem:[#allocation6 + $0x1204] ss:$24 sps:$4 sm:$0xff]   ;;  %v11461_v6 = vld [vmem:[#allocation6 + $0x14d4] ss:$24 sps:$4 sm:$0xff]  }
 0x1f3   :  { %5630 = vmatprep.subr.bf16.mxu0 %v11407_v30  ;;  %5671 = vmatprep.subr.bf16.mxu1 %v11410_v32  ;;  %v11459_v30 = vld [vmem:[#allocation6 + $0x14d0] ss:$24 sps:$4 sm:$0xff]  }
 0x1f4   :  { %v11462_v32 = vld [vmem:[#allocation6 + $0x17d0] ss:$24 sps:$4 sm:$0xff]  }
 0x1f6   :  { %5631 = vmatpush2.bf16.msra.mxu0 %v11405_v31  ;;  %5672 = vmatpush2.bf16.msra.mxu1 %v11408_v59  ;;  %v11464_v31 = vld [vmem:[#allocation6 + $0x17d4] ss:$24 sps:$4 sm:$0xff]   ;;  %v11467_v59 = vld [vmem:[#allocation6 + $0x14a4] ss:$24 sps:$4 sm:$0xff]  }
 0x1f7   :  { %5682 = vmatprep.subr.bf16.mxu0 %v11413_v48  ;;  %5723 = vmatprep.subr.bf16.mxu1 %v11416_v33  ;;  %v11468_v48 = vld [vmem:[#allocation6 + $0x17a0] ss:$24 sps:$4 sm:$0xff]   ;;  %v11473_v33 = vld [vmem:[#allocation6 + $0x1474] ss:$24 sps:$4 sm:$0xff]  }
 0x1f9   :  { %5633 = vmatmul.mubr.bf16.vlgmr.msra.gmra.mxu0 %v12925_v40  ;;  %5674 = vmatmul.mubr.bf16.vlgmr.msra.gmra.mxu1 %v12923_v37 }
 0x1fa   :  { %5683 = vmatpush1.bf16.msra.mxu0 %v11411_v34  ;;  %5724 = vmatpush1.bf16.msra.mxu1 %v11414_v35  ;;  %v11476_v34 = vld [vmem:[#allocation6 + $0x1774] ss:$24 sps:$4 sm:$0xff]   ;;  %v11479_v35 = vld [vmem:[#allocation6 + $0x1444] ss:$24 sps:$4 sm:$0xff]  }
 0x1fb   :  { %5684 = vmatprep.subr.bf16.mxu0 %v11419_v36  ;;  %5725 = vmatprep.subr.bf16.mxu1 %v11422_v39  ;;  %v11477_v36 = vld [vmem:[#allocation6 + $0x1440] ss:$24 sps:$4 sm:$0xff]   ;;  %v11482_v39 = vld [vmem:[#allocation6 + $0x1744] ss:$24 sps:$4 sm:$0xff]  }
 0x1fc   :  { %5714 = vmatprep.mubr.bf16.mxu0 %v12927_v41  ;;  %5755 = vmatprep.mubr.bf16.mxu1 %v12929_v23 }
 0x1fe   :  { %5685 = vmatpush1.bf16.msra.mxu0 %v11417_v24  ;;  %5726 = vmatpush1.bf16.msra.mxu1 %v11420_v44  ;;  %v11480_v24 = vld [vmem:[#allocation6 + $0x1740] ss:$24 sps:$4 sm:$0xff]   ;;  %v11485_v44 = vld [vmem:[#allocation6 + $0x1414] ss:$24 sps:$4 sm:$0xff]  }
 0x1ff   :  { %5686 = vmatprep.subr.bf16.mxu0 %v11425_v29  ;;  %5727 = vmatprep.subr.bf16.mxu1 %v11428_v20  ;;  %v11483_v29 = vld [vmem:[#allocation6 + $0x1410] ss:$24 sps:$4 sm:$0xff]   ;;  %v11488_v20 = vld [vmem:[#allocation6 + $0x1714] ss:$24 sps:$4 sm:$0xff]  }
 0x202   :  { %5687 = vmatpush1.bf16.msra.mxu0 %v11423_v45  ;;  %5728 = vmatpush1.bf16.msra.mxu1 %v11426_v53  ;;  %v11486_v45 = vld [vmem:[#allocation6 + $0x1710] ss:$24 sps:$4 sm:$0xff]   ;;  %v11491_v53 = vld [vmem:[#allocation6 + $0x13e4] ss:$24 sps:$4 sm:$0xff]  }
 0x203   :  { %5688 = vmatprep.subr.bf16.mxu0 %v11431_v57  ;;  %5729 = vmatprep.subr.bf16.mxu1 %v11434_v60  ;;  %v11489_v57 = vld [vmem:[#allocation6 + $0x13e0] ss:$24 sps:$4 sm:$0xff]   ;;  %v11494_v60 = vld [vmem:[#allocation6 + $0x16e4] ss:$24 sps:$4 sm:$0xff]  }
 0x206   :  { %5689 = vmatpush1.bf16.msra.mxu0 %v11429_v56  ;;  %5730 = vmatpush1.bf16.msra.mxu1 %v11432_v63  ;;  %v11492_v56 = vld [vmem:[#allocation6 + $0x16e0] ss:$24 sps:$4 sm:$0xff]   ;;  %v11497_v63 = vld [vmem:[#allocation6 + $0x13b4] ss:$24 sps:$4 sm:$0xff]  }
 0x207   :  { %5690 = vmatprep.subr.bf16.mxu0 %v11437_v2  ;;  %5731 = vmatprep.subr.bf16.mxu1 %v11440_v5  ;;  %v11495_v2 = vld [vmem:[#allocation6 + $0x13b0] ss:$24 sps:$4 sm:$0xff]   ;;  %v776_v5 = vmax.f32 %v12882_v16, 0.0 }
 0x20a   :  { %5691 = vmatpush1.bf16.msra.mxu0 %v11435_v3  ;;  %5732 = vmatpush1.bf16.msra.mxu1 %v11438_v7  ;;  %v11500_v3 = vld [vmem:[#allocation6 + $0x16b4] ss:$24 sps:$4 sm:$0xff]   ;;  %v778_v7 = vmax.f32 %v12884_v22, 0.0 }
 0x20b   :  { %5692 = vmatprep.subr.bf16.mxu0 %v11443_v8  ;;  %5733 = vmatprep.subr.bf16.mxu1 %v11446_v10  ;;  %v11498_v8 = vld [vmem:[#allocation6 + $0x16b0] ss:$24 sps:$4 sm:$0xff]   ;;  %v11501_v10 = vld [vmem:[#allocation6 + $0x1380] ss:$24 sps:$4 sm:$0xff]   ;;  %v11515_v22 = vld [vmem:[#allocation6 + $0x12c] ss:$24 sps:$4 sm:$0xff]  }
 0x20e   :  { %5693 = vmatpush1.bf16.msra.mxu0 %v11441_v9  ;;  %5734 = vmatpush1.bf16.msra.mxu1 %v11444_v11  ;;  %v11503_v9 = vld [vmem:[#allocation6 + $0x1384] ss:$24 sps:$4 sm:$0xff]  }
 0x20f   :  { %5694 = vmatprep.subr.bf16.mxu0 %v11449_v12  ;;  %5735 = vmatprep.subr.bf16.mxu1 %v11452_v17  ;;  %v11506_v11 = vld [vmem:[#allocation6 + $0x1684] ss:$24 sps:$4 sm:$0xff]   ;;  %v11504_v12 = vld [vmem:[#allocation6 + $0x1680] ss:$24 sps:$4 sm:$0xff]  }
 0x210   :  { %v11512_v17 = vld [vmem:[#allocation6 + $0x45c] ss:$24 sps:$4 sm:$0xff]  }
 0x212   :  { %5695 = vmatpush1.bf16.msra.mxu0 %v11447_v13  ;;  %5736 = vmatpush1.bf16.msra.mxu1 %v11450_v21  ;;  %v11509_v13 = vld [vmem:[#allocation6 + $0x15c] ss:$24 sps:$4 sm:$0xff]   ;;  %v1564_v21 = vld [vmem:[#allocation7] sm:$0x3f] }
 0x213   :  { %5696 = vmatprep.subr.bf16.mxu0 %v11455_v25  ;;  %5737 = vmatprep.subr.bf16.mxu1 %v11458_v27  ;;  %v11507_v25 = vld [vmem:[#allocation6 + $0x158] ss:$24 sps:$4 sm:$0xff]   ;;  %v1569_v16 = vrot.slane %v1564_v21, %v12808_v49  ;;  %v12938_v27 = vpack.c.bf16 %v776_v5, %v776_v5  ;;  %v11537_v5 = vld [vmem:[#allocation6 + $0x68] ss:$24 sps:$4 sm:$0xff]  }
 0x216   :  { %5697 = vmatpush1.bf16.msra.mxu0 %v11453_v26  ;;  %5738 = vmatpush1.bf16.msra.mxu1 %v11456_v28  ;;  %v11510_v26 = vld [vmem:[#allocation6 + $0x458] ss:$24 sps:$4 sm:$0xff]   ;;  %v11518_v28 = vld [vmem:[#allocation6 + $0x42c] ss:$24 sps:$4 sm:$0xff]  }
 0x217   :  { %5698 = vmatprep.subr.bf16.mxu0 %v11461_v6  ;;  %5739 = vmatprep.subr.bf16.mxu1 %v11464_v31  ;;  %v12940_v6 = vpack.c.bf16 %v778_v7, %v778_v7  ;;  %v11542_v7 = vld [vmem:[#allocation6 + $0x36c] ss:$24 sps:$4 sm:$0xff]  }
 0x21a   :  { %5699 = vmatpush2.bf16.msra.mxu0 %v11459_v30  ;;  %5740 = vmatpush2.bf16.msra.mxu1 %v11462_v32  ;;  %v1573_v30 = vrot.slane %v1564_v21, %v12814_v51  ;;  %v11513_v32 = vld [vmem:[#allocation6 + $0x128] ss:$24 sps:$4 sm:$0xff]   ;;  %v11554_v21 = vld [vmem:[#allocation6 + $0x30c] ss:$24 sps:$4 sm:$0xff]  }
 0x21b   :  { %5700 = vmatprep.subr.bf16.mxu0 %v11467_v59  ;;  %5741 = vmatprep.subr.bf16.mxu1 %v11470_v58  ;;  %v11516_v59 = vld [vmem:[#allocation6 + $0x428] ss:$24 sps:$4 sm:$0xff]   ;;  %v11521_v58 = vld [vmem:[#allocation6 + $0xfc] ss:$24 sps:$4 sm:$0xff]  }
 0x21e   :  { %5701 = vmatpush2.bf16.msra.mxu0 %v11465_v47  ;;  %5742 = vmatpush2.bf16.msra.mxu1 %v11468_v48  ;;  %v11524_v48 = vld [vmem:[#allocation6 + $0x3fc] ss:$24 sps:$4 sm:$0xff]  }
 0x21f   :  { %5702 = vmatprep.subr.bf16.mxu0 %v11473_v33  ;;  %5743 = vmatprep.subr.bf16.mxu1 %v11476_v34 }
 0x222   :  { %5703 = vmatpush2.bf16.msra.mxu0 %v11471_v46  ;;  %5744 = vmatpush2.bf16.msra.mxu1 %v11474_v43 }
 0x223   :  { %5704 = vmatprep.subr.bf16.mxu0 %v11479_v35  ;;  %5745 = vmatprep.subr.bf16.mxu1 %v11482_v39  ;;  %v11519_v35 = vld [vmem:[#allocation6 + $0xf8] ss:$24 sps:$4 sm:$0xff]  }
 0x226   :  { %5705 = vmatpush2.bf16.msra.mxu0 %v11477_v36  ;;  %5746 = vmatpush2.bf16.msra.mxu1 %v11480_v24  ;;  %v11522_v24 = vld [vmem:[#allocation6 + $0x3f8] ss:$24 sps:$4 sm:$0xff]  }
 0x227   :  { %5706 = vmatprep.subr.bf16.mxu0 %v11485_v44  ;;  %5747 = vmatprep.subr.bf16.mxu1 %v11488_v20  ;;  %v11527_v44 = vld [vmem:[#allocation6 + $0xcc] ss:$24 sps:$4 sm:$0xff]  }
 0x22a   :  { %5707 = vmatpush2.bf16.msra.mxu0 %v11483_v29  ;;  %5748 = vmatpush2.bf16.msra.mxu1 %v11486_v45  ;;  %v11530_v45 = vld [vmem:[#allocation6 + $0x3cc] ss:$24 sps:$4 sm:$0xff]  }
 0x22b   :  { %5708 = vmatprep.subr.bf16.mxu0 %v11491_v53  ;;  %5749 = vmatprep.subr.bf16.mxu1 %v11494_v60  ;;  %v11525_v53 = vld [vmem:[#allocation6 + $0xc8] ss:$24 sps:$4 sm:$0xff]   ;;  %v11533_v60 = vld [vmem:[#allocation6 + $0x9c] ss:$24 sps:$4 sm:$0xff]  }
 0x22e   :  { %5709 = vmatpush2.bf16.msra.mxu0 %v11489_v57  ;;  %5750 = vmatpush2.bf16.msra.mxu1 %v11492_v56  ;;  %v11528_v57 = vld [vmem:[#allocation6 + $0x3c8] ss:$24 sps:$4 sm:$0xff]   ;;  %v11531_v56 = vld [vmem:[#allocation6 + $0x98] ss:$24 sps:$4 sm:$0xff]  }
 0x22f   :  { %5710 = vmatprep.subr.bf16.mxu0 %v11497_v63  ;;  %5751 = vmatprep.subr.bf16.mxu1 %v11500_v3  ;;  %v11536_v63 = vld [vmem:[#allocation6 + $0x39c] ss:$24 sps:$4 sm:$0xff]   ;;  %v11539_v3 = vld [vmem:[#allocation6 + $0x6c] ss:$24 sps:$4 sm:$0xff]  }
 0x232   :  { %5711 = vmatpush2.bf16.msra.mxu0 %v11495_v2  ;;  %5752 = vmatpush2.bf16.msra.mxu1 %v11498_v8  ;;  %v11534_v2 = vld [vmem:[#allocation6 + $0x398] ss:$24 sps:$4 sm:$0xff]   ;;  %v11540_v8 = vld [vmem:[#allocation6 + $0x368] ss:$24 sps:$4 sm:$0xff]  }
 0x233   :  { %5712 = vmatprep.subr.bf16.mxu0 %v11503_v9  ;;  %5753 = vmatprep.subr.bf16.mxu1 %v11506_v11  ;;  %v11545_v9 = vld [vmem:[#allocation6 + $0x3c] ss:$24 sps:$4 sm:$0xff]  }
 0x234   :  { %v11548_v11 = vld [vmem:[#allocation6 + $0x33c] ss:$24 sps:$4 sm:$0xff]  }
 0x236   :  { %5713 = vmatpush2.bf16.msra.mxu0 %v11501_v10  ;;  %5754 = vmatpush2.bf16.msra.mxu1 %v11504_v12  ;;  %v11543_v10 = vld [vmem:[#allocation6 + $0x38] ss:$24 sps:$4 sm:$0xff]  }
 0x237   :  { %5764 = vmatprep.subr.bf16.mxu0 %v11509_v13  ;;  %5805 = vmatprep.subr.bf16.mxu1 %v11512_v17  ;;  %v11546_v12 = vld [vmem:[#allocation6 + $0x338] ss:$24 sps:$4 sm:$0xff]   ;;  %v11551_v13 = vld [vmem:[#allocation6 + $0xc] ss:$24 sps:$4 sm:$0xff]   ;;  %v11549_v17 = vld [vmem:[#allocation6 + $0x8] ss:$24 sps:$4 sm:$0xff]  }
 0x239   :  { %5715 = vmatmul.mubr.bf16.vlgmr.msra.gmra.mxu0 %v12938_v27  ;;  %v5470_v31 = vpop.f32.mrf.mxu0  ;;  %5756 = vmatmul.mubr.bf16.vlgmr.msra.gmra.mxu1 %v12940_v6  ;;  %v5511_v49 = vpop.f32.mrf.mxu1 }
 0x23a   :  { %v5471_v47 = vadd.f32 %v5470_v31, %v1569_v16  ;;  %5765 = vmatpush1.bf16.msra.mxu0 %v11507_v25  ;;  %5796 = vmatprep.mubr.bf16.mxu0 %v12833_v15  ;;  %v11552_v25 = vld [vmem:[#allocation6 + $0x308] ss:$24 sps:$4 sm:$0xff]   ;;  %v11555_v16 = vld [vmem:[#allocation6 + $0x2d8] ss:$24 sps:$4 sm:$0xff]  }
 0x23b   :  { %5806 = vmatpush1.bf16.msra.mxu1 %v11510_v26  ;;  %v5472_v33 = vpop.f32.mrf.mxu0  ;;  %5837 = vmatprep.mubr.bf16.mxu1 %v12839_v19  ;;  %v5513_v34 = vpop.f32.mrf.mxu1  ;;  %v11557_v26 = vld [vmem:[#allocation6 + $0x2dc] ss:$24 sps:$4 sm:$0xff]   ;;  %v11561_v31 = vld [vmem:[#allocation6 + $0x2a8] ss:$24 sps:$4 sm:$0xff]  }
 0x23c   :  { %v12946_v46 = vadd.f32 %v5511_v49, %v5471_v47  ;;  %v5473_v51 = vadd.f32 %v5472_v33, %v1573_v30  ;;  %5766 = vmatprep.subr.bf16.mxu0 %v11515_v22  ;;  %5807 = vmatprep.subr.bf16.mxu1 %v11518_v28  ;;  %v11560_v22 = vld [vmem:[#allocation6 + $0x5dc] ss:$24 sps:$4 sm:$0xff]   ;;  %v11558_v28 = vld [vmem:[#allocation6 + $0x5d8] ss:$24 sps:$4 sm:$0xff]   ;;  %v11563_v30 = vld [vmem:[#allocation6 + $0x2ac] ss:$24 sps:$4 sm:$0xff]  }
 0x23d   :  { %v5474_v43 = vpop.f32.mrf.mxu0  ;;  %v5515_v39 = vpop.f32.mrf.mxu1  ;;  %v11569_v47 = vld [vmem:[#allocation6 + $0x27c] ss:$24 sps:$4 sm:$0xff]   ;;  %v11575_v33 = vld [vmem:[#allocation6 + $0x24c] ss:$24 sps:$4 sm:$0xff]  }
 0x23e   :  { %v12949_v36 = vadd.f32 %v5513_v34, %v5473_v51  ;;  %5767 = vmatpush1.bf16.msra.mxu0 %v11513_v32  ;;  %v11566_v32 = vld [vmem:[#allocation6 + $0x5ac] ss:$24 sps:$4 sm:$0xff]   ;;  %v11572_v49 = vld [vmem:[#allocation6 + $0x57c] ss:$24 sps:$4 sm:$0xff]   ;;  %v11573_v34 = vld [vmem:[#allocation6 + $0x248] ss:$24 sps:$4 sm:$0xff]  }
 0x23f   :  { %5808 = vmatpush1.bf16.msra.mxu1 %v11516_v59  ;;  %v5475_v29 = vpop.f32.mrf.mxu0  ;;  %5768 = vmatprep.subr.bf16.mxu0 %v11521_v58  ;;  %v5516_v20 = vpop.f32.mrf.mxu1  ;;  %v11564_v59 = vld [vmem:[#allocation6 + $0x5a8] ss:$24 sps:$4 sm:$0xff]   ;;  %v11567_v58 = vld [vmem:[#allocation6 + $0x278] ss:$24 sps:$4 sm:$0xff]   ;;  %v11578_v51 = vld [vmem:[#allocation6 + $0x54c] ss:$24 sps:$4 sm:$0xff]  }
 0x240   :  { %5809 = vmatprep.subr.bf16.mxu1 %v11524_v48  ;;  %v11570_v48 = vld [vmem:[#allocation6 + $0x578] ss:$24 sps:$4 sm:$0xff]   ;;  %v11576_v43 = vld [vmem:[#allocation6 + $0x548] ss:$24 sps:$4 sm:$0xff]   ;;  %v11584_v39 = vld [vmem:[#allocation6 + $0x51c] ss:$24 sps:$4 sm:$0xff]  }
 0x241   :  { %v11587_v29 = vld [vmem:[#allocation6 + $0x1ec] ss:$24 sps:$4 sm:$0xff]  }
 0x242   :  { %5769 = vmatpush1.bf16.msra.mxu0 %v11519_v35  ;;  %v11581_v35 = vld [vmem:[#allocation6 + $0x21c] ss:$24 sps:$4 sm:$0xff]   ;;  %v11590_v20 = vld [vmem:[#allocation6 + $0x4ec] ss:$24 sps:$4 sm:$0xff]  }
 0x243   :  { %5810 = vmatpush1.bf16.msra.mxu1 %v11522_v24  ;;  %5770 = vmatprep.subr.bf16.mxu0 %v11527_v44  ;;  %v11579_v24 = vld [vmem:[#allocation6 + $0x218] ss:$24 sps:$4 sm:$0xff]  }
 0x244   :  { %5811 = vmatprep.subr.bf16.mxu1 %v11530_v45  ;;  %v11582_v44 = vld [vmem:[#allocation6 + $0x518] ss:$24 sps:$4 sm:$0xff]   ;;  %v11585_v45 = vld [vmem:[#allocation6 + $0x1e8] ss:$24 sps:$4 sm:$0xff]  }
 0x246   :  { %5771 = vmatpush1.bf16.msra.mxu0 %v11525_v53  ;;  %v11588_v53 = vld [vmem:[#allocation6 + $0x4e8] ss:$24 sps:$4 sm:$0xff]  }
 0x247   :  { %5812 = vmatpush1.bf16.msra.mxu1 %v11528_v57  ;;  %5772 = vmatprep.subr.bf16.mxu0 %v11533_v60  ;;  %v11593_v57 = vld [vmem:[#allocation6 + $0x1bc] ss:$24 sps:$4 sm:$0xff]  }
 0x248   :  { %5813 = vmatprep.subr.bf16.mxu1 %v11536_v63  ;;  %v11596_v60 = vld [vmem:[#allocation6 + $0x4bc] ss:$24 sps:$4 sm:$0xff]   ;;  %v11594_v63 = vld [vmem:[#allocation6 + $0x4b8] ss:$24 sps:$4 sm:$0xff]  }
 0x24a   :  { %5773 = vmatpush1.bf16.msra.mxu0 %v11531_v56  ;;  %v11591_v56 = vld [vmem:[#allocation6 + $0x1b8] ss:$24 sps:$4 sm:$0xff]  }
 0x24b   :  { %5814 = vmatpush1.bf16.msra.mxu1 %v11534_v2  ;;  %5774 = vmatprep.subr.bf16.mxu0 %v11539_v3  ;;  %v11599_v2 = vld [vmem:[#allocation6 + $0x18c] ss:$24 sps:$4 sm:$0xff]  }
 0x24c   :  { %5815 = vmatprep.subr.bf16.mxu1 %v11542_v7  ;;  %v11602_v3 = vld [vmem:[#allocation6 + $0x48c] ss:$24 sps:$4 sm:$0xff]   ;;  %v11600_v7 = vld [vmem:[#allocation6 + $0x488] ss:$24 sps:$4 sm:$0xff]  }
 0x24e   :  { %5775 = vmatpush1.bf16.msra.mxu0 %v11537_v5  ;;  %v11597_v5 = vld [vmem:[#allocation6 + $0x188] ss:$24 sps:$4 sm:$0xff]  }
 0x24f   :  { %5816 = vmatpush1.bf16.msra.mxu1 %v11540_v8  ;;  %5776 = vmatprep.subr.bf16.mxu0 %v11545_v9  ;;  %v11605_v8 = vld [vmem:[#allocation6 + $0x75c] ss:$24 sps:$4 sm:$0xff]  }
 0x250   :  { %5817 = vmatprep.subr.bf16.mxu1 %v11548_v11  ;;  %v11608_v9 = vld [vmem:[#allocation6 + $0xa5c] ss:$24 sps:$4 sm:$0xff]   ;;  %v11606_v11 = vld [vmem:[#allocation6 + $0xa58] ss:$24 sps:$4 sm:$0xff]  }
 0x252   :  { %5777 = vmatpush1.bf16.msra.mxu0 %v11543_v10  ;;  %v11603_v10 = vld [vmem:[#allocation6 + $0x758] ss:$24 sps:$4 sm:$0xff]  }
 0x253   :  { %5818 = vmatpush1.bf16.msra.mxu1 %v11546_v12  ;;  %5778 = vmatprep.subr.bf16.mxu0 %v11551_v13  ;;  %v11611_v12 = vld [vmem:[#allocation6 + $0x72c] ss:$24 sps:$4 sm:$0xff]  }
 0x254   :  { %5819 = vmatprep.subr.bf16.mxu1 %v11554_v21 }
 0x256   :  { %5779 = vmatpush1.bf16.msra.mxu0 %v11549_v17  ;;  %v11614_v17 = vld [vmem:[#allocation6 + $0xa2c] ss:$24 sps:$4 sm:$0xff]  }
 0x257   :  { %5820 = vmatpush1.bf16.msra.mxu1 %v11552_v25  ;;  %5780 = vmatprep.subr.bf16.mxu0 %v11557_v26  ;;  %v11609_v26 = vld [vmem:[#allocation6 + $0x728] ss:$24 sps:$4 sm:$0xff]  }
 0x258   :  { %5821 = vmatprep.subr.bf16.mxu1 %v11560_v22  ;;  %v11612_v22 = vld [vmem:[#allocation6 + $0xa28] ss:$24 sps:$4 sm:$0xff]  }
 0x25a   :  { %5781 = vmatpush2.bf16.msra.mxu0 %v11555_v16 }
 0x25b   :  { %5822 = vmatpush2.bf16.msra.mxu1 %v11558_v28  ;;  %5782 = vmatprep.subr.bf16.mxu0 %v11563_v30  ;;  %v11617_v28 = vld [vmem:[#allocation6 + $0x6fc] ss:$24 sps:$4 sm:$0xff]  }
 0x25c   :  { %5823 = vmatprep.subr.bf16.mxu1 %v11566_v32 }
 0x25e   :  { %5783 = vmatpush2.bf16.msra.mxu0 %v11561_v31 }
 0x25f   :  { %5824 = vmatpush2.bf16.msra.mxu1 %v11564_v59  ;;  %5784 = vmatprep.subr.bf16.mxu0 %v11569_v47 }
 0x260   :  { %5825 = vmatprep.subr.bf16.mxu1 %v11572_v49 }
 0x262   :  { %5785 = vmatpush2.bf16.msra.mxu0 %v11567_v58  ;;  %v11615_v58 = vld [vmem:[#allocation6 + $0x6f8] ss:$24 sps:$4 sm:$0xff]  }
 0x263   :  { %5826 = vmatpush2.bf16.msra.mxu1 %v11570_v48  ;;  %5786 = vmatprep.subr.bf16.mxu0 %v11575_v33  ;;  %v11618_v33 = vld [vmem:[#allocation6 + $0x9f8] ss:$24 sps:$4 sm:$0xff]  }
 0x264   :  { %5827 = vmatprep.subr.bf16.mxu1 %v11578_v51  ;;  %v11623_v51 = vld [vmem:[#allocation6 + $0x6cc] ss:$24 sps:$4 sm:$0xff]  }
 0x266   :  { %5787 = vmatpush2.bf16.msra.mxu0 %v11573_v34 }
 0x267   :  { %5828 = vmatpush2.bf16.msra.mxu1 %v11576_v43  ;;  %5788 = vmatprep.subr.bf16.mxu0 %v11581_v35  ;;  %v11626_v43 = vld [vmem:[#allocation6 + $0x9cc] ss:$24 sps:$4 sm:$0xff]   ;;  %v11624_v35 = vld [vmem:[#allocation6 + $0x9c8] ss:$24 sps:$4 sm:$0xff]  }
 0x268   :  { %5829 = vmatprep.subr.bf16.mxu1 %v11584_v39  ;;  %v11629_v39 = vld [vmem:[#allocation6 + $0x69c] ss:$24 sps:$4 sm:$0xff]  }
 0x26a   :  { %5789 = vmatpush2.bf16.msra.mxu0 %v11579_v24  ;;  %v11632_v24 = vld [vmem:[#allocation6 + $0x99c] ss:$24 sps:$4 sm:$0xff]  }
 0x26b   :  { %5830 = vmatpush2.bf16.msra.mxu1 %v11582_v44  ;;  %5790 = vmatprep.subr.bf16.mxu0 %v11587_v29  ;;  %v11627_v44 = vld [vmem:[#allocation6 + $0x698] ss:$24 sps:$4 sm:$0xff]  }
 0x26c   :  { %5831 = vmatprep.subr.bf16.mxu1 %v11590_v20  ;;  %v11630_v29 = vld [vmem:[#allocation6 + $0x998] ss:$24 sps:$4 sm:$0xff]   ;;  %v11635_v20 = vld [vmem:[#allocation6 + $0x66c] ss:$24 sps:$4 sm:$0xff]  }
 0x26e   :  { %5791 = vmatpush2.bf16.msra.mxu0 %v11585_v45  ;;  %v11638_v45 = vld [vmem:[#allocation6 + $0x96c] ss:$24 sps:$4 sm:$0xff]  }
 0x26f   :  { %5832 = vmatpush2.bf16.msra.mxu1 %v11588_v53  ;;  %5792 = vmatprep.subr.bf16.mxu0 %v11593_v57  ;;  %v11633_v53 = vld [vmem:[#allocation6 + $0x668] ss:$24 sps:$4 sm:$0xff]  }
 0x270   :  { %5833 = vmatprep.subr.bf16.mxu1 %v11596_v60  ;;  %v11636_v57 = vld [vmem:[#allocation6 + $0x968] ss:$24 sps:$4 sm:$0xff]   ;;  %v11641_v60 = vld [vmem:[#allocation6 + $0x63c] ss:$24 sps:$4 sm:$0xff]  }
 0x272   :  { %5793 = vmatpush2.bf16.msra.mxu0 %v11591_v56  ;;  %v11644_v56 = vld [vmem:[#allocation6 + $0x93c] ss:$24 sps:$4 sm:$0xff]  }
 0x273   :  { %5834 = vmatpush2.bf16.msra.mxu1 %v11594_v63  ;;  %5794 = vmatprep.subr.bf16.mxu0 %v11599_v2  ;;  %v11639_v63 = vld [vmem:[#allocation6 + $0x638] ss:$24 sps:$4 sm:$0xff]  }
 0x274   :  { %5835 = vmatprep.subr.bf16.mxu1 %v11602_v3  ;;  %v11642_v2 = vld [vmem:[#allocation6 + $0x938] ss:$24 sps:$4 sm:$0xff]   ;;  %v11647_v3 = vld [vmem:[#allocation6 + $0x60c] ss:$24 sps:$4 sm:$0xff]  }
 0x276   :  { %5795 = vmatpush2.bf16.msra.mxu0 %v11597_v5  ;;  %v11650_v5 = vld [vmem:[#allocation6 + $0x90c] ss:$24 sps:$4 sm:$0xff]  }
 0x277   :  { %5836 = vmatpush2.bf16.msra.mxu1 %v11600_v7  ;;  %5846 = vmatprep.subr.bf16.mxu0 %v11605_v8  ;;  %v11645_v7 = vld [vmem:[#allocation6 + $0x608] ss:$24 sps:$4 sm:$0xff]  }
 0x278   :  { %5887 = vmatprep.subr.bf16.mxu1 %v11608_v9  ;;  %v11648_v8 = vld [vmem:[#allocation6 + $0x908] ss:$24 sps:$4 sm:$0xff]   ;;  %v11653_v9 = vld [vmem:[#allocation6 + $0x8dc] ss:$24 sps:$4 sm:$0xff]  }
 0x279   :  { %v5552_v13 = vpop.f32.mrf.mxu0  ;;  %5797 = vmatmul.mubr.bf16.vlgmr.msra.gmra.mxu0 %v12837_v18  ;;  %v5593_v25 = vpop.f32.mrf.mxu1 }
 0x27a   :  { %v5553_v21 = vadd.f32 %v5552_v13, %v12946_v46  ;;  %5838 = vmatmul.mubr.bf16.vlgmr.msra.gmra.mxu1 %v12831_v14  ;;  %5847 = vmatpush1.bf16.msra.mxu0 %v11603_v10  ;;  %v11620_v46 = vld [vmem:[#allocation6 + $0x9fc] ss:$24 sps:$4 sm:$0xff]   ;;  %v11659_v13 = vld [vmem:[#allocation6 + $0x8ac] ss:$24 sps:$4 sm:$0xff]  }
 0x27b   :  { %5878 = vmatprep.mubr.bf16.mxu0 %v12852_v38  ;;  %5888 = vmatpush1.bf16.msra.mxu1 %v11606_v11  ;;  %v5554_v16 = vpop.f32.mrf.mxu0  ;;  %v5595_v32 = vpop.f32.mrf.mxu1  ;;  %v11656_v10 = vld [vmem:[#allocation6 + $0xbdc] ss:$24 sps:$4 sm:$0xff]   ;;  %v11651_v11 = vld [vmem:[#allocation6 + $0x8d8] ss:$24 sps:$4 sm:$0xff]  }
 0x27c   :  { %v12955_v30 = vadd.f32 %v5593_v25, %v5553_v21  ;;  %5919 = vmatprep.mubr.bf16.mxu1 %v12854_v42  ;;  %v5555_v31 = vadd.f32 %v5554_v16, %v12949_v36  ;;  %5848 = vmatprep.subr.bf16.mxu0 %v11611_v12  ;;  %v11621_v36 = vld [vmem:[#allocation6 + $0x6c8] ss:$24 sps:$4 sm:$0xff]   ;;  %v11654_v12 = vld [vmem:[#allocation6 + $0xbd8] ss:$24 sps:$4 sm:$0xff]   ;;  %v11668_v16 = vld [vmem:[#allocation6 + $0xb7c] ss:$24 sps:$4 sm:$0xff]  }
 0x27d   :  { %v5556_v59 = vpop.f32.mrf.mxu0  ;;  %5889 = vmatprep.subr.bf16.mxu1 %v11614_v17  ;;  %v5597_v49 = vpop.f32.mrf.mxu1  ;;  %v11662_v17 = vld [vmem:[#allocation6 + $0xbac] ss:$24 sps:$4 sm:$0xff]   ;;  %v11657_v21 = vld [vmem:[#allocation6 + $0x8a8] ss:$24 sps:$4 sm:$0xff]  }
 0x27e   :  { %v12959_v47 = vadd.f32 %v5595_v32, %v5555_v31  ;;  %5849 = vmatpush1.bf16.msra.mxu0 %v11609_v26  ;;  %v11660_v25 = vld [vmem:[#allocation6 + $0xba8] ss:$24 sps:$4 sm:$0xff]   ;;  %v11665_v26 = vld [vmem:[#allocation6 + $0x87c] ss:$24 sps:$4 sm:$0xff]   ;;  %v11671_v31 = vld [vmem:[#allocation6 + $0x84c] ss:$24 sps:$4 sm:$0xff]  }
 0x27f   :  { %5890 = vmatpush1.bf16.msra.mxu1 %v11612_v22  ;;  %v5557_v48 = vpop.f32.mrf.mxu0  ;;  %5850 = vmatprep.subr.bf16.mxu0 %v11617_v28  ;;  %v5598_v34 = vpop.f32.mrf.mxu1  ;;  %v11663_v22 = vld [vmem:[#allocation6 + $0x878] ss:$24 sps:$4 sm:$0xff]   ;;  %v11674_v32 = vld [vmem:[#allocation6 + $0xb4c] ss:$24 sps:$4 sm:$0xff]   ;;  %v11672_v59 = vld [vmem:[#allocation6 + $0xb48] ss:$24 sps:$4 sm:$0xff]  }
 0x280   :  { %5891 = vmatprep.subr.bf16.mxu1 %v11620_v46  ;;  %v11666_v28 = vld [vmem:[#allocation6 + $0xb78] ss:$24 sps:$4 sm:$0xff]   ;;  %v11669_v46 = vld [vmem:[#allocation6 + $0x848] ss:$24 sps:$4 sm:$0xff]   ;;  %v11677_v49 = vld [vmem:[#allocation6 + $0x81c] ss:$24 sps:$4 sm:$0xff]  }
 0x281   :  { %v11675_v48 = vld [vmem:[#allocation6 + $0x818] ss:$24 sps:$4 sm:$0xff]   ;;  %v11686_v34 = vld [vmem:[#allocation6 + $0xaec] ss:$24 sps:$4 sm:$0xff]  }
 0x282   :  { %5851 = vmatpush1.bf16.msra.mxu0 %v11615_v58  ;;  %v11680_v58 = vld [vmem:[#allocation6 + $0xb1c] ss:$24 sps:$4 sm:$0xff]  }
 0x283   :  { %5892 = vmatpush1.bf16.msra.mxu1 %v11618_v33  ;;  %5852 = vmatprep.subr.bf16.mxu0 %v11623_v51  ;;  %v11678_v33 = vld [vmem:[#allocation6 + $0xb18] ss:$24 sps:$4 sm:$0xff]   ;;  %v11683_v51 = vld [vmem:[#allocation6 + $0x7ec] ss:$24 sps:$4 sm:$0xff]  }
 0x284   :  { %5893 = vmatprep.subr.bf16.mxu1 %v11626_v43  ;;  %v11681_v43 = vld [vmem:[#allocation6 + $0x7e8] ss:$24 sps:$4 sm:$0xff]  }
 0x286   :  { %5853 = vmatpush1.bf16.msra.mxu0 %v11621_v36  ;;  %v11684_v36 = vld [vmem:[#allocation6 + $0xae8] ss:$24 sps:$4 sm:$0xff]  }
 0x287   :  { %5894 = vmatpush1.bf16.msra.mxu1 %v11624_v35  ;;  %5854 = vmatprep.subr.bf16.mxu0 %v11629_v39  ;;  %v11689_v35 = vld [vmem:[#allocation6 + $0x7bc] ss:$24 sps:$4 sm:$0xff]  }
 0x288   :  { %5895 = vmatprep.subr.bf16.mxu1 %v11632_v24  ;;  %v11692_v39 = vld [vmem:[#allocation6 + $0xabc] ss:$24 sps:$4 sm:$0xff]   ;;  %v11687_v24 = vld [vmem:[#allocation6 + $0x7b8] ss:$24 sps:$4 sm:$0xff]  }
 0x28a   :  { %5855 = vmatpush1.bf16.msra.mxu0 %v11627_v44  ;;  %v11690_v44 = vld [vmem:[#allocation6 + $0xab8] ss:$24 sps:$4 sm:$0xff]  }
 0x28b   :  { %5896 = vmatpush1.bf16.msra.mxu1 %v11630_v29  ;;  %5856 = vmatprep.subr.bf16.mxu0 %v11635_v20  ;;  %v11695_v29 = vld [vmem:[#allocation6 + $0x78c] ss:$24 sps:$4 sm:$0xff]  }
 0x28c   :  { %5897 = vmatprep.subr.bf16.mxu1 %v11638_v45  ;;  %v11698_v20 = vld [vmem:[#allocation6 + $0xa8c] ss:$24 sps:$4 sm:$0xff]   ;;  %v11693_v45 = vld [vmem:[#allocation6 + $0x788] ss:$24 sps:$4 sm:$0xff]  }
 0x28e   :  { %5857 = vmatpush1.bf16.msra.mxu0 %v11633_v53  ;;  %v11696_v53 = vld [vmem:[#allocation6 + $0xa88] ss:$24 sps:$4 sm:$0xff]  }
 0x28f   :  { %5898 = vmatpush1.bf16.msra.mxu1 %v11636_v57  ;;  %5858 = vmatprep.subr.bf16.mxu0 %v11641_v60  ;;  %v11701_v57 = vld [vmem:[#allocation6 + $0xd5c] ss:$24 sps:$4 sm:$0xff]  }
 0x290   :  { %5899 = vmatprep.subr.bf16.mxu1 %v11644_v56  ;;  %v11704_v60 = vld [vmem:[#allocation6 + $0x105c] ss:$24 sps:$4 sm:$0xff]   ;;  %v11699_v56 = vld [vmem:[#allocation6 + $0xd58] ss:$24 sps:$4 sm:$0xff]  }
 0x292   :  { %5859 = vmatpush1.bf16.msra.mxu0 %v11639_v63  ;;  %v11702_v63 = vld [vmem:[#allocation6 + $0x1058] ss:$24 sps:$4 sm:$0xff]  }
 0x293   :  { %5900 = vmatpush1.bf16.msra.mxu1 %v11642_v2  ;;  %5860 = vmatprep.subr.bf16.mxu0 %v11647_v3  ;;  %v11707_v2 = vld [vmem:[#allocation6 + $0xd2c] ss:$24 sps:$4 sm:$0xff]  }
 0x294   :  { %5901 = vmatprep.subr.bf16.mxu1 %v11650_v5  ;;  %v11710_v5 = vld [vmem:[#allocation6 + $0x102c] ss:$24 sps:$4 sm:$0xff]  }
 0x296   :  { %5861 = vmatpush1.bf16.msra.mxu0 %v11645_v7 }
 0x297   :  { %5902 = vmatpush1.bf16.msra.mxu1 %v11648_v8  ;;  %5862 = vmatprep.subr.bf16.mxu0 %v11653_v9  ;;  %v11705_v8 = vld [vmem:[#allocation6 + $0xd28] ss:$24 sps:$4 sm:$0xff]  }
 0x298   :  { %5903 = vmatprep.subr.bf16.mxu1 %v11656_v10  ;;  %v11708_v10 = vld [vmem:[#allocation6 + $0x1028] ss:$24 sps:$4 sm:$0xff]  }
 0x29a   :  { %5863 = vmatpush2.bf16.msra.mxu0 %v11651_v11  ;;  %v11713_v11 = vld [vmem:[#allocation6 + $0xcfc] ss:$24 sps:$4 sm:$0xff]  }
 0x29b   :  { %5904 = vmatpush2.bf16.msra.mxu1 %v11654_v12  ;;  %5864 = vmatprep.subr.bf16.mxu0 %v11659_v13  ;;  %v11716_v13 = vld [vmem:[#allocation6 + $0xffc] ss:$24 sps:$4 sm:$0xff]  }
 0x29c   :  { %5905 = vmatprep.subr.bf16.mxu1 %v11662_v17 }
 0x29e   :  { %5865 = vmatpush2.bf16.msra.mxu0 %v11657_v21 }
 0x29f   :  { %5906 = vmatpush2.bf16.msra.mxu1 %v11660_v25  ;;  %5866 = vmatprep.subr.bf16.mxu0 %v11665_v26  ;;  %v11711_v25 = vld [vmem:[#allocation6 + $0xcf8] ss:$24 sps:$4 sm:$0xff]  }
 0x2a0   :  { %5907 = vmatprep.subr.bf16.mxu1 %v11668_v16  ;;  %v11714_v16 = vld [vmem:[#allocation6 + $0xff8] ss:$24 sps:$4 sm:$0xff]  }
 0x2a2   :  { %5867 = vmatpush2.bf16.msra.mxu0 %v11663_v22  ;;  %v11719_v22 = vld [vmem:[#allocation6 + $0xccc] ss:$24 sps:$4 sm:$0xff]  }
 0x2a3   :  { %5908 = vmatpush2.bf16.msra.mxu1 %v11666_v28  ;;  %5868 = vmatprep.subr.bf16.mxu0 %v11671_v31  ;;  %v11722_v31 = vld [vmem:[#allocation6 + $0xfcc] ss:$24 sps:$4 sm:$0xff]  }
 0x2a4   :  { %5909 = vmatprep.subr.bf16.mxu1 %v11674_v32  ;;  %v11717_v32 = vld [vmem:[#allocation6 + $0xcc8] ss:$24 sps:$4 sm:$0xff]  }
 0x2a6   :  { %5869 = vmatpush2.bf16.msra.mxu0 %v11669_v46  ;;  %v11720_v46 = vld [vmem:[#allocation6 + $0xfc8] ss:$24 sps:$4 sm:$0xff]  }
 0x2a7   :  { %5910 = vmatpush2.bf16.msra.mxu1 %v11672_v59  ;;  %5870 = vmatprep.subr.bf16.mxu0 %v11677_v49  ;;  %v11725_v59 = vld [vmem:[#allocation6 + $0xc9c] ss:$24 sps:$4 sm:$0xff]  }
 0x2a8   :  { %5911 = vmatprep.subr.bf16.mxu1 %v11680_v58  ;;  %v11728_v49 = vld [vmem:[#allocation6 + $0xf9c] ss:$24 sps:$4 sm:$0xff]   ;;  %v11723_v58 = vld [vmem:[#allocation6 + $0xc98] ss:$24 sps:$4 sm:$0xff]  }
 0x2aa   :  { %5871 = vmatpush2.bf16.msra.mxu0 %v11675_v48  ;;  %v11726_v48 = vld [vmem:[#allocation6 + $0xf98] ss:$24 sps:$4 sm:$0xff]  }
 0x2ab   :  { %5912 = vmatpush2.bf16.msra.mxu1 %v11678_v33  ;;  %5872 = vmatprep.subr.bf16.mxu0 %v11683_v51  ;;  %v11731_v33 = vld [vmem:[#allocation6 + $0xc6c] ss:$24 sps:$4 sm:$0xff]  }
 0x2ac   :  { %5913 = vmatprep.subr.bf16.mxu1 %v11686_v34  ;;  %v11734_v51 = vld [vmem:[#allocation6 + $0xf6c] ss:$24 sps:$4 sm:$0xff]   ;;  %v11729_v34 = vld [vmem:[#allocation6 + $0xc68] ss:$24 sps:$4 sm:$0xff]  }
 0x2ae   :  { %5873 = vmatpush2.bf16.msra.mxu0 %v11681_v43  ;;  %v11732_v43 = vld [vmem:[#allocation6 + $0xf68] ss:$24 sps:$4 sm:$0xff]  }
 0x2af   :  { %5914 = vmatpush2.bf16.msra.mxu1 %v11684_v36  ;;  %5874 = vmatprep.subr.bf16.mxu0 %v11689_v35  ;;  %v11737_v36 = vld [vmem:[#allocation6 + $0xc3c] ss:$24 sps:$4 sm:$0xff]  }
 0x2b0   :  { %5915 = vmatprep.subr.bf16.mxu1 %v11692_v39  ;;  %v11740_v35 = vld [vmem:[#allocation6 + $0xf3c] ss:$24 sps:$4 sm:$0xff]   ;;  %v11735_v39 = vld [vmem:[#allocation6 + $0xc38] ss:$24 sps:$4 sm:$0xff]  }
 0x2b2   :  { %5875 = vmatpush2.bf16.msra.mxu0 %v11687_v24  ;;  %v11738_v24 = vld [vmem:[#allocation6 + $0xf38] ss:$24 sps:$4 sm:$0xff]  }
 0x2b3   :  { %5916 = vmatpush2.bf16.msra.mxu1 %v11690_v44  ;;  %5876 = vmatprep.subr.bf16.mxu0 %v11695_v29  ;;  %v11743_v44 = vld [vmem:[#allocation6 + $0xc0c] ss:$24 sps:$4 sm:$0xff]  }
 0x2b4   :  { %5917 = vmatprep.subr.bf16.mxu1 %v11698_v20  ;;  %v11746_v29 = vld [vmem:[#allocation6 + $0xf0c] ss:$24 sps:$4 sm:$0xff]   ;;  %v11741_v20 = vld [vmem:[#allocation6 + $0xc08] ss:$24 sps:$4 sm:$0xff]  }
 0x2b6   :  { %5877 = vmatpush2.bf16.msra.mxu0 %v11693_v45  ;;  %v11744_v45 = vld [vmem:[#allocation6 + $0xf08] ss:$24 sps:$4 sm:$0xff]  }
 0x2b7   :  { %5918 = vmatpush2.bf16.msra.mxu1 %v11696_v53  ;;  %5928 = vmatprep.subr.bf16.mxu0 %v11701_v57  ;;  %v11749_v53 = vld [vmem:[#allocation6 + $0xedc] ss:$24 sps:$4 sm:$0xff]  }
 0x2b8   :  { %5969 = vmatprep.subr.bf16.mxu1 %v11704_v60  ;;  %v11752_v57 = vld [vmem:[#allocation6 + $0x11dc] ss:$24 sps:$4 sm:$0xff]   ;;  %v11747_v60 = vld [vmem:[#allocation6 + $0xed8] ss:$24 sps:$4 sm:$0xff]  }
 0x2b9   :  { %v12961_v3 = vpop.f32.mrf.mxu0  ;;  %5879 = vmatmul.mubr.bf16.vlgmr.msra.gmra.mxu0 %v12905_v54  ;;  %v12964_v7 = vpop.f32.mrf.mxu1 }
 0x2ba   :  { %5920 = vmatmul.mubr.bf16.vlgmr.msra.gmra.mxu1 %v12903_v61  ;;  %5929 = vmatpush1.bf16.msra.mxu0 %v11699_v56  ;;  %v11750_v56 = vld [vmem:[#allocation6 + $0x11d8] ss:$24 sps:$4 sm:$0xff]  }
 0x2bb   :  { %5960 = vmatprep.mubr.bf16.mxu0 %v12907_v62  ;;  %5970 = vmatpush1.bf16.msra.mxu1 %v11702_v63  ;;  %v12968_v9 = vpop.f32.mrf.mxu0  ;;  %v12971_v12 = vpop.f32.mrf.mxu1  ;;  %v11755_v63 = vld [vmem:[#allocation6 + $0xeac] ss:$24 sps:$4 sm:$0xff]  }
 0x2bc   :  { %6001 = vmatprep.mubr.bf16.mxu1 %v12910_v4  ;;  %5930 = vmatprep.subr.bf16.mxu0 %v11707_v2  ;;  %v11758_v2 = vld [vmem:[#allocation6 + $0x11ac] ss:$24 sps:$4 sm:$0xff]  }
 0x2bd   :  { %v5638_v17 = vpop.f32.mrf.mxu0  ;;  %5971 = vmatprep.subr.bf16.mxu1 %v11710_v5  ;;  %v5679_v21 = vpop.f32.mrf.mxu1  ;;  %v11753_v5 = vld [vmem:[#allocation6 + $0xea8] ss:$24 sps:$4 sm:$0xff]  }
 0x2be   :  { %5931 = vmatpush1.bf16.msra.mxu0 %v11705_v8  ;;  %v11756_v8 = vld [vmem:[#allocation6 + $0x11a8] ss:$24 sps:$4 sm:$0xff]   ;;  %v11762_v17 = vld [vmem:[#allocation6 + $0x1178] ss:$24 sps:$4 sm:$0xff]   ;;  %v11767_v21 = vld [vmem:[#allocation6 + $0xe4c] ss:$24 sps:$4 sm:$0xff]  }
 0x2bf   :  { %5972 = vmatpush1.bf16.msra.mxu1 %v11708_v10  ;;  %v5639_v26 = vpop.f32.mrf.mxu0  ;;  %5932 = vmatprep.subr.bf16.mxu0 %v11713_v11  ;;  %v5680_v28 = vpop.f32.mrf.mxu1  ;;  %v11761_v10 = vld [vmem:[#allocation6 + $0xe7c] ss:$24 sps:$4 sm:$0xff]  }
 0x2c0   :  { %5973 = vmatprep.subr.bf16.mxu1 %v11716_v13  ;;  %v11764_v11 = vld [vmem:[#allocation6 + $0x117c] ss:$24 sps:$4 sm:$0xff]   ;;  %v11759_v13 = vld [vmem:[#allocation6 + $0xe78] ss:$24 sps:$4 sm:$0xff]   ;;  %v11765_v26 = vld [vmem:[#allocation6 + $0xe48] ss:$24 sps:$4 sm:$0xff]  }
 0x2c1   :  { %v11776_v28 = vld [vmem:[#allocation6 + $0x111c] ss:$24 sps:$4 sm:$0xff]  }
 0x2c2   :  { %5933 = vmatpush1.bf16.msra.mxu0 %v11711_v25  ;;  %v11770_v25 = vld [vmem:[#allocation6 + $0x114c] ss:$24 sps:$4 sm:$0xff]  }
 0x2c3   :  { %5974 = vmatpush1.bf16.msra.mxu1 %v11714_v16  ;;  %5934 = vmatprep.subr.bf16.mxu0 %v11719_v22  ;;  %v11768_v16 = vld [vmem:[#allocation6 + $0x1148] ss:$24 sps:$4 sm:$0xff]   ;;  %v11773_v22 = vld [vmem:[#allocation6 + $0xe1c] ss:$24 sps:$4 sm:$0xff]  }
 0x2c4   :  { %5975 = vmatprep.subr.bf16.mxu1 %v11722_v31  ;;  %v11771_v31 = vld [vmem:[#allocation6 + $0xe18] ss:$24 sps:$4 sm:$0xff]  }
 0x2c6   :  { %5935 = vmatpush1.bf16.msra.mxu0 %v11717_v32  ;;  %v11774_v32 = vld [vmem:[#allocation6 + $0x1118] ss:$24 sps:$4 sm:$0xff]  }
 0x2c7   :  { %5976 = vmatpush1.bf16.msra.mxu1 %v11720_v46  ;;  %5936 = vmatprep.subr.bf16.mxu0 %v11725_v59  ;;  %v11779_v46 = vld [vmem:[#allocation6 + $0xdec] ss:$24 sps:$4 sm:$0xff]  }
 0x2c8   :  { %5977 = vmatprep.subr.bf16.mxu1 %v11728_v49  ;;  %v11782_v59 = vld [vmem:[#allocation6 + $0x10ec] ss:$24 sps:$4 sm:$0xff]   ;;  %v11777_v49 = vld [vmem:[#allocation6 + $0xde8] ss:$24 sps:$4 sm:$0xff]  }
 0x2ca   :  { %5937 = vmatpush1.bf16.msra.mxu0 %v11723_v58  ;;  %v11780_v58 = vld [vmem:[#allocation6 + $0x10e8] ss:$24 sps:$4 sm:$0xff]  }
 0x2cb   :  { %5978 = vmatpush1.bf16.msra.mxu1 %v11726_v48  ;;  %5938 = vmatprep.subr.bf16.mxu0 %v11731_v33  ;;  %v11785_v48 = vld [vmem:[#allocation6 + $0xdbc] ss:$24 sps:$4 sm:$0xff]  }
 0x2cc   :  { %5979 = vmatprep.subr.bf16.mxu1 %v11734_v51  ;;  %v11788_v33 = vld [vmem:[#allocation6 + $0x10bc] ss:$24 sps:$4 sm:$0xff]   ;;  %v11783_v51 = vld [vmem:[#allocation6 + $0xdb8] ss:$24 sps:$4 sm:$0xff]  }
 0x2ce   :  { %5939 = vmatpush1.bf16.msra.mxu0 %v11729_v34  ;;  %v11786_v34 = vld [vmem:[#allocation6 + $0x10b8] ss:$24 sps:$4 sm:$0xff]  }
 0x2cf   :  { %5980 = vmatpush1.bf16.msra.mxu1 %v11732_v43  ;;  %5940 = vmatprep.subr.bf16.mxu0 %v11737_v36  ;;  %v11791_v43 = vld [vmem:[#allocation6 + $0xd8c] ss:$24 sps:$4 sm:$0xff]  }
 0x2d0   :  { %5981 = vmatprep.subr.bf16.mxu1 %v11740_v35  ;;  %v11794_v36 = vld [vmem:[#allocation6 + $0x108c] ss:$24 sps:$4 sm:$0xff]   ;;  %v11789_v35 = vld [vmem:[#allocation6 + $0xd88] ss:$24 sps:$4 sm:$0xff]  }
 0x2d2   :  { %5941 = vmatpush1.bf16.msra.mxu0 %v11735_v39  ;;  %v11792_v39 = vld [vmem:[#allocation6 + $0x1088] ss:$24 sps:$4 sm:$0xff]  }
 0x2d3   :  { %5982 = vmatpush1.bf16.msra.mxu1 %v11738_v24  ;;  %5942 = vmatprep.subr.bf16.mxu0 %v11743_v44  ;;  %v11797_v24 = vld [vmem:[#allocation6 + $0x135c] ss:$24 sps:$4 sm:$0xff]   ;;  %v5635_v44 = vadd.f32 %v12961_v3, %v12955_v30 }
 0x2d4   :  { %5983 = vmatprep.subr.bf16.mxu1 %v11746_v29  ;;  %v11800_v29 = vld [vmem:[#allocation6 + $0x165c] ss:$24 sps:$4 sm:$0xff]  }
 0x2d6   :  { %5943 = vmatpush1.bf16.msra.mxu0 %v11741_v20  ;;  %v5637_v20 = vadd.f32 %v12968_v9, %v12959_v47  ;;  %v11801_v47 = vld [vmem:[#allocation6 + $0x1328] ss:$24 sps:$4 sm:$0xff]  }
 0x2d7   :  { %5984 = vmatpush1.bf16.msra.mxu1 %v11744_v45  ;;  %5944 = vmatprep.subr.bf16.mxu0 %v11749_v53  ;;  %v11795_v45 = vld [vmem:[#allocation6 + $0x1358] ss:$24 sps:$4 sm:$0xff]  }
 0x2d8   :  { %5985 = vmatprep.subr.bf16.mxu1 %v11752_v57  ;;  %v11798_v53 = vld [vmem:[#allocation6 + $0x1658] ss:$24 sps:$4 sm:$0xff]   ;;  %v5676_v57 = vadd.f32 %v12964_v7, %v5635_v44  ;;  %v5678_v30 = vadd.f32 %v12971_v12, %v5637_v20  ;;  %v11809_v7 = vld [vmem:[#allocation6 + $0x12fc] ss:$24 sps:$4 sm:$0xff]   ;;  %v11839_v20 = vld [vmem:[#allocation6 + $0x120c] ss:$24 sps:$4 sm:$0xff]  }
 0x2d9   :  { %v11831_v44 = vld [vmem:[#allocation6 + $0x1238] ss:$24 sps:$4 sm:$0xff]  }
 0x2da   :  { %5945 = vmatpush2.bf16.msra.mxu0 %v11747_v60  ;;  %v11803_v60 = vld [vmem:[#allocation6 + $0x132c] ss:$24 sps:$4 sm:$0xff]  }
 0x2db   :  { %5986 = vmatpush2.bf16.msra.mxu1 %v11750_v56  ;;  %5946 = vmatprep.subr.bf16.mxu0 %v11755_v63  ;;  %v11806_v63 = vld [vmem:[#allocation6 + $0x162c] ss:$24 sps:$4 sm:$0xff]  }
 0x2dc   :  { %5987 = vmatprep.subr.bf16.mxu1 %v11758_v2 }
 0x2de   :  { %5947 = vmatpush2.bf16.msra.mxu0 %v11753_v5  ;;  %v11804_v5 = vld [vmem:[#allocation6 + $0x1628] ss:$24 sps:$4 sm:$0xff]  }
 0x2df   :  { %5988 = vmatpush2.bf16.msra.mxu1 %v11756_v8  ;;  %5948 = vmatprep.subr.bf16.mxu0 %v11761_v10 }
 0x2e0   :  { %5989 = vmatprep.subr.bf16.mxu1 %v11764_v11 }
 0x2e2   :  { %5949 = vmatpush2.bf16.msra.mxu0 %v11759_v13  ;;  %v11812_v13 = vld [vmem:[#allocation6 + $0x15fc] ss:$24 sps:$4 sm:$0xff]  }
 0x2e3   :  { %5990 = vmatpush2.bf16.msra.mxu1 %v11762_v17  ;;  %5950 = vmatprep.subr.bf16.mxu0 %v11767_v21 }
 0x2e4   :  { %5991 = vmatprep.subr.bf16.mxu1 %v11770_v25 }
 0x2e6   :  { %5951 = vmatpush2.bf16.msra.mxu0 %v11765_v26  ;;  %v11807_v26 = vld [vmem:[#allocation6 + $0x12f8] ss:$24 sps:$4 sm:$0xff]  }
 0x2e7   :  { %5992 = vmatpush2.bf16.msra.mxu1 %v11768_v16  ;;  %5952 = vmatprep.subr.bf16.mxu0 %v11773_v22  ;;  %v11810_v22 = vld [vmem:[#allocation6 + $0x15f8] ss:$24 sps:$4 sm:$0xff]  }
 0x2e8   :  { %5993 = vmatprep.subr.bf16.mxu1 %v11776_v28  ;;  %v11815_v28 = vld [vmem:[#allocation6 + $0x12cc] ss:$24 sps:$4 sm:$0xff]  }
 0x2ea   :  { %5953 = vmatpush2.bf16.msra.mxu0 %v11771_v31 }
 0x2eb   :  { %5994 = vmatpush2.bf16.msra.mxu1 %v11774_v32  ;;  %5954 = vmatprep.subr.bf16.mxu0 %v11779_v46  ;;  %v11818_v32 = vld [vmem:[#allocation6 + $0x15cc] ss:$24 sps:$4 sm:$0xff]  }
 0x2ec   :  { %5995 = vmatprep.subr.bf16.mxu1 %v11782_v59  ;;  %v11813_v59 = vld [vmem:[#allocation6 + $0x12c8] ss:$24 sps:$4 sm:$0xff]  }
 0x2ee   :  { %5955 = vmatpush2.bf16.msra.mxu0 %v11777_v49  ;;  %v11816_v49 = vld [vmem:[#allocation6 + $0x15c8] ss:$24 sps:$4 sm:$0xff]  }
 0x2ef   :  { %5996 = vmatpush2.bf16.msra.mxu1 %v11780_v58  ;;  %5956 = vmatprep.subr.bf16.mxu0 %v11785_v48  ;;  %v11821_v58 = vld [vmem:[#allocation6 + $0x129c] ss:$24 sps:$4 sm:$0xff]  }
 0x2f0   :  { %5997 = vmatprep.subr.bf16.mxu1 %v11788_v33  ;;  %v11824_v48 = vld [vmem:[#allocation6 + $0x159c] ss:$24 sps:$4 sm:$0xff]   ;;  %v11819_v33 = vld [vmem:[#allocation6 + $0x1298] ss:$24 sps:$4 sm:$0xff]  }
 0x2f2   :  { %5957 = vmatpush2.bf16.msra.mxu0 %v11783_v51  ;;  %v11822_v51 = vld [vmem:[#allocation6 + $0x1598] ss:$24 sps:$4 sm:$0xff]  }
 0x2f3   :  { %5998 = vmatpush2.bf16.msra.mxu1 %v11786_v34  ;;  %5958 = vmatprep.subr.bf16.mxu0 %v11791_v43  ;;  %v11827_v34 = vld [vmem:[#allocation6 + $0x126c] ss:$24 sps:$4 sm:$0xff]  }
 0x2f4   :  { %5999 = vmatprep.subr.bf16.mxu1 %v11794_v36  ;;  %v11830_v43 = vld [vmem:[#allocation6 + $0x156c] ss:$24 sps:$4 sm:$0xff]   ;;  %v11825_v36 = vld [vmem:[#allocation6 + $0x1268] ss:$24 sps:$4 sm:$0xff]  }
 0x2f6   :  { %5959 = vmatpush2.bf16.msra.mxu0 %v11789_v35  ;;  %v11828_v35 = vld [vmem:[#allocation6 + $0x1568] ss:$24 sps:$4 sm:$0xff]  }
 0x2f7   :  { %6000 = vmatpush2.bf16.msra.mxu1 %v11792_v39  ;;  %6010 = vmatprep.subr.bf16.mxu0 %v11797_v24  ;;  %v11833_v39 = vld [vmem:[#allocation6 + $0x123c] ss:$24 sps:$4 sm:$0xff]  }
 0x2f8   :  { %6051 = vmatprep.subr.bf16.mxu1 %v11800_v29  ;;  %v11836_v24 = vld [vmem:[#allocation6 + $0x153c] ss:$24 sps:$4 sm:$0xff]   ;;  %v11834_v29 = vld [vmem:[#allocation6 + $0x1538] ss:$24 sps:$4 sm:$0xff]  }
 0x2f9   :  { %v5716_v56 = vpop.f32.mrf.mxu0  ;;  %5961 = vmatmul.mubr.bf16.vlgmr.msra.gmra.mxu0 %v12925_v40  ;;  %v5757_v2 = vpop.f32.mrf.mxu1 }
 0x2fa   :  { %v5717_v3 = vadd.f32 %v5716_v56, %v5676_v57  ;;  %6002 = vmatmul.mubr.bf16.vlgmr.msra.gmra.mxu1 %v12923_v37  ;;  %6011 = vmatpush1.bf16.msra.mxu0 %v11795_v45  ;;  %v11842_v45 = vld [vmem:[#allocation6 + $0x150c] ss:$24 sps:$4 sm:$0xff]   ;;  %v11840_v57 = vld [vmem:[#allocation6 + $0x1508] ss:$24 sps:$4 sm:$0xff]   ;;  %v11848_v56 = vld [vmem:[#allocation6 + $0x17dc] ss:$24 sps:$4 sm:$0xff]  }
 0x2fb   :  { %6042 = vmatprep.mubr.bf16.mxu0 %v12927_v41  ;;  %6052 = vmatpush1.bf16.msra.mxu1 %v11798_v53  ;;  %v5718_v9 = vpop.f32.mrf.mxu0  ;;  %v5759_v11 = vpop.f32.mrf.mxu1  ;;  %v11837_v53 = vld [vmem:[#allocation6 + $0x1208] ss:$24 sps:$4 sm:$0xff]  }
 0x2fc   :  { %v5758_v8 = vadd.f32 %v5757_v2, %v5717_v3  ;;  %6083 = vmatprep.mubr.bf16.mxu1 %v12929_v23  ;;  %v5719_v10 = vadd.f32 %v5718_v9, %v5678_v30  ;;  %6012 = vmatprep.subr.bf16.mxu0 %v11803_v60  ;;  %v11845_v60 = vld [vmem:[#allocation6 + $0x14dc] ss:$24 sps:$4 sm:$0xff]   ;;  %v11846_v30 = vld [vmem:[#allocation6 + $0x17d8] ss:$24 sps:$4 sm:$0xff]   ;;  %v11851_v3 = vld [vmem:[#allocation6 + $0x14ac] ss:$24 sps:$4 sm:$0xff]  }
 0x2fd   :  { %v5720_v12 = vpop.f32.mrf.mxu0  ;;  %6053 = vmatprep.subr.bf16.mxu1 %v11806_v63  ;;  %v5761_v25 = vpop.f32.mrf.mxu1  ;;  %v11843_v63 = vld [vmem:[#allocation6 + $0x14d8] ss:$24 sps:$4 sm:$0xff]   ;;  %v11854_v2 = vld [vmem:[#allocation6 + $0x17ac] ss:$24 sps:$4 sm:$0xff]   ;;  %v11852_v9 = vld [vmem:[#allocation6 + $0x17a8] ss:$24 sps:$4 sm:$0xff]  }
 0x2fe   :  { %v12983_v17 = vmax.f32 %v5758_v8, 0.0  ;;  %v5760_v21 = vadd.f32 %v5759_v11, %v5719_v10  ;;  %6013 = vmatpush1.bf16.msra.mxu0 %v11801_v47  ;;  %v11849_v47 = vld [vmem:[#allocation6 + $0x14a8] ss:$24 sps:$4 sm:$0xff]   ;;  %v11855_v8 = vld [vmem:[#allocation6 + $0x1478] ss:$24 sps:$4 sm:$0xff]  }
 0x2ff   :  { %6054 = vmatpush1.bf16.msra.mxu1 %v11804_v5  ;;  %v5721_v16 = vpop.f32.mrf.mxu0  ;;  %6014 = vmatprep.subr.bf16.mxu0 %v11809_v7  ;;  %v5762_v31 = vpop.f32.mrf.mxu1  ;;  %v11857_v5 = vld [vmem:[#allocation6 + $0x147c] ss:$24 sps:$4 sm:$0xff]   ;;  %v11858_v10 = vld [vmem:[#allocation6 + $0x1778] ss:$24 sps:$4 sm:$0xff]   ;;  %v11863_v11 = vld [vmem:[#allocation6 + $0x144c] ss:$24 sps:$4 sm:$0xff]  }
 0x300   :  { %6427 = vrot.lane.b32.xlu0 %v12983_v17, %s12602_s2  ;;  %6055 = vmatprep.subr.bf16.mxu1 %v11812_v13  ;;  %v12987_v46 = vmax.f32 %v5760_v21, 0.0  ;;  %v11860_v7 = vld [vmem:[#allocation6 + $0x177c] ss:$24 sps:$4 sm:$0xff]   ;;  %v11866_v13 = vld [vmem:[#allocation6 + $0x174c] ss:$24 sps:$4 sm:$0xff]  }
 0x301   :  { %v11861_v12 = vld [vmem:[#allocation6 + $0x1448] ss:$24 sps:$4 sm:$0xff]   ;;  %v11869_v25 = vld [vmem:[#allocation6 + $0x141c] ss:$24 sps:$4 sm:$0xff]   ;;  %v11867_v16 = vld [vmem:[#allocation6 + $0x1418] ss:$24 sps:$4 sm:$0xff]  }
 0x302   :  { %6015 = vmatpush1.bf16.msra.mxu0 %v11807_v26  ;;  %v11864_v21 = vld [vmem:[#allocation6 + $0x1748] ss:$24 sps:$4 sm:$0xff]   ;;  %v11872_v26 = vld [vmem:[#allocation6 + $0x171c] ss:$24 sps:$4 sm:$0xff]   ;;  %v11878_v31 = vld [vmem:[#allocation6 + $0x16ec] ss:$24 sps:$4 sm:$0xff]  }
 0x303   :  { %6056 = vmatpush1.bf16.msra.mxu1 %v11810_v22  ;;  %6016 = vmatprep.subr.bf16.mxu0 %v11815_v28  ;;  %v11870_v22 = vld [vmem:[#allocation6 + $0x1718] ss:$24 sps:$4 sm:$0xff]   ;;  %v11875_v28 = vld [vmem:[#allocation6 + $0x13ec] ss:$24 sps:$4 sm:$0xff]  }
 0x304   :  { %6431 = vrot.lane.b32.xlu0 %v12987_v46, %s12602_s2  ;;  %6057 = vmatprep.subr.bf16.mxu1 %v11818_v32  ;;  %v11873_v32 = vld [vmem:[#allocation6 + $0x13e8] ss:$24 sps:$4 sm:$0xff]  }
 0x306   :  { %6017 = vmatpush1.bf16.msra.mxu0 %v11813_v59  ;;  %v11876_v59 = vld [vmem:[#allocation6 + $0x16e8] ss:$24 sps:$4 sm:$0xff]  }
 0x307   :  { %6058 = vmatpush1.bf16.msra.mxu1 %v11816_v49  ;;  %6018 = vmatprep.subr.bf16.mxu0 %v11821_v58  ;;  %v11881_v49 = vld [vmem:[#allocation6 + $0x13bc] ss:$24 sps:$4 sm:$0xff]  }
 0x308   :  { %6059 = vmatprep.subr.bf16.mxu1 %v11824_v48  ;;  %v11884_v58 = vld [vmem:[#allocation6 + $0x16bc] ss:$24 sps:$4 sm:$0xff]   ;;  %v11879_v48 = vld [vmem:[#allocation6 + $0x13b8] ss:$24 sps:$4 sm:$0xff]  }
 0x30a   :  { %6019 = vmatpush1.bf16.msra.mxu0 %v11819_v33  ;;  %v11882_v33 = vld [vmem:[#allocation6 + $0x16b8] ss:$24 sps:$4 sm:$0xff]  }
 0x30b   :  { %6060 = vmatpush1.bf16.msra.mxu1 %v11822_v51  ;;  %6020 = vmatprep.subr.bf16.mxu0 %v11827_v34  ;;  %v11887_v51 = vld [vmem:[#allocation6 + $0x138c] ss:$24 sps:$4 sm:$0xff]  }
 0x30c   :  { %6061 = vmatprep.subr.bf16.mxu1 %v11830_v43  ;;  %v11890_v34 = vld [vmem:[#allocation6 + $0x168c] ss:$24 sps:$4 sm:$0xff]   ;;  %v11885_v43 = vld [vmem:[#allocation6 + $0x1388] ss:$24 sps:$4 sm:$0xff]  }
 0x30e   :  { %6021 = vmatpush1.bf16.msra.mxu0 %v11825_v36  ;;  %v11888_v36 = vld [vmem:[#allocation6 + $0x1688] ss:$24 sps:$4 sm:$0xff]  }
 0x30f   :  { %6062 = vmatpush1.bf16.msra.mxu1 %v11828_v35  ;;  %6022 = vmatprep.subr.bf16.mxu0 %v11833_v39  ;;  %v11893_v35 = vld [vmem:[#allocation6 + $0x164] ss:$24 sps:$4 sm:$0xff]  }
 0x310   :  { %6063 = vmatprep.subr.bf16.mxu1 %v11836_v24  ;;  %v11896_v39 = vld [vmem:[#allocation6 + $0x464] ss:$24 sps:$4 sm:$0xff]  }
 0x311   :  { %v12323_v24 = vld [vmem:[#allocation7] sm:$0x3f] }
 0x312   :  { %6023 = vmatpush1.bf16.msra.mxu0 %v11831_v44  ;;  %v1577_v44 = vrot.slane %v12323_v24, %v12811_v50 }
 0x313   :  { %6064 = vmatpush1.bf16.msra.mxu1 %v11834_v29  ;;  %6024 = vmatprep.subr.bf16.mxu0 %v11839_v20  ;;  %v11891_v29 = vld [vmem:[#allocation6 + $0x160] ss:$24 sps:$4 sm:$0xff]  }
 0x314   :  { %6065 = vmatprep.subr.bf16.mxu1 %v11842_v45  ;;  %v11894_v20 = vld [vmem:[#allocation6 + $0x460] ss:$24 sps:$4 sm:$0xff]   ;;  %v1581_v45 = vrot.slane %v12323_v24, %v12817_v52  ;;  %v11941_v24 = vld [vmem:[#allocation6 + $0x2e4] ss:$24 sps:$4 sm:$0xff]  }
 0x316   :  { %6025 = vmatpush1.bf16.msra.mxu0 %v11837_v53  ;;  %v11899_v53 = vld [vmem:[#allocation6 + $0x134] ss:$24 sps:$4 sm:$0xff]  }
 0x317   :  { %6066 = vmatpush1.bf16.msra.mxu1 %v11840_v57  ;;  %6026 = vmatprep.subr.bf16.mxu0 %v11845_v60  ;;  %v11902_v60 = vld [vmem:[#allocation6 + $0x434] ss:$24 sps:$4 sm:$0xff]  }
 0x318   :  { %6067 = vmatprep.subr.bf16.mxu1 %v11848_v56 }
 0x31a   :  { %6027 = vmatpush2.bf16.msra.mxu0 %v11843_v63 }
 0x31b   :  { %6068 = vmatpush2.bf16.msra.mxu1 %v11846_v30  ;;  %6028 = vmatprep.subr.bf16.mxu0 %v11851_v3  ;;  %v11897_v30 = vld [vmem:[#allocation6 + $0x130] ss:$24 sps:$4 sm:$0xff]  }
 0x31c   :  { %6069 = vmatprep.subr.bf16.mxu1 %v11854_v2  ;;  %v11900_v3 = vld [vmem:[#allocation6 + $0x430] ss:$24 sps:$4 sm:$0xff]   ;;  %v11905_v2 = vld [vmem:[#allocation6 + $0x104] ss:$24 sps:$4 sm:$0xff]  }
 0x31e   :  { %6029 = vmatpush2.bf16.msra.mxu0 %v11849_v47 }
 0x31f   :  { %6070 = vmatpush2.bf16.msra.mxu1 %v11852_v9  ;;  %6030 = vmatprep.subr.bf16.mxu0 %v11857_v5  ;;  %v11908_v5 = vld [vmem:[#allocation6 + $0x404] ss:$24 sps:$4 sm:$0xff]  }
 0x320   :  { %6071 = vmatprep.subr.bf16.mxu1 %v11860_v7 }
 0x322   :  { %6031 = vmatpush2.bf16.msra.mxu0 %v11855_v8 }
 0x323   :  { %6072 = vmatpush2.bf16.msra.mxu1 %v11858_v10  ;;  %6032 = vmatprep.subr.bf16.mxu0 %v11863_v11  ;;  %v11903_v11 = vld [vmem:[#allocation6 + $0x100] ss:$24 sps:$4 sm:$0xff]  }
 0x324   :  { %6073 = vmatprep.subr.bf16.mxu1 %v11866_v13  ;;  %v11906_v13 = vld [vmem:[#allocation6 + $0x400] ss:$24 sps:$4 sm:$0xff]  }
 0x326   :  { %6033 = vmatpush2.bf16.msra.mxu0 %v11861_v12  ;;  %v11911_v12 = vld [vmem:[#allocation6 + $0xd4] ss:$24 sps:$4 sm:$0xff]  }
 0x327   :  { %6074 = vmatpush2.bf16.msra.mxu1 %v11864_v21  ;;  %6034 = vmatprep.subr.bf16.mxu0 %v11869_v25  ;;  %v11914_v25 = vld [vmem:[#allocation6 + $0x3d4] ss:$24 sps:$4 sm:$0xff]  }
 0x328   :  { %6075 = vmatprep.subr.bf16.mxu1 %v11872_v26  ;;  %v11912_v26 = vld [vmem:[#allocation6 + $0x3d0] ss:$24 sps:$4 sm:$0xff]  }
 0x32a   :  { %6035 = vmatpush2.bf16.msra.mxu0 %v11867_v16  ;;  %v11917_v16 = vld [vmem:[#allocation6 + $0xa4] ss:$24 sps:$4 sm:$0xff]  }
 0x32b   :  { %6076 = vmatpush2.bf16.msra.mxu1 %v11870_v22  ;;  %6036 = vmatprep.subr.bf16.mxu0 %v11875_v28  ;;  %v11920_v22 = vld [vmem:[#allocation6 + $0x3a4] ss:$24 sps:$4 sm:$0xff]   ;;  %v11915_v28 = vld [vmem:[#allocation6 + $0xa0] ss:$24 sps:$4 sm:$0xff]  }
 0x32c   :  { %6077 = vmatprep.subr.bf16.mxu1 %v11878_v31  ;;  %v11918_v31 = vld [vmem:[#allocation6 + $0x3a0] ss:$24 sps:$4 sm:$0xff]  }
 0x32e   :  { %6037 = vmatpush2.bf16.msra.mxu0 %v11873_v32  ;;  %v11923_v32 = vld [vmem:[#allocation6 + $0x74] ss:$24 sps:$4 sm:$0xff]  }
 0x32f   :  { %6078 = vmatpush2.bf16.msra.mxu1 %v11876_v59  ;;  %6038 = vmatprep.subr.bf16.mxu0 %v11881_v49  ;;  %v11926_v59 = vld [vmem:[#allocation6 + $0x374] ss:$24 sps:$4 sm:$0xff]   ;;  %v11921_v49 = vld [vmem:[#allocation6 + $0x70] ss:$24 sps:$4 sm:$0xff]  }
 0x330   :  { %6079 = vmatprep.subr.bf16.mxu1 %v11884_v58  ;;  %v11924_v58 = vld [vmem:[#allocation6 + $0x370] ss:$24 sps:$4 sm:$0xff]  }
 0x332   :  { %6039 = vmatpush2.bf16.msra.mxu0 %v11879_v48  ;;  %v11929_v48 = vld [vmem:[#allocation6 + $0x44] ss:$24 sps:$4 sm:$0xff]  }
 0x333   :  { %6080 = vmatpush2.bf16.msra.mxu1 %v11882_v33  ;;  %6040 = vmatprep.subr.bf16.mxu0 %v11887_v51  ;;  %v11932_v33 = vld [vmem:[#allocation6 + $0x344] ss:$24 sps:$4 sm:$0xff]   ;;  %v11927_v51 = vld [vmem:[#allocation6 + $0x40] ss:$24 sps:$4 sm:$0xff]  }
 0x334   :  { %6081 = vmatprep.subr.bf16.mxu1 %v11890_v34  ;;  %v11930_v34 = vld [vmem:[#allocation6 + $0x340] ss:$24 sps:$4 sm:$0xff]  }
 0x336   :  { %6041 = vmatpush2.bf16.msra.mxu0 %v11885_v43  ;;  %v11935_v43 = vld [vmem:[#allocation6 + $0x14] ss:$24 sps:$4 sm:$0xff]  }
 0x337   :  { %6082 = vmatpush2.bf16.msra.mxu1 %v11888_v36  ;;  %6092 = vmatprep.subr.bf16.mxu0 %v11893_v35  ;;  %v11938_v36 = vld [vmem:[#allocation6 + $0x314] ss:$24 sps:$4 sm:$0xff]   ;;  %v11933_v35 = vld [vmem:[#allocation6 + $0x10] ss:$24 sps:$4 sm:$0xff]  }
 0x338   :  { %6133 = vmatprep.subr.bf16.mxu1 %v11896_v39  ;;  %v11936_v39 = vld [vmem:[#allocation6 + $0x310] ss:$24 sps:$4 sm:$0xff]  }
 0x339   :  { %v5798_v57 = vpop.f32.mrf.mxu0  ;;  %6043 = vmatmul.mubr.bf16.vlgmr.msra.gmra.mxu0 %v12938_v27 }
 0x33a   :  { %v5799_v56 = vadd.f32 %v5798_v57, %v1577_v44  ;;  %v5839_v63 = vpop.f32.mrf.mxu1  ;;  %6084 = vmatmul.mubr.bf16.vlgmr.msra.gmra.mxu1 %v12940_v6  ;;  %6093 = vmatpush1.bf16.msra.mxu0 %v11891_v29  ;;  %v11944_v44 = vld [vmem:[#allocation6 + $0x5e4] ss:$24 sps:$4 sm:$0xff]   ;;  %v11939_v29 = vld [vmem:[#allocation6 + $0x2e0] ss:$24 sps:$4 sm:$0xff]   ;;  %v11945_v57 = vld [vmem:[#allocation6 + $0x2b0] ss:$24 sps:$4 sm:$0xff]  }
 0x33b   :  { %6124 = vmatprep.mubr.bf16.mxu0 %v12833_v15  ;;  %6134 = vmatpush1.bf16.msra.mxu1 %v11894_v20  ;;  %v5800_v50 = vpop.f32.mrf.mxu0  ;;  %v11942_v20 = vld [vmem:[#allocation6 + $0x5e0] ss:$24 sps:$4 sm:$0xff]  }
 0x33c   :  { %v12996_v47 = vadd.f32 %v5839_v63, %v5799_v56  ;;  %6165 = vmatprep.mubr.bf16.mxu1 %v12839_v19  ;;  %v5801_v52 = vadd.f32 %v5800_v50, %v1581_v45  ;;  %v5841_v9 = vpop.f32.mrf.mxu1  ;;  %6094 = vmatprep.subr.bf16.mxu0 %v11899_v53  ;;  %v11909_v19 = vld [vmem:[#allocation6 + $0xd0] ss:$24 sps:$4 sm:$0xff]   ;;  %v11947_v45 = vld [vmem:[#allocation6 + $0x2b4] ss:$24 sps:$4 sm:$0xff]   ;;  %v11953_v56 = vld [vmem:[#allocation6 + $0x284] ss:$24 sps:$4 sm:$0xff]  }
 0x33d   :  { %v5802_v7 = vpop.f32.mrf.mxu0  ;;  %6135 = vmatprep.subr.bf16.mxu1 %v11902_v60  ;;  %v11950_v53 = vld [vmem:[#allocation6 + $0x5b4] ss:$24 sps:$4 sm:$0xff]   ;;  %v11948_v60 = vld [vmem:[#allocation6 + $0x5b0] ss:$24 sps:$4 sm:$0xff]   ;;  %v11956_v63 = vld [vmem:[#allocation6 + $0x584] ss:$24 sps:$4 sm:$0xff]  }
 0x33e   :  { %v12999_v8 = vadd.f32 %v5841_v9, %v5801_v52  ;;  %v5843_v10 = vpop.f32.mrf.mxu1  ;;  %6095 = vmatpush1.bf16.msra.mxu0 %v11897_v30  ;;  %v11951_v30 = vld [vmem:[#allocation6 + $0x280] ss:$24 sps:$4 sm:$0xff]   ;;  %v11957_v52 = vld [vmem:[#allocation6 + $0x250] ss:$24 sps:$4 sm:$0xff]   ;;  %v11968_v7 = vld [vmem:[#allocation6 + $0x524] ss:$24 sps:$4 sm:$0xff]  }
 0x33f   :  { %6136 = vmatpush1.bf16.msra.mxu1 %v11900_v3  ;;  %v5803_v15 = vpop.f32.mrf.mxu0  ;;  %6096 = vmatprep.subr.bf16.mxu0 %v11905_v2  ;;  %v11954_v50 = vld [vmem:[#allocation6 + $0x580] ss:$24 sps:$4 sm:$0xff]   ;;  %v11959_v3 = vld [vmem:[#allocation6 + $0x254] ss:$24 sps:$4 sm:$0xff]   ;;  %v11960_v9 = vld [vmem:[#allocation6 + $0x550] ss:$24 sps:$4 sm:$0xff]  }
 0x340   :  { %v5844_v21 = vpop.f32.mrf.mxu1  ;;  %6137 = vmatprep.subr.bf16.mxu1 %v11908_v5  ;;  %v11962_v2 = vld [vmem:[#allocation6 + $0x554] ss:$24 sps:$4 sm:$0xff]   ;;  %v11965_v5 = vld [vmem:[#allocation6 + $0x224] ss:$24 sps:$4 sm:$0xff]   ;;  %v11963_v10 = vld [vmem:[#allocation6 + $0x220] ss:$24 sps:$4 sm:$0xff]  }
 0x341   :  { %v11971_v15 = vld [vmem:[#allocation6 + $0x1f4] ss:$24 sps:$4 sm:$0xff]   ;;  %v11972_v21 = vld [vmem:[#allocation6 + $0x4f0] ss:$24 sps:$4 sm:$0xff]  }
 0x342   :  { %6097 = vmatpush1.bf16.msra.mxu0 %v11903_v11  ;;  %v11966_v11 = vld [vmem:[#allocation6 + $0x520] ss:$24 sps:$4 sm:$0xff]  }
 0x343   :  { %6138 = vmatpush1.bf16.msra.mxu1 %v11906_v13  ;;  %6098 = vmatprep.subr.bf16.mxu0 %v11911_v12  ;;  %v11974_v13 = vld [vmem:[#allocation6 + $0x4f4] ss:$24 sps:$4 sm:$0xff]   ;;  %v11969_v12 = vld [vmem:[#allocation6 + $0x1f0] ss:$24 sps:$4 sm:$0xff]  }
 0x344   :  { %6139 = vmatprep.subr.bf16.mxu1 %v11914_v25  ;;  %v11977_v25 = vld [vmem:[#allocation6 + $0x1c4] ss:$24 sps:$4 sm:$0xff]  }
 0x346   :  { %6099 = vmatpush1.bf16.msra.mxu0 %v11909_v19  ;;  %v11980_v19 = vld [vmem:[#allocation6 + $0x4c4] ss:$24 sps:$4 sm:$0xff]  }
 0x347   :  { %6140 = vmatpush1.bf16.msra.mxu1 %v11912_v26  ;;  %6100 = vmatprep.subr.bf16.mxu0 %v11917_v16  ;;  %v11975_v26 = vld [vmem:[#allocation6 + $0x1c0] ss:$24 sps:$4 sm:$0xff]  }
 0x348   :  { %6141 = vmatprep.subr.bf16.mxu1 %v11920_v22  ;;  %v11978_v16 = vld [vmem:[#allocation6 + $0x4c0] ss:$24 sps:$4 sm:$0xff]   ;;  %v11983_v22 = vld [vmem:[#allocation6 + $0x194] ss:$24 sps:$4 sm:$0xff]  }
 0x34a   :  { %6101 = vmatpush1.bf16.msra.mxu0 %v11915_v28  ;;  %v11986_v28 = vld [vmem:[#allocation6 + $0x494] ss:$24 sps:$4 sm:$0xff]  }
 0x34b   :  { %6142 = vmatpush1.bf16.msra.mxu1 %v11918_v31  ;;  %6102 = vmatprep.subr.bf16.mxu0 %v11923_v32  ;;  %v11981_v31 = vld [vmem:[#allocation6 + $0x190] ss:$24 sps:$4 sm:$0xff]  }
 0x34c   :  { %6143 = vmatprep.subr.bf16.mxu1 %v11926_v59  ;;  %v11984_v32 = vld [vmem:[#allocation6 + $0x490] ss:$24 sps:$4 sm:$0xff]   ;;  %v11989_v59 = vld [vmem:[#allocation6 + $0x764] ss:$24 sps:$4 sm:$0xff]  }
 0x34e   :  { %6103 = vmatpush1.bf16.msra.mxu0 %v11921_v49  ;;  %v11992_v49 = vld [vmem:[#allocation6 + $0xa64] ss:$24 sps:$4 sm:$0xff]  }
 0x34f   :  { %6144 = vmatpush1.bf16.msra.mxu1 %v11924_v58  ;;  %6104 = vmatprep.subr.bf16.mxu0 %v11929_v48  ;;  %v11987_v58 = vld [vmem:[#allocation6 + $0x760] ss:$24 sps:$4 sm:$0xff]  }
 0x350   :  { %6145 = vmatprep.subr.bf16.mxu1 %v11932_v33  ;;  %v11990_v48 = vld [vmem:[#allocation6 + $0xa60] ss:$24 sps:$4 sm:$0xff]   ;;  %v11995_v33 = vld [vmem:[#allocation6 + $0x734] ss:$24 sps:$4 sm:$0xff]  }
 0x352   :  { %6105 = vmatpush1.bf16.msra.mxu0 %v11927_v51 }
 0x353   :  { %6146 = vmatpush1.bf16.msra.mxu1 %v11930_v34  ;;  %6106 = vmatprep.subr.bf16.mxu0 %v11935_v43  ;;  %v11998_v34 = vld [vmem:[#allocation6 + $0xa34] ss:$24 sps:$4 sm:$0xff]  }
 0x354   :  { %6147 = vmatprep.subr.bf16.mxu1 %v11938_v36 }
 0x356   :  { %6107 = vmatpush1.bf16.msra.mxu0 %v11933_v35  ;;  %v11993_v35 = vld [vmem:[#allocation6 + $0x730] ss:$24 sps:$4 sm:$0xff]  }
 0x357   :  { %6148 = vmatpush1.bf16.msra.mxu1 %v11936_v39  ;;  %6108 = vmatprep.subr.bf16.mxu0 %v11941_v24  ;;  %v11996_v24 = vld [vmem:[#allocation6 + $0xa30] ss:$24 sps:$4 sm:$0xff]  }
 0x358   :  { %6149 = vmatprep.subr.bf16.mxu1 %v11944_v44  ;;  %v12001_v44 = vld [vmem:[#allocation6 + $0x704] ss:$24 sps:$4 sm:$0xff]  }
 0x35a   :  { %6109 = vmatpush2.bf16.msra.mxu0 %v11939_v29 }
 0x35b   :  { %6150 = vmatpush2.bf16.msra.mxu1 %v11942_v20  ;;  %6110 = vmatprep.subr.bf16.mxu0 %v11947_v45 }
 0x35c   :  { %6151 = vmatprep.subr.bf16.mxu1 %v11950_v53 }
 0x35e   :  { %6111 = vmatpush2.bf16.msra.mxu0 %v11945_v57 }
 0x35f   :  { %6152 = vmatpush2.bf16.msra.mxu1 %v11948_v60  ;;  %6112 = vmatprep.subr.bf16.mxu0 %v11953_v56  ;;  %v12002_v60 = vld [vmem:[#allocation6 + $0xa00] ss:$24 sps:$4 sm:$0xff]   ;;  %v12007_v56 = vld [vmem:[#allocation6 + $0x6d4] ss:$24 sps:$4 sm:$0xff]  }
 0x360   :  { %6153 = vmatprep.subr.bf16.mxu1 %v11956_v63 }
 0x362   :  { %6113 = vmatpush2.bf16.msra.mxu0 %v11951_v30  ;;  %v12008_v30 = vld [vmem:[#allocation6 + $0x9d0] ss:$24 sps:$4 sm:$0xff]  }
 0x363   :  { %6154 = vmatpush2.bf16.msra.mxu1 %v11954_v50  ;;  %6114 = vmatprep.subr.bf16.mxu0 %v11959_v3  ;;  %v12013_v50 = vld [vmem:[#allocation6 + $0x6a4] ss:$24 sps:$4 sm:$0xff]  }
 0x364   :  { %6155 = vmatprep.subr.bf16.mxu1 %v11962_v2  ;;  %v12016_v3 = vld [vmem:[#allocation6 + $0x9a4] ss:$24 sps:$4 sm:$0xff]   ;;  %v12011_v2 = vld [vmem:[#allocation6 + $0x6a0] ss:$24 sps:$4 sm:$0xff]  }
 0x366   :  { %6115 = vmatpush2.bf16.msra.mxu0 %v11957_v52  ;;  %v12014_v52 = vld [vmem:[#allocation6 + $0x9a0] ss:$24 sps:$4 sm:$0xff]  }
 0x367   :  { %6156 = vmatpush2.bf16.msra.mxu1 %v11960_v9  ;;  %6116 = vmatprep.subr.bf16.mxu0 %v11965_v5  ;;  %v12019_v9 = vld [vmem:[#allocation6 + $0x674] ss:$24 sps:$4 sm:$0xff]  }
 0x368   :  { %6157 = vmatprep.subr.bf16.mxu1 %v11968_v7  ;;  %v12022_v5 = vld [vmem:[#allocation6 + $0x974] ss:$24 sps:$4 sm:$0xff]   ;;  %v12017_v7 = vld [vmem:[#allocation6 + $0x670] ss:$24 sps:$4 sm:$0xff]  }
 0x36a   :  { %6117 = vmatpush2.bf16.msra.mxu0 %v11963_v10  ;;  %v12020_v10 = vld [vmem:[#allocation6 + $0x970] ss:$24 sps:$4 sm:$0xff]  }
 0x36b   :  { %6158 = vmatpush2.bf16.msra.mxu1 %v11966_v11  ;;  %6118 = vmatprep.subr.bf16.mxu0 %v11971_v15  ;;  %v12025_v11 = vld [vmem:[#allocation6 + $0x644] ss:$24 sps:$4 sm:$0xff]  }
 0x36c   :  { %6159 = vmatprep.subr.bf16.mxu1 %v11974_v13  ;;  %v12028_v15 = vld [vmem:[#allocation6 + $0x944] ss:$24 sps:$4 sm:$0xff]   ;;  %v12023_v13 = vld [vmem:[#allocation6 + $0x640] ss:$24 sps:$4 sm:$0xff]  }
 0x36e   :  { %6119 = vmatpush2.bf16.msra.mxu0 %v11969_v12  ;;  %v12026_v12 = vld [vmem:[#allocation6 + $0x940] ss:$24 sps:$4 sm:$0xff]  }
 0x36f   :  { %6160 = vmatpush2.bf16.msra.mxu1 %v11972_v21  ;;  %6120 = vmatprep.subr.bf16.mxu0 %v11977_v25  ;;  %v12031_v21 = vld [vmem:[#allocation6 + $0x614] ss:$24 sps:$4 sm:$0xff]  }
 0x370   :  { %6161 = vmatprep.subr.bf16.mxu1 %v11980_v19  ;;  %v12034_v25 = vld [vmem:[#allocation6 + $0x914] ss:$24 sps:$4 sm:$0xff]   ;;  %v12029_v19 = vld [vmem:[#allocation6 + $0x610] ss:$24 sps:$4 sm:$0xff]  }
 0x372   :  { %6121 = vmatpush2.bf16.msra.mxu0 %v11975_v26  ;;  %v12032_v26 = vld [vmem:[#allocation6 + $0x910] ss:$24 sps:$4 sm:$0xff]  }
 0x373   :  { %6162 = vmatpush2.bf16.msra.mxu1 %v11978_v16  ;;  %6122 = vmatprep.subr.bf16.mxu0 %v11983_v22  ;;  %v12037_v16 = vld [vmem:[#allocation6 + $0x8e4] ss:$24 sps:$4 sm:$0xff]  }
 0x374   :  { %6163 = vmatprep.subr.bf16.mxu1 %v11986_v28  ;;  %v12040_v22 = vld [vmem:[#allocation6 + $0xbe4] ss:$24 sps:$4 sm:$0xff]   ;;  %v12035_v28 = vld [vmem:[#allocation6 + $0x8e0] ss:$24 sps:$4 sm:$0xff]  }
 0x376   :  { %6123 = vmatpush2.bf16.msra.mxu0 %v11981_v31  ;;  %v12038_v31 = vld [vmem:[#allocation6 + $0xbe0] ss:$24 sps:$4 sm:$0xff]  }
 0x377   :  { %6164 = vmatpush2.bf16.msra.mxu1 %v11984_v32  ;;  %6174 = vmatprep.subr.bf16.mxu0 %v11989_v59  ;;  %v12043_v32 = vld [vmem:[#allocation6 + $0x8b4] ss:$24 sps:$4 sm:$0xff]  }
 0x378   :  { %6215 = vmatprep.subr.bf16.mxu1 %v11992_v49  ;;  %v12046_v59 = vld [vmem:[#allocation6 + $0xbb4] ss:$24 sps:$4 sm:$0xff]   ;;  %v12041_v49 = vld [vmem:[#allocation6 + $0x8b0] ss:$24 sps:$4 sm:$0xff]  }
 0x379   :  { %v5880_v51 = vpop.f32.mrf.mxu0  ;;  %6125 = vmatmul.mubr.bf16.vlgmr.msra.gmra.mxu0 %v12837_v18 }
 0x37a   :  { %v5881_v43 = vadd.f32 %v5880_v51, %v12996_v47  ;;  %v5921_v36 = vpop.f32.mrf.mxu1  ;;  %6166 = vmatmul.mubr.bf16.vlgmr.msra.gmra.mxu1 %v12831_v14  ;;  %6175 = vmatpush1.bf16.msra.mxu0 %v11987_v58  ;;  %v12004_v47 = vld [vmem:[#allocation6 + $0xa04] ss:$24 sps:$4 sm:$0xff]   ;;  %v12044_v58 = vld [vmem:[#allocation6 + $0xbb0] ss:$24 sps:$4 sm:$0xff]   ;;  %v12047_v51 = vld [vmem:[#allocation6 + $0x880] ss:$24 sps:$4 sm:$0xff]  }
 0x37b   :  { %6206 = vmatprep.mubr.bf16.mxu0 %v12852_v38  ;;  %6216 = vmatpush1.bf16.msra.mxu1 %v11990_v48  ;;  %v5882_v39 = vpop.f32.mrf.mxu0  ;;  %v11999_v38 = vld [vmem:[#allocation6 + $0x700] ss:$24 sps:$4 sm:$0xff]   ;;  %v12049_v48 = vld [vmem:[#allocation6 + $0x884] ss:$24 sps:$4 sm:$0xff]  }
 0x37c   :  { %v13005_v29 = vadd.f32 %v5921_v36, %v5881_v43  ;;  %6247 = vmatprep.mubr.bf16.mxu1 %v12854_v42  ;;  %v5883_v18 = vadd.f32 %v5882_v39, %v12999_v8  ;;  %v5923_v20 = vpop.f32.mrf.mxu1  ;;  %6176 = vmatprep.subr.bf16.mxu0 %v11995_v33  ;;  %v12010_v42 = vld [vmem:[#allocation6 + $0x9d4] ss:$24 sps:$4 sm:$0xff]   ;;  %v12005_v8 = vld [vmem:[#allocation6 + $0x6d0] ss:$24 sps:$4 sm:$0xff]   ;;  %v12052_v33 = vld [vmem:[#allocation6 + $0xb84] ss:$24 sps:$4 sm:$0xff]  }
 0x37d   :  { %v5884_v45 = vpop.f32.mrf.mxu0  ;;  %6217 = vmatprep.subr.bf16.mxu1 %v11998_v34  ;;  %v12050_v34 = vld [vmem:[#allocation6 + $0xb80] ss:$24 sps:$4 sm:$0xff]   ;;  %v12055_v43 = vld [vmem:[#allocation6 + $0x854] ss:$24 sps:$4 sm:$0xff]   ;;  %v12056_v39 = vld [vmem:[#allocation6 + $0xb50] ss:$24 sps:$4 sm:$0xff]  }
 0x37e   :  { %v13009_v14 = vadd.f32 %v5923_v20, %v5883_v18  ;;  %v5925_v53 = vpop.f32.mrf.mxu1  ;;  %6177 = vmatpush1.bf16.msra.mxu0 %v11993_v35  ;;  %v12058_v36 = vld [vmem:[#allocation6 + $0xb54] ss:$24 sps:$4 sm:$0xff]   ;;  %v12053_v35 = vld [vmem:[#allocation6 + $0x850] ss:$24 sps:$4 sm:$0xff]   ;;  %v12059_v18 = vld [vmem:[#allocation6 + $0x820] ss:$24 sps:$4 sm:$0xff]  }
 0x37f   :  { %6218 = vmatpush1.bf16.msra.mxu1 %v11996_v24  ;;  %v5885_v57 = vpop.f32.mrf.mxu0  ;;  %6178 = vmatprep.subr.bf16.mxu0 %v12001_v44  ;;  %v12061_v24 = vld [vmem:[#allocation6 + $0x824] ss:$24 sps:$4 sm:$0xff]   ;;  %v12062_v20 = vld [vmem:[#allocation6 + $0xb20] ss:$24 sps:$4 sm:$0xff]   ;;  %v12070_v45 = vld [vmem:[#allocation6 + $0xaf4] ss:$24 sps:$4 sm:$0xff]  }
 0x380   :  { %v5926_v63 = vpop.f32.mrf.mxu1  ;;  %6219 = vmatprep.subr.bf16.mxu1 %v12004_v47  ;;  %v12064_v44 = vld [vmem:[#allocation6 + $0xb24] ss:$24 sps:$4 sm:$0xff]   ;;  %v12067_v47 = vld [vmem:[#allocation6 + $0x7f4] ss:$24 sps:$4 sm:$0xff]   ;;  %v12065_v53 = vld [vmem:[#allocation6 + $0x7f0] ss:$24 sps:$4 sm:$0xff]  }
 0x381   :  { %v12073_v57 = vld [vmem:[#allocation6 + $0x7c4] ss:$24 sps:$4 sm:$0xff]   ;;  %v12074_v63 = vld [vmem:[#allocation6 + $0xac0] ss:$24 sps:$4 sm:$0xff]  }
 0x382   :  { %6179 = vmatpush1.bf16.msra.mxu0 %v11999_v38  ;;  %v12068_v38 = vld [vmem:[#allocation6 + $0xaf0] ss:$24 sps:$4 sm:$0xff]  }
 0x383   :  { %6220 = vmatpush1.bf16.msra.mxu1 %v12002_v60  ;;  %6180 = vmatprep.subr.bf16.mxu0 %v12007_v56  ;;  %v12076_v60 = vld [vmem:[#allocation6 + $0xac4] ss:$24 sps:$4 sm:$0xff]   ;;  %v12071_v56 = vld [vmem:[#allocation6 + $0x7c0] ss:$24 sps:$4 sm:$0xff]  }
 0x384   :  { %6221 = vmatprep.subr.bf16.mxu1 %v12010_v42  ;;  %v12079_v42 = vld [vmem:[#allocation6 + $0x794] ss:$24 sps:$4 sm:$0xff]  }
 0x386   :  { %6181 = vmatpush1.bf16.msra.mxu0 %v12005_v8  ;;  %v12082_v8 = vld [vmem:[#allocation6 + $0xa94] ss:$24 sps:$4 sm:$0xff]  }
 0x387   :  { %6222 = vmatpush1.bf16.msra.mxu1 %v12008_v30  ;;  %6182 = vmatprep.subr.bf16.mxu0 %v12013_v50  ;;  %v12077_v30 = vld [vmem:[#allocation6 + $0x790] ss:$24 sps:$4 sm:$0xff]  }
 0x388   :  { %6223 = vmatprep.subr.bf16.mxu1 %v12016_v3  ;;  %v12080_v50 = vld [vmem:[#allocation6 + $0xa90] ss:$24 sps:$4 sm:$0xff]   ;;  %v12085_v3 = vld [vmem:[#allocation6 + $0xd64] ss:$24 sps:$4 sm:$0xff]  }
 0x38a   :  { %6183 = vmatpush1.bf16.msra.mxu0 %v12011_v2  ;;  %v12088_v2 = vld [vmem:[#allocation6 + $0x1064] ss:$24 sps:$4 sm:$0xff]  }
 0x38b   :  { %6224 = vmatpush1.bf16.msra.mxu1 %v12014_v52  ;;  %6184 = vmatprep.subr.bf16.mxu0 %v12019_v9  ;;  %v12083_v52 = vld [vmem:[#allocation6 + $0xd60] ss:$24 sps:$4 sm:$0xff]  }
 0x38c   :  { %6225 = vmatprep.subr.bf16.mxu1 %v12022_v5  ;;  %v12086_v9 = vld [vmem:[#allocation6 + $0x1060] ss:$24 sps:$4 sm:$0xff]   ;;  %v12091_v5 = vld [vmem:[#allocation6 + $0xd34] ss:$24 sps:$4 sm:$0xff]  }
 0x38e   :  { %6185 = vmatpush1.bf16.msra.mxu0 %v12017_v7 }
 0x38f   :  { %6226 = vmatpush1.bf16.msra.mxu1 %v12020_v10  ;;  %6186 = vmatprep.subr.bf16.mxu0 %v12025_v11  ;;  %v12094_v10 = vld [vmem:[#allocation6 + $0x1034] ss:$24 sps:$4 sm:$0xff]  }
 0x390   :  { %6227 = vmatprep.subr.bf16.mxu1 %v12028_v15  ;;  %v12089_v15 = vld [vmem:[#allocation6 + $0xd30] ss:$24 sps:$4 sm:$0xff]  }
 0x392   :  { %6187 = vmatpush1.bf16.msra.mxu0 %v12023_v13 }
 0x393   :  { %6228 = vmatpush1.bf16.msra.mxu1 %v12026_v12  ;;  %6188 = vmatprep.subr.bf16.mxu0 %v12031_v21  ;;  %v12092_v12 = vld [vmem:[#allocation6 + $0x1030] ss:$24 sps:$4 sm:$0xff]   ;;  %v12097_v21 = vld [vmem:[#allocation6 + $0xd04] ss:$24 sps:$4 sm:$0xff]  }
 0x394   :  { %6229 = vmatprep.subr.bf16.mxu1 %v12034_v25 }
 0x396   :  { %6189 = vmatpush1.bf16.msra.mxu0 %v12029_v19 }
 0x397   :  { %6230 = vmatpush1.bf16.msra.mxu1 %v12032_v26  ;;  %6190 = vmatprep.subr.bf16.mxu0 %v12037_v16 }
 0x398   :  { %6231 = vmatprep.subr.bf16.mxu1 %v12040_v22  ;;  %v12103_v22 = vld [vmem:[#allocation6 + $0xcd4] ss:$24 sps:$4 sm:$0xff]  }
 0x39a   :  { %6191 = vmatpush2.bf16.msra.mxu0 %v12035_v28 }
 0x39b   :  { %6232 = vmatpush2.bf16.msra.mxu1 %v12038_v31  ;;  %6192 = vmatprep.subr.bf16.mxu0 %v12043_v32  ;;  %v12106_v31 = vld [vmem:[#allocation6 + $0xfd4] ss:$24 sps:$4 sm:$0xff]   ;;  %v12101_v32 = vld [vmem:[#allocation6 + $0xcd0] ss:$24 sps:$4 sm:$0xff]  }
 0x39c   :  { %6233 = vmatprep.subr.bf16.mxu1 %v12046_v59  ;;  %v12109_v59 = vld [vmem:[#allocation6 + $0xca4] ss:$24 sps:$4 sm:$0xff]  }
 0x39e   :  { %6193 = vmatpush2.bf16.msra.mxu0 %v12041_v49  ;;  %v12112_v49 = vld [vmem:[#allocation6 + $0xfa4] ss:$24 sps:$4 sm:$0xff]  }
 0x39f   :  { %6234 = vmatpush2.bf16.msra.mxu1 %v12044_v58  ;;  %6194 = vmatprep.subr.bf16.mxu0 %v12049_v48  ;;  %v12107_v58 = vld [vmem:[#allocation6 + $0xca0] ss:$24 sps:$4 sm:$0xff]  }
 0x3a0   :  { %6235 = vmatprep.subr.bf16.mxu1 %v12052_v33  ;;  %v12110_v48 = vld [vmem:[#allocation6 + $0xfa0] ss:$24 sps:$4 sm:$0xff]   ;;  %v12115_v33 = vld [vmem:[#allocation6 + $0xc74] ss:$24 sps:$4 sm:$0xff]  }
 0x3a2   :  { %6195 = vmatpush2.bf16.msra.mxu0 %v12047_v51  ;;  %v12118_v51 = vld [vmem:[#allocation6 + $0xf74] ss:$24 sps:$4 sm:$0xff]  }
 0x3a3   :  { %6236 = vmatpush2.bf16.msra.mxu1 %v12050_v34  ;;  %6196 = vmatprep.subr.bf16.mxu0 %v12055_v43  ;;  %v12113_v34 = vld [vmem:[#allocation6 + $0xc70] ss:$24 sps:$4 sm:$0xff]  }
 0x3a4   :  { %6237 = vmatprep.subr.bf16.mxu1 %v12058_v36  ;;  %v12116_v43 = vld [vmem:[#allocation6 + $0xf70] ss:$24 sps:$4 sm:$0xff]   ;;  %v12121_v36 = vld [vmem:[#allocation6 + $0xc44] ss:$24 sps:$4 sm:$0xff]  }
 0x3a6   :  { %6197 = vmatpush2.bf16.msra.mxu0 %v12053_v35  ;;  %v12124_v35 = vld [vmem:[#allocation6 + $0xf44] ss:$24 sps:$4 sm:$0xff]  }
 0x3a7   :  { %6238 = vmatpush2.bf16.msra.mxu1 %v12056_v39  ;;  %6198 = vmatprep.subr.bf16.mxu0 %v12061_v24  ;;  %v12119_v39 = vld [vmem:[#allocation6 + $0xc40] ss:$24 sps:$4 sm:$0xff]  }
 0x3a8   :  { %6239 = vmatprep.subr.bf16.mxu1 %v12064_v44  ;;  %v12122_v24 = vld [vmem:[#allocation6 + $0xf40] ss:$24 sps:$4 sm:$0xff]   ;;  %v12127_v44 = vld [vmem:[#allocation6 + $0xc14] ss:$24 sps:$4 sm:$0xff]  }
 0x3aa   :  { %6199 = vmatpush2.bf16.msra.mxu0 %v12059_v18  ;;  %v12130_v18 = vld [vmem:[#allocation6 + $0xf14] ss:$24 sps:$4 sm:$0xff]  }
 0x3ab   :  { %6240 = vmatpush2.bf16.msra.mxu1 %v12062_v20  ;;  %6200 = vmatprep.subr.bf16.mxu0 %v12067_v47  ;;  %v12125_v20 = vld [vmem:[#allocation6 + $0xc10] ss:$24 sps:$4 sm:$0xff]  }
 0x3ac   :  { %6241 = vmatprep.subr.bf16.mxu1 %v12070_v45  ;;  %v12128_v47 = vld [vmem:[#allocation6 + $0xf10] ss:$24 sps:$4 sm:$0xff]   ;;  %v12133_v45 = vld [vmem:[#allocation6 + $0xee4] ss:$24 sps:$4 sm:$0xff]  }
 0x3ae   :  { %6201 = vmatpush2.bf16.msra.mxu0 %v12065_v53  ;;  %v12136_v53 = vld [vmem:[#allocation6 + $0x11e4] ss:$24 sps:$4 sm:$0xff]  }
 0x3af   :  { %6242 = vmatpush2.bf16.msra.mxu1 %v12068_v38  ;;  %6202 = vmatprep.subr.bf16.mxu0 %v12073_v57  ;;  %v12131_v38 = vld [vmem:[#allocation6 + $0xee0] ss:$24 sps:$4 sm:$0xff]  }
 0x3b0   :  { %6243 = vmatprep.subr.bf16.mxu1 %v12076_v60  ;;  %v12134_v57 = vld [vmem:[#allocation6 + $0x11e0] ss:$24 sps:$4 sm:$0xff]   ;;  %v12139_v60 = vld [vmem:[#allocation6 + $0xeb4] ss:$24 sps:$4 sm:$0xff]  }
 0x3b2   :  { %6203 = vmatpush2.bf16.msra.mxu0 %v12071_v56  ;;  %v12142_v56 = vld [vmem:[#allocation6 + $0x11b4] ss:$24 sps:$4 sm:$0xff]  }
 0x3b3   :  { %6244 = vmatpush2.bf16.msra.mxu1 %v12074_v63  ;;  %6204 = vmatprep.subr.bf16.mxu0 %v12079_v42  ;;  %v12137_v63 = vld [vmem:[#allocation6 + $0xeb0] ss:$24 sps:$4 sm:$0xff]  }
 0x3b4   :  { %6245 = vmatprep.subr.bf16.mxu1 %v12082_v8  ;;  %v12140_v42 = vld [vmem:[#allocation6 + $0x11b0] ss:$24 sps:$4 sm:$0xff]   ;;  %v12145_v8 = vld [vmem:[#allocation6 + $0xe84] ss:$24 sps:$4 sm:$0xff]  }
 0x3b6   :  { %6205 = vmatpush2.bf16.msra.mxu0 %v12077_v30  ;;  %v12148_v30 = vld [vmem:[#allocation6 + $0x1184] ss:$24 sps:$4 sm:$0xff]  }
 0x3b7   :  { %6246 = vmatpush2.bf16.msra.mxu1 %v12080_v50  ;;  %6256 = vmatprep.subr.bf16.mxu0 %v12085_v3  ;;  %v12143_v50 = vld [vmem:[#allocation6 + $0xe80] ss:$24 sps:$4 sm:$0xff]  }
 0x3b8   :  { %6297 = vmatprep.subr.bf16.mxu1 %v12088_v2  ;;  %v12146_v3 = vld [vmem:[#allocation6 + $0x1180] ss:$24 sps:$4 sm:$0xff]   ;;  %v12151_v2 = vld [vmem:[#allocation6 + $0xe54] ss:$24 sps:$4 sm:$0xff]  }
 0x3b9   :  { %v13011_v7 = vpop.f32.mrf.mxu0  ;;  %6207 = vmatmul.mubr.bf16.vlgmr.msra.gmra.mxu0 %v12905_v54  ;;  %v12100_v54 = vld [vmem:[#allocation6 + $0x1004] ss:$24 sps:$4 sm:$0xff]  }
 0x3ba   :  { %v13014_v11 = vpop.f32.mrf.mxu1  ;;  %6248 = vmatmul.mubr.bf16.vlgmr.msra.gmra.mxu1 %v12903_v61  ;;  %6257 = vmatpush1.bf16.msra.mxu0 %v12083_v52  ;;  %v12095_v61 = vld [vmem:[#allocation6 + $0xd00] ss:$24 sps:$4 sm:$0xff]   ;;  %v12154_v52 = vld [vmem:[#allocation6 + $0x1154] ss:$24 sps:$4 sm:$0xff]  }
 0x3bb   :  { %6288 = vmatprep.mubr.bf16.mxu0 %v12907_v62  ;;  %6298 = vmatpush1.bf16.msra.mxu1 %v12086_v9  ;;  %v13018_v13 = vpop.f32.mrf.mxu0  ;;  %v12098_v62 = vld [vmem:[#allocation6 + $0x1000] ss:$24 sps:$4 sm:$0xff]   ;;  %v12149_v9 = vld [vmem:[#allocation6 + $0xe50] ss:$24 sps:$4 sm:$0xff]  }
 0x3bc   :  { %6329 = vmatprep.mubr.bf16.mxu1 %v12910_v4  ;;  %v13021_v25 = vpop.f32.mrf.mxu1  ;;  %6258 = vmatprep.subr.bf16.mxu0 %v12091_v5  ;;  %v12104_v4 = vld [vmem:[#allocation6 + $0xfd0] ss:$24 sps:$4 sm:$0xff]  }
 0x3bd   :  { %v5966_v19 = vpop.f32.mrf.mxu0  ;;  %6299 = vmatprep.subr.bf16.mxu1 %v12094_v10  ;;  %v12152_v5 = vld [vmem:[#allocation6 + $0x1150] ss:$24 sps:$4 sm:$0xff]   ;;  %v12157_v10 = vld [vmem:[#allocation6 + $0xe24] ss:$24 sps:$4 sm:$0xff]  }
 0x3be   :  { %v6007_v26 = vpop.f32.mrf.mxu1  ;;  %6259 = vmatpush1.bf16.msra.mxu0 %v12089_v15  ;;  %v12160_v15 = vld [vmem:[#allocation6 + $0x1124] ss:$24 sps:$4 sm:$0xff]   ;;  %v12166_v19 = vld [vmem:[#allocation6 + $0x10f4] ss:$24 sps:$4 sm:$0xff]  }
 0x3bf   :  { %6300 = vmatpush1.bf16.msra.mxu1 %v12092_v12  ;;  %v5967_v16 = vpop.f32.mrf.mxu0  ;;  %6260 = vmatprep.subr.bf16.mxu0 %v12097_v21  ;;  %v12155_v12 = vld [vmem:[#allocation6 + $0xe20] ss:$24 sps:$4 sm:$0xff]   ;;  %v12161_v26 = vld [vmem:[#allocation6 + $0xdf0] ss:$24 sps:$4 sm:$0xff]  }
 0x3c0   :  { %v6008_v28 = vpop.f32.mrf.mxu1  ;;  %6301 = vmatprep.subr.bf16.mxu1 %v12100_v54  ;;  %v12158_v21 = vld [vmem:[#allocation6 + $0x1120] ss:$24 sps:$4 sm:$0xff]   ;;  %v12163_v54 = vld [vmem:[#allocation6 + $0xdf4] ss:$24 sps:$4 sm:$0xff]   ;;  %v12169_v16 = vld [vmem:[#allocation6 + $0xdc4] ss:$24 sps:$4 sm:$0xff]  }
 0x3c1   :  { %v12170_v28 = vld [vmem:[#allocation6 + $0x10c0] ss:$24 sps:$4 sm:$0xff]  }
 0x3c2   :  { %6261 = vmatpush1.bf16.msra.mxu0 %v12095_v61  ;;  %v12164_v61 = vld [vmem:[#allocation6 + $0x10f0] ss:$24 sps:$4 sm:$0xff]  }
 0x3c3   :  { %6302 = vmatpush1.bf16.msra.mxu1 %v12098_v62  ;;  %6262 = vmatprep.subr.bf16.mxu0 %v12103_v22  ;;  %v12172_v62 = vld [vmem:[#allocation6 + $0x10c4] ss:$24 sps:$4 sm:$0xff]   ;;  %v12167_v22 = vld [vmem:[#allocation6 + $0xdc0] ss:$24 sps:$4 sm:$0xff]  }
 0x3c4   :  { %6303 = vmatprep.subr.bf16.mxu1 %v12106_v31  ;;  %v12175_v31 = vld [vmem:[#allocation6 + $0xd94] ss:$24 sps:$4 sm:$0xff]  }
 0x3c6   :  { %6263 = vmatpush1.bf16.msra.mxu0 %v12101_v32  ;;  %v12178_v32 = vld [vmem:[#allocation6 + $0x1094] ss:$24 sps:$4 sm:$0xff]  }
 0x3c7   :  { %6304 = vmatpush1.bf16.msra.mxu1 %v12104_v4  ;;  %6264 = vmatprep.subr.bf16.mxu0 %v12109_v59  ;;  %v12173_v4 = vld [vmem:[#allocation6 + $0xd90] ss:$24 sps:$4 sm:$0xff]  }
 0x3c8   :  { %6305 = vmatprep.subr.bf16.mxu1 %v12112_v49  ;;  %v12176_v59 = vld [vmem:[#allocation6 + $0x1090] ss:$24 sps:$4 sm:$0xff]   ;;  %v12181_v49 = vld [vmem:[#allocation6 + $0x1364] ss:$24 sps:$4 sm:$0xff]  }
 0x3ca   :  { %6265 = vmatpush1.bf16.msra.mxu0 %v12107_v58  ;;  %v5963_v58 = vadd.f32 %v13011_v7, %v13005_v29 }
 0x3cb   :  { %6306 = vmatpush1.bf16.msra.mxu1 %v12110_v48  ;;  %6266 = vmatprep.subr.bf16.mxu0 %v12115_v33  ;;  %v12184_v48 = vld [vmem:[#allocation6 + $0x1664] ss:$24 sps:$4 sm:$0xff]   ;;  %v5965_v33 = vadd.f32 %v13018_v13, %v13009_v14  ;;  %v12185_v14 = vld [vmem:[#allocation6 + $0x1330] ss:$24 sps:$4 sm:$0xff]  }
 0x3cc   :  { %6307 = vmatprep.subr.bf16.mxu1 %v12118_v51  ;;  %v12179_v51 = vld [vmem:[#allocation6 + $0x1360] ss:$24 sps:$4 sm:$0xff]  }
 0x3cd   :  { %v6006_v29 = vadd.f32 %v13021_v25, %v5965_v33  ;;  %v12239_v33 = vld [vmem:[#allocation6 + $0x1480] ss:$24 sps:$4 sm:$0xff]  }
 0x3ce   :  { %6267 = vmatpush1.bf16.msra.mxu0 %v12113_v34  ;;  %v12182_v34 = vld [vmem:[#allocation6 + $0x1660] ss:$24 sps:$4 sm:$0xff]  }
 0x3cf   :  { %6308 = vmatpush1.bf16.msra.mxu1 %v12116_v43  ;;  %6268 = vmatprep.subr.bf16.mxu0 %v12121_v36  ;;  %v6004_v43 = vadd.f32 %v13014_v11, %v5963_v58  ;;  %v12187_v36 = vld [vmem:[#allocation6 + $0x1334] ss:$24 sps:$4 sm:$0xff]   ;;  %v12193_v11 = vld [vmem:[#allocation6 + $0x1304] ss:$24 sps:$4 sm:$0xff]  }
 0x3d0   :  { %6309 = vmatprep.subr.bf16.mxu1 %v12124_v35  ;;  %v12241_v58 = vld [vmem:[#allocation6 + $0x1484] ss:$24 sps:$4 sm:$0xff]  }
 0x3d2   :  { %6269 = vmatpush1.bf16.msra.mxu0 %v12119_v39  ;;  %v12190_v39 = vld [vmem:[#allocation6 + $0x1634] ss:$24 sps:$4 sm:$0xff]  }
 0x3d3   :  { %6310 = vmatpush1.bf16.msra.mxu1 %v12122_v24  ;;  %6270 = vmatprep.subr.bf16.mxu0 %v12127_v44  ;;  %v12188_v44 = vld [vmem:[#allocation6 + $0x1630] ss:$24 sps:$4 sm:$0xff]  }
 0x3d4   :  { %6311 = vmatprep.subr.bf16.mxu1 %v12130_v18 }
 0x3d6   :  { %6271 = vmatpush1.bf16.msra.mxu0 %v12125_v20 }
 0x3d7   :  { %6312 = vmatpush1.bf16.msra.mxu1 %v12128_v47  ;;  %6272 = vmatprep.subr.bf16.mxu0 %v12133_v45  ;;  %v12196_v47 = vld [vmem:[#allocation6 + $0x1604] ss:$24 sps:$4 sm:$0xff]  }
 0x3d8   :  { %6313 = vmatprep.subr.bf16.mxu1 %v12136_v53 }
 0x3da   :  { %6273 = vmatpush2.bf16.msra.mxu0 %v12131_v38  ;;  %v12191_v38 = vld [vmem:[#allocation6 + $0x1300] ss:$24 sps:$4 sm:$0xff]  }
 0x3db   :  { %6314 = vmatpush2.bf16.msra.mxu1 %v12134_v57  ;;  %6274 = vmatprep.subr.bf16.mxu0 %v12139_v60  ;;  %v12194_v57 = vld [vmem:[#allocation6 + $0x1600] ss:$24 sps:$4 sm:$0xff]   ;;  %v12199_v60 = vld [vmem:[#allocation6 + $0x12d4] ss:$24 sps:$4 sm:$0xff]  }
 0x3dc   :  { %6315 = vmatprep.subr.bf16.mxu1 %v12142_v56 }
 0x3de   :  { %6275 = vmatpush2.bf16.msra.mxu0 %v12137_v63 }
 0x3df   :  { %6316 = vmatpush2.bf16.msra.mxu1 %v12140_v42  ;;  %6276 = vmatprep.subr.bf16.mxu0 %v12145_v8  ;;  %v12197_v42 = vld [vmem:[#allocation6 + $0x12d0] ss:$24 sps:$4 sm:$0xff]  }
 0x3e0   :  { %6317 = vmatprep.subr.bf16.mxu1 %v12148_v30  ;;  %v12200_v8 = vld [vmem:[#allocation6 + $0x15d0] ss:$24 sps:$4 sm:$0xff]   ;;  %v12205_v30 = vld [vmem:[#allocation6 + $0x12a4] ss:$24 sps:$4 sm:$0xff]  }
 0x3e2   :  { %6277 = vmatpush2.bf16.msra.mxu0 %v12143_v50  ;;  %v12208_v50 = vld [vmem:[#allocation6 + $0x15a4] ss:$24 sps:$4 sm:$0xff]  }
 0x3e3   :  { %6318 = vmatpush2.bf16.msra.mxu1 %v12146_v3  ;;  %6278 = vmatprep.subr.bf16.mxu0 %v12151_v2  ;;  %v12203_v3 = vld [vmem:[#allocation6 + $0x12a0] ss:$24 sps:$4 sm:$0xff]  }
 0x3e4   :  { %6319 = vmatprep.subr.bf16.mxu1 %v12154_v52  ;;  %v12206_v2 = vld [vmem:[#allocation6 + $0x15a0] ss:$24 sps:$4 sm:$0xff]   ;;  %v12211_v52 = vld [vmem:[#allocation6 + $0x1274] ss:$24 sps:$4 sm:$0xff]  }
 0x3e6   :  { %6279 = vmatpush2.bf16.msra.mxu0 %v12149_v9  ;;  %v12214_v9 = vld [vmem:[#allocation6 + $0x1574] ss:$24 sps:$4 sm:$0xff]  }
 0x3e7   :  { %6320 = vmatpush2.bf16.msra.mxu1 %v12152_v5  ;;  %6280 = vmatprep.subr.bf16.mxu0 %v12157_v10  ;;  %v12209_v5 = vld [vmem:[#allocation6 + $0x1270] ss:$24 sps:$4 sm:$0xff]  }
 0x3e8   :  { %6321 = vmatprep.subr.bf16.mxu1 %v12160_v15  ;;  %v12212_v10 = vld [vmem:[#allocation6 + $0x1570] ss:$24 sps:$4 sm:$0xff]   ;;  %v12217_v15 = vld [vmem:[#allocation6 + $0x1244] ss:$24 sps:$4 sm:$0xff]  }
 0x3ea   :  { %6281 = vmatpush2.bf16.msra.mxu0 %v12155_v12  ;;  %v12220_v12 = vld [vmem:[#allocation6 + $0x1544] ss:$24 sps:$4 sm:$0xff]  }
 0x3eb   :  { %6322 = vmatpush2.bf16.msra.mxu1 %v12158_v21  ;;  %6282 = vmatprep.subr.bf16.mxu0 %v12163_v54  ;;  %v12215_v21 = vld [vmem:[#allocation6 + $0x1240] ss:$24 sps:$4 sm:$0xff]  }
 0x3ec   :  { %6323 = vmatprep.subr.bf16.mxu1 %v12166_v19  ;;  %v12218_v54 = vld [vmem:[#allocation6 + $0x1540] ss:$24 sps:$4 sm:$0xff]   ;;  %v12223_v19 = vld [vmem:[#allocation6 + $0x1214] ss:$24 sps:$4 sm:$0xff]  }
 0x3ee   :  { %6283 = vmatpush2.bf16.msra.mxu0 %v12161_v26  ;;  %v12226_v26 = vld [vmem:[#allocation6 + $0x1514] ss:$24 sps:$4 sm:$0xff]  }
 0x3ef   :  { %6324 = vmatpush2.bf16.msra.mxu1 %v12164_v61  ;;  %6284 = vmatprep.subr.bf16.mxu0 %v12169_v16  ;;  %v12221_v61 = vld [vmem:[#allocation6 + $0x1210] ss:$24 sps:$4 sm:$0xff]  }
 0x3f0   :  { %6325 = vmatprep.subr.bf16.mxu1 %v12172_v62  ;;  %v12224_v16 = vld [vmem:[#allocation6 + $0x1510] ss:$24 sps:$4 sm:$0xff]   ;;  %v12229_v62 = vld [vmem:[#allocation6 + $0x14e4] ss:$24 sps:$4 sm:$0xff]  }
 0x3f2   :  { %6285 = vmatpush2.bf16.msra.mxu0 %v12167_v22  ;;  %v12232_v22 = vld [vmem:[#allocation6 + $0x17e4] ss:$24 sps:$4 sm:$0xff]  }
 0x3f3   :  { %6326 = vmatpush2.bf16.msra.mxu1 %v12170_v28  ;;  %6286 = vmatprep.subr.bf16.mxu0 %v12175_v31  ;;  %v12227_v28 = vld [vmem:[#allocation6 + $0x14e0] ss:$24 sps:$4 sm:$0xff]  }
 0x3f4   :  { %6327 = vmatprep.subr.bf16.mxu1 %v12178_v32  ;;  %v12230_v31 = vld [vmem:[#allocation6 + $0x17e0] ss:$24 sps:$4 sm:$0xff]   ;;  %v12235_v32 = vld [vmem:[#allocation6 + $0x14b4] ss:$24 sps:$4 sm:$0xff]  }
 0x3f6   :  { %6287 = vmatpush2.bf16.msra.mxu0 %v12173_v4  ;;  %v12238_v4 = vld [vmem:[#allocation6 + $0x17b4] ss:$24 sps:$4 sm:$0xff]  }
 0x3f7   :  { %6328 = vmatpush2.bf16.msra.mxu1 %v12176_v59  ;;  %6338 = vmatprep.subr.bf16.mxu0 %v12181_v49  ;;  %v12233_v59 = vld [vmem:[#allocation6 + $0x14b0] ss:$24 sps:$4 sm:$0xff]  }
 0x3f8   :  { %6379 = vmatprep.subr.bf16.mxu1 %v12184_v48  ;;  %v12236_v49 = vld [vmem:[#allocation6 + $0x17b0] ss:$24 sps:$4 sm:$0xff]   ;;  %v12244_v48 = vld [vmem:[#allocation6 + $0x1784] ss:$24 sps:$4 sm:$0xff]  }
 0x3f9   :  { %v6044_v35 = vpop.f32.mrf.mxu0  ;;  %6289 = vmatmul.mubr.bf16.vlgmr.msra.gmra.mxu0 %v12925_v40 }
 0x3fa   :  { %v6045_v7 = vadd.f32 %v6044_v35, %v6004_v43  ;;  %v6085_v24 = vpop.f32.mrf.mxu1  ;;  %6330 = vmatmul.mubr.bf16.vlgmr.msra.gmra.mxu1 %v12923_v37  ;;  %6339 = vmatpush1.bf16.msra.mxu0 %v12179_v51  ;;  %v12242_v51 = vld [vmem:[#allocation6 + $0x1780] ss:$24 sps:$4 sm:$0xff]   ;;  %v12250_v43 = vld [vmem:[#allocation6 + $0x1754] ss:$24 sps:$4 sm:$0xff]   ;;  %v12248_v35 = vld [vmem:[#allocation6 + $0x1750] ss:$24 sps:$4 sm:$0xff]  }
 0x3fb   :  { %6370 = vmatprep.mubr.bf16.mxu0 %v12927_v41  ;;  %6380 = vmatpush1.bf16.msra.mxu1 %v12182_v34  ;;  %v6046_v13 = vpop.f32.mrf.mxu0  ;;  %v12247_v34 = vld [vmem:[#allocation6 + $0x1454] ss:$24 sps:$4 sm:$0xff]  }
 0x3fc   :  { %v6086_v18 = vadd.f32 %v6085_v24, %v6045_v7  ;;  %6411 = vmatprep.mubr.bf16.mxu1 %v12929_v23  ;;  %v6047_v20 = vadd.f32 %v6046_v13, %v6006_v29  ;;  %v6087_v40 = vpop.f32.mrf.mxu1  ;;  %6340 = vmatprep.subr.bf16.mxu0 %v12187_v36  ;;  %v12202_v23 = vld [vmem:[#allocation6 + $0x15d4] ss:$24 sps:$4 sm:$0xff]   ;;  %v12245_v36 = vld [vmem:[#allocation6 + $0x1450] ss:$24 sps:$4 sm:$0xff]   ;;  %v12256_v29 = vld [vmem:[#allocation6 + $0x1724] ss:$24 sps:$4 sm:$0xff]  }
 0x3fd   :  { %v6048_v25 = vpop.f32.mrf.mxu0  ;;  %6381 = vmatprep.subr.bf16.mxu1 %v12190_v39  ;;  %v12253_v39 = vld [vmem:[#allocation6 + $0x1424] ss:$24 sps:$4 sm:$0xff]   ;;  %v12251_v7 = vld [vmem:[#allocation6 + $0x1420] ss:$24 sps:$4 sm:$0xff]   ;;  %v12262_v13 = vld [vmem:[#allocation6 + $0x16f4] ss:$24 sps:$4 sm:$0xff]  }
 0x3fe   :  { %v13033_v45 = vmax.f32 %v6086_v18, 0.0  ;;  %v6088_v37 = vadd.f32 %v6087_v40, %v6047_v20  ;;  %v6089_v53 = vpop.f32.mrf.mxu1  ;;  %6341 = vmatpush1.bf16.msra.mxu0 %v12185_v14  ;;  %v12254_v24 = vld [vmem:[#allocation6 + $0x1720] ss:$24 sps:$4 sm:$0xff]   ;;  %v12259_v14 = vld [vmem:[#allocation6 + $0x13f4] ss:$24 sps:$4 sm:$0xff]  }
 0x3ff   :  { %6382 = vmatpush1.bf16.msra.mxu1 %v12188_v44  ;;  %v6049_v41 = vpop.f32.mrf.mxu0  ;;  %6342 = vmatprep.subr.bf16.mxu0 %v12193_v11  ;;  %v12257_v44 = vld [vmem:[#allocation6 + $0x13f0] ss:$24 sps:$4 sm:$0xff]   ;;  %v12265_v18 = vld [vmem:[#allocation6 + $0x13c4] ss:$24 sps:$4 sm:$0xff]   ;;  %v12263_v40 = vld [vmem:[#allocation6 + $0x13c0] ss:$24 sps:$4 sm:$0xff]  }
 0x400   :  { %v6090_v56 = vpop.f32.mrf.mxu1  ;;  %6435 = vrot.lane.b32.xlu1 %v13033_v45, %s12602_s2  ;;  %6383 = vmatprep.subr.bf16.mxu1 %v12196_v47  ;;  %v13037_v63 = vmax.f32 %v6088_v37, 0.0  ;;  %v12260_v11 = vld [vmem:[#allocation6 + $0x16f0] ss:$24 sps:$4 sm:$0xff]   ;;  %v12268_v20 = vld [vmem:[#allocation6 + $0x16c4] ss:$24 sps:$4 sm:$0xff]  }
 0x401   :  { %v12266_v47 = vld [vmem:[#allocation6 + $0x16c0] ss:$24 sps:$4 sm:$0xff]   ;;  %v12271_v25 = vld [vmem:[#allocation6 + $0x1394] ss:$24 sps:$4 sm:$0xff]   ;;  %v12269_v53 = vld [vmem:[#allocation6 + $0x1390] ss:$24 sps:$4 sm:$0xff]  }
 0x402   :  { %6343 = vmatpush1.bf16.msra.mxu0 %v12191_v38  ;;  %v12274_v37 = vld [vmem:[#allocation6 + $0x1694] ss:$24 sps:$4 sm:$0xff]   ;;  %v12272_v38 = vld [vmem:[#allocation6 + $0x1690] ss:$24 sps:$4 sm:$0xff]   ;;  %v12324_v41 = vld [vmem:[#allocation7] sm:$0x3f] }
 0x403   :  { %6384 = vmatpush1.bf16.msra.mxu1 %v12194_v57  ;;  %6344 = vmatprep.subr.bf16.mxu0 %v12199_v60  ;;  %v1585_v57 = vrot.slane %v12324_v41, %v12865_v55  ;;  %v12275_v60 = vld [vmem:[%s13993_s5 + $0x38] sm:$0xff]   ;;  %v12620_v56 = vmov 0.0  }
 0x404   :  { %6439 = vrot.lane.b32.xlu1 %v13037_v63, %s12602_s2  ;;  %6385 = vmatprep.subr.bf16.mxu1 %v12202_v23  ;;  %v12276_v23 = vld [vmem:[%s13993_s5 + $0x18] sm:$0xff]  }
 0x406   :  { %6345 = vmatpush1.bf16.msra.mxu0 %v12197_v42  ;;  %v1589_v42 = vrot.slane %v12324_v41, %v12828_v1  ;;  %v12278_v1 = vld [vmem:[%s13993_s5 + $0x10] sm:$0xff]  }
 0x407   :  { %6386 = vmatpush1.bf16.msra.mxu1 %v12200_v8  ;;  %6346 = vmatprep.subr.bf16.mxu0 %v12205_v30  ;;  %v12284_v41 = vld [vmem:[%s13993_s5 + $0x50] sm:$0xff]  }
 0x408   :  { %6387 = vmatprep.subr.bf16.mxu1 %v12208_v50  ;;  %v12277_v50 = vld [vmem:[%s13993_s5 + $0x30] sm:$0xff]  }
 0x40a   :  { %6347 = vmatpush1.bf16.msra.mxu0 %v12203_v3 }
 0x40b   :  { %6388 = vmatpush1.bf16.msra.mxu1 %v12206_v2  ;;  %6348 = vmatprep.subr.bf16.mxu0 %v12211_v52 }
 0x40c   :  { %6389 = vmatprep.subr.bf16.mxu1 %v12214_v9 }
 0x40e   :  { %6349 = vmatpush1.bf16.msra.mxu0 %v12209_v5 }
 0x40f   :  { %6390 = vmatpush1.bf16.msra.mxu1 %v12212_v10  ;;  %6350 = vmatprep.subr.bf16.mxu0 %v12217_v15  ;;  %v12279_v10 = vld [vmem:[%s13993_s5 + $0x28] sm:$0xff]  }
 0x410   :  { %6391 = vmatprep.subr.bf16.mxu1 %v12220_v12  ;;  %v12280_v12 = vld [vmem:[%s13993_s5 + $0x8] sm:$0xff]  }
 0x412   :  { %6351 = vmatpush1.bf16.msra.mxu0 %v12215_v21 }
 0x413   :  { %6392 = vmatpush1.bf16.msra.mxu1 %v12218_v54  ;;  %6352 = vmatprep.subr.bf16.mxu0 %v12223_v19  ;;  %v12281_v54 = vld [vmem:[%s13993_s5 + $0x20] sm:$0xff]   ;;  %v6450_v19 = vpack.c.bf16 %v12983_v17, %v12983_v17 }
 0x414   :  { %6393 = vmatprep.subr.bf16.mxu1 %v12226_v26  ;;  %v12282_v26 = vld [vmem:[%s13993_s5] sm:$0xff]  }
 0x416   :  { %6353 = vmatpush1.bf16.msra.mxu0 %v12221_v61  ;;  %v13085_v61 = vcombine.low %v12619_v0, %v12619_v0 }
 0x417   :  { %6394 = vmatpush1.bf16.msra.mxu1 %v12224_v16  ;;  %6354 = vmatprep.subr.bf16.mxu0 %v12229_v62  ;;  %v10079_v16 = vcombine.low %v12619_v0, %v6450_v19  ;;  %v13096_v62 = vpop.permute.xlu0 %6427 }
 0x418   :  { %6395 = vmatprep.subr.bf16.mxu1 %v12232_v22  ;;  %v10377_v22 = vpack.c.bf16 %v12987_v46, %v13096_v62 }
 0x41a   :  { %6355 = vmatpush2.bf16.msra.mxu0 %v12227_v28  ;;  %v13102_v28 = vpack.c.bf16 %v13096_v62, %v12983_v17 }
 0x41b   :  { %6396 = vmatpush2.bf16.msra.mxu1 %v12230_v31  ;;  %6356 = vmatprep.subr.bf16.mxu0 %v12235_v32  ;;  %v13111_v31 = vpop.permute.xlu0 %6431 }
 0x41c   :  { %6397 = vmatprep.subr.bf16.mxu1 %v12238_v4  ;;  %v10378_v32 = vpack.c.bf16 %v13033_v45, %v13111_v31  ;;  %v13117_v4 = vpack.c.bf16 %v13111_v31, %v12987_v46 }
 0x41e   :  { %6357 = vmatpush2.bf16.msra.mxu0 %v12233_v59 }
 0x41f   :  { %6398 = vmatpush2.bf16.msra.mxu1 %v12236_v49  ;;  %6358 = vmatprep.subr.bf16.mxu0 %v12241_v58 }
 0x420   :  { %6399 = vmatprep.subr.bf16.mxu1 %v12244_v48 }
 0x422   :  { %6359 = vmatpush2.bf16.msra.mxu0 %v12239_v33 }
 0x423   :  { %6400 = vmatpush2.bf16.msra.mxu1 %v12242_v51  ;;  %6360 = vmatprep.subr.bf16.mxu0 %v12247_v34 }
 0x424   :  { %6401 = vmatprep.subr.bf16.mxu1 %v12250_v43 }
 0x426   :  { %6361 = vmatpush2.bf16.msra.mxu0 %v12245_v36 }
 0x427   :  { %6402 = vmatpush2.bf16.msra.mxu1 %v12248_v35  ;;  %6362 = vmatprep.subr.bf16.mxu0 %v12253_v39 }
 0x428   :  { %6403 = vmatprep.subr.bf16.mxu1 %v12256_v29 }
 0x42a   :  { %6363 = vmatpush2.bf16.msra.mxu0 %v12251_v7 }
 0x42b   :  { %6404 = vmatpush2.bf16.msra.mxu1 %v12254_v24  ;;  %6364 = vmatprep.subr.bf16.mxu0 %v12259_v14 }
 0x42c   :  { %6405 = vmatprep.subr.bf16.mxu1 %v12262_v13 }
 0x42e   :  { %6365 = vmatpush2.bf16.msra.mxu0 %v12257_v44 }
 0x42f   :  { %6406 = vmatpush2.bf16.msra.mxu1 %v12260_v11  ;;  %6366 = vmatprep.subr.bf16.mxu0 %v12265_v18 }
 0x430   :  { %6407 = vmatprep.subr.bf16.mxu1 %v12268_v20 }
 0x432   :  { %6367 = vmatpush2.bf16.msra.mxu0 %v12263_v40 }
 0x433   :  { %6408 = vmatpush2.bf16.msra.mxu1 %v12266_v47  ;;  %6368 = vmatprep.subr.bf16.mxu0 %v12271_v25 }
 0x434   :  { %6409 = vmatprep.subr.bf16.mxu1 %v12274_v37 }
 0x436   :  { %6369 = vmatpush2.bf16.msra.mxu0 %v12269_v53 }
 0x437   :  { %6410 = vmatpush2.bf16.msra.mxu1 %v12272_v38  ;;  %10623 = vmatprep.subr.bf16.mxu0 %v12620_v56  ;;  %v12283_v38 = vld [vmem:[%s13993_s5 + $0x58] sm:$0xff]  }
 0x438   :  { %10659 = vmatprep.subr.bf16.mxu1 %v12620_v56 }
 0x439   :  { %v6126_v8 = vpop.f32.mrf.mxu0  ;;  %6371 = vmatmul.mubr.bf16.vlgmr.msra.gmra.mxu0 %v12938_v27 }
 0x43a   :  { %v6127_v55 = vadd.f32 %v6126_v8, %v1585_v57  ;;  %v6167_v30 = vpop.f32.mrf.mxu1  ;;  %6412 = vmatmul.mubr.bf16.vlgmr.msra.gmra.mxu1 %v12940_v6  ;;  %10624 = vmatpush3.bf16.msra.mxu0 %v12275_v60  ;;  %v12285_v57 = vld [vmem:[%s13993_s5 + $0x48] sm:$0xff]  }
 0x43b   :  { %10660 = vmatpush3.bf16.msra.mxu1 %v12276_v23  ;;  %v6128_v3 = vpop.f32.mrf.mxu0  ;;  %10625 = vmatprep.subr.bf16.mxu0 %v12620_v56 }
 0x43c   :  { %v6168_v2 = vadd.f32 %v6167_v30, %v6127_v55  ;;  %v6129_v52 = vadd.f32 %v6128_v3, %v1589_v42  ;;  %v6169_v27 = vpop.f32.mrf.mxu1  ;;  %10661 = vmatprep.subr.bf16.mxu1 %v12620_v56  ;;  %10631 = vmatprep.mubr.msk.bf16.mxu0 %vm12621_vm2, %v12620_v56  ;;  %v12286_v42 = vld [vmem:[%s13993_s5 + $0x40] sm:$0xff]  }
 0x43d   :  { %v6130_v6 = vpop.f32.mrf.mxu0  ;;  %10667 = vmatprep.mubr.msk.bf16.mxu1 %vm12621_vm2, %v12620_v56 }
 0x43e   :  { %v6170_v9 = vadd.f32 %v6169_v27, %v6129_v52  ;;  %v6171_v5 = vpop.f32.mrf.mxu1  ;;  %10626 = vmatpush3.bf16.msra.mxu0 %v12277_v50 }
 0x43f   :  { %10662 = vmatpush3.bf16.msra.mxu1 %v12278_v1  ;;  %v6131_v15 = vpop.f32.mrf.mxu0  ;;  %10627 = vmatprep.subr.bf16.mxu0 %v12620_v56 }
 0x440   :  { %v6172_v21 = vpop.f32.mrf.mxu1  ;;  %10663 = vmatprep.subr.bf16.mxu1 %v12620_v56 }
 0x442   :  { %10628 = vmatpush3.bf16.msra.mxu0 %v12279_v10 }
 0x443   :  { %10664 = vmatpush3.bf16.msra.mxu1 %v12280_v12  ;;  %10629 = vmatprep.subr.bf16.mxu0 %v12620_v56 }
 0x444   :  { %10665 = vmatprep.subr.bf16.mxu1 %v12620_v56 }
 0x446   :  { %10630 = vmatpush3.bf16.msra.mxu0 %v12281_v54 }
 0x447   :  { %10666 = vmatpush3.bf16.msra.mxu1 %v12282_v26  ;;  %10695 = vmatprep.subr.bf16.mxu0 %v12620_v56 }
 0x449   :  { %10632 = vmatmul.mubr.msk.bf16.vlgmr.msra.gmra.mxu0 %vm6536_vm3, %v10079_v16 }
 0x44a   :  { %10668 = vmatmul.mubr.msk.bf16.vlgmr.msra.gmra.mxu1 %vm6536_vm3, %v13085_v61  ;;  %10635 = vmatprep.mubr.msk.bf16.mxu0 %vm12621_vm2, %v12620_v56 }
 0x44b   :  { %10671 = vmatprep.mubr.msk.bf16.mxu1 %vm12621_vm2, %v12620_v56  ;;  %10696 = vmatpush3.bf16.msra.mxu0 %v12283_v38 }
 0x44c   :  { %10697 = vmatprep.subr.bf16.mxu0 %v12620_v56 }
 0x44f   :  { %10698 = vmatpush3.bf16.msra.mxu0 %v12284_v41 }
 0x450   :  { %10699 = vmatprep.subr.bf16.mxu0 %v12620_v56 }
 0x451   :  { %10636 = vmatmul.mubr.msk.bf16.gmra.mxu0 %vm6536_vm3, %v10377_v22 }
 0x452   :  { %10672 = vmatmul.mubr.msk.bf16.gmra.mxu1 %vm6536_vm3, %v13102_v28  ;;  %10639 = vmatprep.mubr.msk.bf16.mxu0 %vm12621_vm2, %v12620_v56 }
 0x453   :  { %10675 = vmatprep.mubr.msk.bf16.mxu1 %vm12621_vm2, %v12620_v56  ;;  %10700 = vmatpush3.bf16.msra.mxu0 %v12285_v57 }
 0x454   :  { %10701 = vmatprep.subr.bf16.mxu0 %v12620_v56 }
 0x457   :  { %10702 = vmatpush3.bf16.msra.mxu0 %v12286_v42 }
 0x458   :  { %10779 = vmatprep.subr.bf16.mxu0 %v12620_v56 }
 0x459   :  { %10640 = vmatmul.mubr.msk.bf16.gmra.mxu0 %vm6536_vm3, %v10378_v32 }
 0x45a   :  { %10676 = vmatmul.mubr.msk.bf16.gmra.mxu1 %vm6536_vm3, %v13117_v4  ;;  %10643 = vmatprep.mubr.msk.bf16.mxu0 %vm12621_vm2, %v12620_v56 }
 0x45b   :  { %10679 = vmatprep.mubr.msk.bf16.mxu1 %vm12621_vm2, %v12620_v56 }
 0x472   :  { %v13126_v59 = vpop.permute.xlu1 %6435 }
 0x473   :  { %v10379_v49 = vpack.c.bf16 %v13037_v63, %v13126_v59  ;;  %v13132_v58 = vpack.c.bf16 %v13126_v59, %v13033_v45 }
 0x475   :  { %10644 = vmatmul.mubr.msk.bf16.gmra.mxu0 %vm6536_vm3, %v10379_v49  ;;  %10680 = vmatmul.mubr.msk.bf16.gmra.mxu1 %vm6536_vm3, %v13132_v58 }
 0x476   :  { %10683 = vmatprep.mubr.msk.bf16.mxu1 %vm12621_vm2, %v12620_v56  ;;  %10647 = vmatprep.mubr.msk.bf16.mxu0 %vm12621_vm2, %v12620_v56  ;;  %v13141_v48 = vpop.permute.xlu1 %6439 }
 0x477   :  { %v13145_v43 = vpack.c.bf16 %v13141_v48, %v13037_v63 }
 0x479   :  { %v6208_v33 = vpop.f32.mrf.mxu0 }
 0x47a   :  { %v6209_v51 = vadd.f32 %v6208_v33, %v6168_v2  ;;  %v6249_v34 = vpop.f32.mrf.mxu1 }
 0x47b   :  { %v6210_v36 = vpop.f32.mrf.mxu0 }
 0x47c   :  { %v6250_v35 = vadd.f32 %v6249_v34, %v6209_v51  ;;  %v6211_v39 = vadd.f32 %v6210_v36, %v6170_v9  ;;  %v6251_v29 = vpop.f32.mrf.mxu1 }
 0x47d   :  { %v6212_v7 = vpop.f32.mrf.mxu0  ;;  %10684 = vmatmul.mubr.msk.bf16.gmra.mxu1 %vm6536_vm3, %v13145_v43 }
 0x47e   :  { %v6252_v24 = vadd.f32 %v6251_v29, %v6211_v39  ;;  %v6253_v14 = vpop.f32.mrf.mxu1  ;;  %10687 = vmatprep.mubr.msk.bf16.mxu1 %vm12621_vm2, %v12620_v56 }
 0x47f   :  { %v6213_v13 = vpop.f32.mrf.mxu0 }
 0x480   :  { %v6254_v44 = vpop.f32.mrf.mxu1 }
 0x4b9   :  { %v6290_v11 = vpop.f32.mrf.mxu0 }
 0x4ba   :  { %v6331_v18 = vpop.f32.mrf.mxu1  ;;  %v6291_v60 = vadd.f32 %v6290_v11, %v6250_v35 }
 0x4bb   :  { %v6292_v20 = vpop.f32.mrf.mxu0 }
 0x4bc   :  { %v6333_v40 = vpop.f32.mrf.mxu1  ;;  %v6293_v23 = vadd.f32 %v6292_v20, %v6252_v24  ;;  %v6332_v8 = vadd.f32 %v6331_v18, %v6291_v60 }
 0x4bd   :  { %v6294_v47 = vpop.f32.mrf.mxu0 }
 0x4be   :  { %v6335_v25 = vpop.f32.mrf.mxu1  ;;  %v6334_v30 = vadd.f32 %v6333_v40, %v6293_v23 }
 0x4bf   :  { %v6295_v37 = vpop.f32.mrf.mxu0 }
 0x4c0   :  { %v6336_v53 = vpop.f32.mrf.mxu1 }
 0x4f9   :  { %v6372_v55 = vpop.f32.mrf.mxu0 }
 0x4fa   :  { %v6373_v50 = vadd.f32 %v6372_v55, %v6332_v8  ;;  %v6413_v3 = vpop.f32.mrf.mxu1 }
 0x4fb   :  { %v6374_v1 = vpop.f32.mrf.mxu0 }
 0x4fc   :  { %v6414_v2 = vadd.f32 %v6413_v3, %v6373_v50  ;;  %v6375_v52 = vadd.f32 %v6374_v1, %v6334_v30  ;;  %v6415_v27 = vpop.f32.mrf.mxu1 }
 0x4fd   :  { %v6376_v6 = vpop.f32.mrf.mxu0 }
 0x4fe   :  { %v13167_v9 = vmax.f32 %v6414_v2, 0.0  ;;  %v6416_v5 = vadd.f32 %v6415_v27, %v6375_v52  ;;  %v6417_v10 = vpop.f32.mrf.mxu1 }
 0x4ff   :  { %v6377_v15 = vpop.f32.mrf.mxu0 }
 0x500   :  { %v13169_v12 = vmax.f32 %v6416_v5, 0.0  ;;  %v6418_v21 = vpop.f32.mrf.mxu1  ;;  %6443 = vrot.lane.b32.xlu0 %v13167_v9, %s12602_s2  ;;  %v10380_v54 = vpack.c.bf16 %v13167_v9, %v13141_v48  ;;  %v12287_v15 = vld [vmem:[#allocation10 + $0x18] sm:$0xff]  }
 0x501   :  { %10731 = vmatprep.subr.bf16.mxu1 %v12287_v15 }
 0x502   :  { %6447 = vrot.lane.b32.xlu1 %v13169_v12, %s12602_s2  ;;  %10648 = vmatmul.mubr.msk.bf16.gmra.mxu0 %vm6536_vm3, %v10380_v54 }
 0x503   :  { %10651 = vmatprep.mubr.msk.bf16.mxu0 %vm12621_vm2, %v12620_v56  ;;  %10732 = vmatpush3.bf16.msra.mxu1 %v12287_v15 }
 0x509   :  { %v6592_v19 = vpop.f32.mrf.mxu0 }
 0x50a   :  { %v6733_v26 = vpop.f32.mrf.mxu1 }
 0x50b   :  { %v13180_v16 = vadd.f32 %v6733_v26, %v6592_v19  ;;  %v10633_v22 = vpop.f32.mrf.mxu0 }
 0x50c   :  { %v10669_v32 = vpop.f32.mrf.mxu1 }
 0x50d   :  { %v6595_v49 = vpop.f32.mrf.mxu0 }
 0x50e   :  { %v6736_v33 = vpop.f32.mrf.mxu1 }
 0x50f   :  { %v13182_v51 = vadd.f32 %v6736_v33, %v6595_v49  ;;  %v10634_v34 = vpop.f32.mrf.mxu0  ;;  %v12288_v33 = vld [vmem:[#allocation10 + $0x10] sm:$0xff]  }
 0x510   :  { %v10670_v36 = vpop.f32.mrf.mxu1  ;;  %10733 = vmatprep.subr.bf16.mxu1 %v12288_v33  ;;  %v12289_v34 = vld [vmem:[#allocation10 + $0x8] sm:$0xff]  }
 0x511   :  { %v6600_v35 = vpop.f32.mrf.mxu0  ;;  %10734 = vmatpush3.bf16.msra.mxu1 %v12288_v33 }
 0x512   :  { %v6741_v39 = vpop.f32.mrf.mxu1  ;;  %10747 = vmatprep.subr.bf16.mxu1 %v12289_v34 }
 0x513   :  { %v13184_v29 = vadd.f32 %v6741_v39, %v6600_v35  ;;  %v10637_v7 = vpop.f32.mrf.mxu0 }
 0x514   :  { %v10673_v24 = vpop.f32.mrf.mxu1 }
 0x515   :  { %v6603_v14 = vpop.f32.mrf.mxu0 }
 0x516   :  { %v6744_v13 = vpop.f32.mrf.mxu1 }
 0x517   :  { %v13186_v44 = vadd.f32 %v6744_v13, %v6603_v14  ;;  %v10638_v11 = vpop.f32.mrf.mxu0 }
 0x518   :  { %v10674_v18 = vpop.f32.mrf.mxu1 }
 0x519   :  { %v6608_v20 = vpop.f32.mrf.mxu0 }
 0x51a   :  { %v6749_v40 = vpop.f32.mrf.mxu1 }
 0x51b   :  { %v13188_v47 = vadd.f32 %v6749_v40, %v6608_v20  ;;  %v10641_v25 = vpop.f32.mrf.mxu0 }
 0x51c   :  { %v10677_v37 = vpop.f32.mrf.mxu1 }
 0x51d   :  { %v6611_v53 = vpop.f32.mrf.mxu0 }
 0x51e   :  { %v6752_v38 = vpop.f32.mrf.mxu1 }
 0x51f   :  { %v13190_v41 = vadd.f32 %v6752_v38, %v6611_v53  ;;  %v10642_v57 = vpop.f32.mrf.mxu0 }
 0x520   :  { %v10678_v60 = vpop.f32.mrf.mxu1 }
 0x535   :  { %v6616_v23 = vpop.f32.mrf.mxu0  ;;  %v6757_v42 = vpop.f32.mrf.mxu1 }
 0x536   :  { %v13192_v8 = vadd.f32 %v6757_v42, %v6616_v23 }
 0x537   :  { %v10645_v55 = vpop.f32.mrf.mxu0  ;;  %v10681_v30 = vpop.f32.mrf.mxu1 }
 0x538   :  { %v13268_v30 = vld [vmem:[#allocation9] ss:$0 sm:$0xff] }
 0x539   :  { %v6619_v50 = vpop.f32.mrf.mxu0  ;;  %v6760_v3 = vpop.f32.mrf.mxu1 }
 0x53a   :  { %v13194_v1 = vadd.f32 %v6760_v3, %v6619_v50 }
 0x53b   :  { %v10646_v2 = vpop.f32.mrf.mxu0  ;;  %v10682_v52 = vpop.f32.mrf.mxu1 }
 0x53d   :  { %v13196_v27 = vpop.f32.mrf.mxu1 }
 0x53f   :  { %v10685_v6 = vpop.f32.mrf.mxu1 }
 0x541   :  { %v13198_v5 = vpop.f32.mrf.mxu1 }
 0x543   :  { %v10686_v10 = vpop.f32.mrf.mxu1 }
 0x572   :  { %v13200_v21 = vpop.permute.xlu0 %6443 }
 0x573   :  { %v10381_v54 = vpack.c.bf16 %v13169_v12, %v13200_v21  ;;  %v10386_v19 = vpack.c.bf16 %v13200_v21, %v13167_v9 }
 0x574   :  { %v13206_v26 = vpop.permute.xlu1 %6447 }
 0x575   :  { %10652 = vmatmul.mubr.msk.bf16.gmra.mxu0 %vm6536_vm3, %v10381_v54  ;;  %10688 = vmatmul.mubr.msk.bf16.gmra.mxu1 %vm6536_vm3, %v10386_v19  ;;  %v6461_v22 = vpack.c.bf16 %v13206_v26, %v13206_v26  ;;  %v10387_v49 = vpack.c.bf16 %v13206_v26, %v13169_v12 }
 0x576   :  { %10655 = vmatprep.mubr.msk.bf16.mxu0 %vm12621_vm2, %v12620_v56  ;;  %10691 = vmatprep.mubr.msk.bf16.mxu1 %vm12621_vm2, %v12620_v56 }
 0x577   :  { %v10085_v32 = vcombine.low %v6461_v22, %v12619_v0 }
 0x57d   :  { %10656 = vmatmul.mubr.msk.bf16.gmra.mxu0 %vm6536_vm3, %v10085_v32  ;;  %10692 = vmatmul.mubr.msk.bf16.gmra.mxu1 %vm6536_vm3, %v10387_v49 }
 0x57e   :  { %10703 = vmatprep.mubr.msk.bf16.mxu0 %vm12621_vm2, %v12620_v56 }
 0x585   :  { %10704 = vmatmul.mubr.msk.bf16.vlgmr.msra.gmra.mxu0 %vm6536_vm3, %v13102_v28 }
 0x586   :  { %10707 = vmatprep.mubr.msk.bf16.mxu0 %vm12621_vm2, %v12620_v56 }
 0x58d   :  { %10708 = vmatmul.mubr.msk.bf16.gmra.mxu0 %vm6536_vm3, %v13117_v4 }
 0x58e   :  { %10711 = vmatprep.mubr.msk.bf16.mxu0 %vm12621_vm2, %v12620_v56 }
 0x595   :  { %10712 = vmatmul.mubr.msk.bf16.gmra.mxu0 %vm6536_vm3, %v13132_v58 }
 0x596   :  { %10715 = vmatprep.mubr.msk.bf16.mxu0 %vm12621_vm2, %v12620_v56 }
 0x59d   :  { %10716 = vmatmul.mubr.msk.bf16.gmra.mxu0 %vm6536_vm3, %v13145_v43 }
 0x59e   :  { %10719 = vmatprep.mubr.msk.bf16.mxu0 %vm12621_vm2, %v12620_v56 }
 0x5a5   :  { %10720 = vmatmul.mubr.msk.bf16.gmra.mxu0 %vm6536_vm3, %v10386_v19 }
 0x5a6   :  { %10723 = vmatprep.mubr.msk.bf16.mxu0 %vm12621_vm2, %v12620_v56 }
 0x5ad   :  { %10724 = vmatmul.mubr.msk.bf16.gmra.mxu0 %vm6536_vm3, %v10387_v49 }
 0x5ae   :  { %10727 = vmatprep.mubr.msk.bf16.mxu0 %vm12621_vm2, %v12620_v56 }
 0x5b5   :  { %10728 = vmatmul.mubr.msk.bf16.gmra.mxu0 %vm6536_vm3, %v13085_v61 }
 0x5b6   :  { %10787 = vmatprep.mubr.msk.bf16.mxu0 %vm12621_vm2, %v12620_v56 }
 0x5c2   :  { %v13249_v28 = vpop.f32.mrf.mxu0 }
 0x5c4   :  { %v10649_v4 = vpop.f32.mrf.mxu0 }
 0x5c6   :  { %v13251_v58 = vpop.f32.mrf.mxu0 }
 0x5c8   :  { %v10650_v43 = vpop.f32.mrf.mxu0 }
 0x635   :  { %v13253_v36 = vpop.f32.mrf.mxu0  ;;  %v13255_v35 = vpop.f32.mrf.mxu1 }
 0x637   :  { %v10653_v39 = vpop.f32.mrf.mxu0  ;;  %v10689_v7 = vpop.f32.mrf.mxu1 }
 0x639   :  { %v13257_v24 = vpop.f32.mrf.mxu0  ;;  %v13259_v14 = vpop.f32.mrf.mxu1 }
 0x63b   :  { %v10654_v13 = vpop.f32.mrf.mxu0  ;;  %v10690_v11 = vpop.f32.mrf.mxu1 }
 0x63d   :  { %v13261_v18 = vpop.f32.mrf.mxu0  ;;  %v13263_v20 = vpop.f32.mrf.mxu1 }
 0x63f   :  { %v10657_v40 = vpop.f32.mrf.mxu0  ;;  %v10693_v25 = vpop.f32.mrf.mxu1 }
 0x640   :  { %v12290_v25 = vld [vmem:[#allocation10] sm:$0xff]  }
 0x641   :  { %v6643_v37 = vpop.f32.mrf.mxu0  ;;  %v6784_v53 = vpop.f32.mrf.mxu1 }
 0x642   :  { %v13265_v38 = vadd.f32 %v6784_v53, %v6643_v37 }
 0x643   :  { %v10658_v57 = vpop.f32.mrf.mxu0  ;;  %v10694_v60 = vpop.f32.mrf.mxu1 }
 0x645   :  { %v6855_v23 = vpop.f32.mrf.mxu0 }
 0x646   :  { %v6910_v55 = vadd.f32 %v6855_v23, %v13180_v16 }
 0x647   :  { %v10705_v42 = vpop.f32.mrf.mxu0 }
 0x648   :  { %v13272_v52 = vadd.f32 %v13268_v30, %v6910_v55 }
 0x649   :  { %v6858_v50 = vpop.f32.mrf.mxu0 }
 0x64a   :  { %v6911_v3 = vadd.f32 %v6858_v50, %v13182_v51 }
 0x64b   :  { %v10706_v2 = vpop.f32.mrf.mxu0 }
 0x64c   :  { %v13275_v6 = vadd.f32 %v13268_v30, %v6911_v3  ;;  %v6766_v2 = vadd.f32 %v13196_v27, %v13249_v28  ;;  %v6774_v27 = vadd.f32 %v13255_v35, %v13253_v36 }
 0x64d   :  { %v6863_v10 = vpop.f32.mrf.mxu0 }
 0x64e   :  { %v10394_v15 = vpack.c.bf16 %v13275_v6, %v13272_v52  ;;  %v6912_v54 = vadd.f32 %v6863_v10, %v13184_v29  ;;  %v12294_v52 = vld [vmem:[%s13997_s9 + $0x30] sm:$0xff]  }
 0x64f   :  { %v10709_v19 = vpop.f32.mrf.mxu0 }
 0x650   :  { %v6933_v16 = vadd.f32 %v13268_v30, %v6912_v54 }
 0x651   :  { %v6866_v22 = vpop.f32.mrf.mxu0 }
 0x652   :  { %v10388_v51 = vpack.c.bf16 %v6933_v16, %v13275_v6  ;;  %v6913_v32 = vadd.f32 %v6866_v22, %v13186_v44  ;;  %v12295_v6 = vld [vmem:[%s13997_s9 + $0x28] sm:$0xff]  }
 0x653   :  { %v10710_v49 = vpop.f32.mrf.mxu0 }
 0x654   :  { %v6934_v4 = vadd.f32 %v13268_v30, %v6913_v32  ;;  %10735 = vmatprep.mubr.msk.bf16.mxu1 %vm7010_vm4, %v10388_v51 }
 0x655   :  { %v6871_v43 = vpop.f32.mrf.mxu0 }
 0x656   :  { %v13285_v33 = vpack.c.bf16 %v6934_v4, %v6933_v16  ;;  %v6914_v39 = vadd.f32 %v6871_v43, %v13188_v47  ;;  %v12291_v47 = vld [vmem:[#allocation10 + $0x28] sm:$0xff]   ;;  %v6769_v16 = vadd.f32 %v13198_v5, %v13251_v58  ;;  %v6777_v58 = vadd.f32 %v13259_v14, %v13257_v24 }
 0x657   :  { %v10713_v29 = vpop.f32.mrf.mxu0 }
 0x658   :  { %v6935_v7 = vadd.f32 %v13268_v30, %v6914_v39 }
 0x659   :  { %v6874_v13 = vpop.f32.mrf.mxu0 }
 0x65a   :  { %v10389_v11 = vpack.c.bf16 %v6935_v7, %v6934_v4  ;;  %v6915_v40 = vadd.f32 %v6874_v13, %v13190_v41 }
 0x65b   :  { %v10714_v37 = vpop.f32.mrf.mxu0 }
 0x65c   :  { %v6936_v44 = vadd.f32 %v13268_v30, %v6915_v40  ;;  %10736 = vmatmul.mubr.msk.bf16.vlgmr.msra.gmra.mxu1 %vm7010_vm4, %v10389_v11  ;;  %v6782_v40 = vadd.f32 %v13263_v20, %v13261_v18  ;;  %v12292_v18 = vld [vmem:[#allocation10 + $0x20] sm:$0xff]  }
 0x65d   :  { %v6879_v53 = vpop.f32.mrf.mxu0  ;;  %10748 = vmatpush3.bf16.msra.mxu1 %v12289_v34 }
 0x65e   :  { %v13292_v57 = vpack.c.bf16 %v6936_v44, %v6935_v7  ;;  %v6916_v60 = vadd.f32 %v6879_v53, %v13192_v8  ;;  %10749 = vmatprep.subr.bf16.mxu1 %v12290_v25 }
 0x65f   :  { %v10717_v23 = vpop.f32.mrf.mxu0 }
 0x660   :  { %v6937_v42 = vadd.f32 %v13268_v30, %v6916_v60 }
 0x661   :  { %v6882_v55 = vpop.f32.mrf.mxu0  ;;  %10750 = vmatpush3.bf16.msra.mxu1 %v12290_v25 }
 0x662   :  { %v10390_v41 = vpack.c.bf16 %v6937_v42, %v6936_v44  ;;  %v6917_v50 = vadd.f32 %v6882_v55, %v13194_v1  ;;  %10763 = vmatprep.subr.bf16.mxu1 %v12291_v47  ;;  %v12298_v55 = vld [vmem:[%s13997_s9 + $0x20] sm:$0xff]  }
 0x663   :  { %v10718_v3 = vpop.f32.mrf.mxu0 }
 0x664   :  { %v6938_v34 = vadd.f32 %v13268_v30, %v6917_v50  ;;  %10739 = vmatprep.mubr.msk.bf16.mxu1 %vm7010_vm4, %v10390_v41 }
 0x665   :  { %v6887_v8 = vpop.f32.mrf.mxu0 }
 0x666   :  { %v10397_v10 = vpack.c.bf16 %v6938_v34, %v6937_v42  ;;  %v6918_v54 = vadd.f32 %v6887_v8, %v6766_v2 }
 0x667   :  { %v10721_v19 = vpop.f32.mrf.mxu0 }
 0x668   :  { %v6939_v22 = vadd.f32 %v13268_v30, %v6918_v54 }
 0x669   :  { %v6890_v51 = vpop.f32.mrf.mxu0 }
 0x66a   :  { %v10391_v1 = vpack.c.bf16 %v6939_v22, %v6938_v34  ;;  %v6919_v32 = vadd.f32 %v6890_v51, %v6769_v16 }
 0x66b   :  { %v10722_v49 = vpop.f32.mrf.mxu0 }
 0x66c   :  { %v6940_v28 = vadd.f32 %v13268_v30, %v6919_v32  ;;  %10740 = vmatmul.mubr.msk.bf16.gmra.mxu1 %vm7010_vm4, %v10391_v1 }
 0x66d   :  { %v6895_v4 = vpop.f32.mrf.mxu0 }
 0x66e   :  { %v10398_v43 = vpack.c.bf16 %v6940_v28, %v6939_v22  ;;  %v6920_v39 = vadd.f32 %v6895_v4, %v6774_v27 }
 0x66f   :  { %v10725_v29 = vpop.f32.mrf.mxu0 }
 0x670   :  { %v6941_v7 = vadd.f32 %v13268_v30, %v6920_v39 }
 0x671   :  { %v6898_v5 = vpop.f32.mrf.mxu0 }
 0x672   :  { %v10392_v13 = vpack.c.bf16 %v6941_v7, %v6940_v28  ;;  %v6921_v36 = vadd.f32 %v6898_v5, %v6777_v58 }
 0x673   :  { %v10726_v11 = vpop.f32.mrf.mxu0 }
 0x674   :  { %10743 = vmatprep.mubr.msk.bf16.mxu1 %vm7010_vm4, %v10392_v13  ;;  %v6942_v44 = vadd.f32 %v13268_v30, %v6921_v36 }
 0x675   :  { %v6903_v35 = vpop.f32.mrf.mxu0 }
 0x676   :  { %v6922_v25 = vadd.f32 %v6903_v35, %v6782_v40  ;;  %v10399_v20 = vpack.c.bf16 %v6942_v44, %v6941_v7  ;;  %v13384_v35 = vld [vmem:[#allocation12] ss:$0 sm:$0xff] }
 0x677   :  { %v10729_v37 = vpop.f32.mrf.mxu0 }
 0x678   :  { %v6943_v53 = vadd.f32 %v13268_v30, %v6922_v25 }
 0x679   :  { %v6906_v60 = vpop.f32.mrf.mxu0 }
 0x67a   :  { %v10393_v23 = vpack.c.bf16 %v6943_v53, %v6942_v44  ;;  %v6923_v42 = vadd.f32 %v6906_v60, %v13265_v38 }
 0x67b   :  { %v10730_v24 = vpop.f32.mrf.mxu0 }
 0x67c   :  { %v6944_v14 = vadd.f32 %v13268_v30, %v6923_v42  ;;  %10744 = vmatmul.mubr.msk.bf16.gmra.mxu1 %vm7010_vm4, %v10393_v23  ;;  %v12293_v30 = vld [vmem:[%s13997_s9 + $0x38] sm:$0xff]  }
 0x67d   :  { %10751 = vmatprep.mubr.msk.bf16.mxu1 %vm7010_vm4, %v10394_v15  ;;  %10780 = vmatpush3.bf16.msra.mxu0 %v12293_v30  ;;  %v12296_v15 = vld [vmem:[%s13997_s9 + $0x18] sm:$0xff]  }
 0x67e   :  { %v10400_v38 = vpack.c.bf16 %v6944_v14, %v6943_v53  ;;  %10781 = vmatprep.subr.bf16.mxu0 %v12620_v56 }
 0x681   :  { %10782 = vmatpush3.bf16.msra.mxu0 %v12294_v52 }
 0x682   :  { %10783 = vmatprep.subr.bf16.mxu0 %v12620_v56 }
 0x684   :  { %10752 = vmatmul.mubr.msk.bf16.vlgmr.msra.gmra.mxu1 %vm7010_vm4, %v13285_v33 }
 0x685   :  { %10764 = vmatpush3.bf16.msra.mxu1 %v12291_v47  ;;  %10755 = vmatprep.mubr.msk.bf16.mxu1 %vm7010_vm4, %v13292_v57  ;;  %v12300_v47 = vld [vmem:[%s13997_s9] sm:$0xff]  }
 0x686   :  { %10765 = vmatprep.subr.bf16.mxu1 %v12292_v18  ;;  %10784 = vmatpush3.bf16.msra.mxu0 %v12295_v6 }
 0x687   :  { %10785 = vmatprep.subr.bf16.mxu0 %v12620_v56 }
 0x689   :  { %10766 = vmatpush3.bf16.msra.mxu1 %v12292_v18 }
 0x68a   :  { %10815 = vmatprep.subr.bf16.mxu1 %v12620_v56  ;;  %10786 = vmatpush3.bf16.msra.mxu0 %v12298_v55 }
 0x68b   :  { %10851 = vmatprep.subr.bf16.mxu0 %v12620_v56 }
 0x68c   :  { %10756 = vmatmul.mubr.msk.bf16.gmra.mxu1 %vm7010_vm4, %v10397_v10 }
 0x68d   :  { %10759 = vmatprep.mubr.msk.bf16.mxu1 %vm7010_vm4, %v10398_v43 }
 0x694   :  { %10760 = vmatmul.mubr.msk.bf16.gmra.mxu1 %vm7010_vm4, %v10399_v20 }
 0x695   :  { %10767 = vmatprep.mubr.msk.bf16.mxu1 %vm7010_vm4, %v13285_v33  ;;  %v12297_v33 = vld [vmem:[%s13997_s9 + $0x10] sm:$0xff]  }
 0x69c   :  { %10768 = vmatmul.mubr.msk.bf16.vlgmr.msra.gmra.mxu1 %vm7010_vm4, %v13292_v57  ;;  %v12299_v57 = vld [vmem:[%s13997_s9 + $0x8] sm:$0xff]  }
 0x69d   :  { %10771 = vmatprep.mubr.msk.bf16.mxu1 %vm7010_vm4, %v10397_v10  ;;  %10816 = vmatpush3.bf16.msra.mxu1 %v12296_v15 }
 0x69e   :  { %10817 = vmatprep.subr.bf16.mxu1 %v12620_v56 }
 0x6a1   :  { %10818 = vmatpush3.bf16.msra.mxu1 %v12297_v33 }
 0x6a2   :  { %10819 = vmatprep.subr.bf16.mxu1 %v12620_v56 }
 0x6a4   :  { %10772 = vmatmul.mubr.msk.bf16.gmra.mxu1 %vm7010_vm4, %v10398_v43 }
 0x6a5   :  { %10775 = vmatprep.mubr.msk.bf16.mxu1 %vm7010_vm4, %v10399_v20  ;;  %10820 = vmatpush3.bf16.msra.mxu1 %v12299_v57 }
 0x6a6   :  { %10821 = vmatprep.subr.bf16.mxu1 %v12620_v56 }
 0x6a9   :  { %10822 = vmatpush3.bf16.msra.mxu1 %v12300_v47 }
 0x6ac   :  { %10776 = vmatmul.mubr.msk.bf16.gmra.mxu1 %vm7010_vm4, %v10400_v38 }
 0x6ad   :  { %10823 = vmatprep.mubr.msk.bf16.mxu1 %vm12621_vm2, %v12620_v56 }
 0x6b4   :  { %10824 = vmatmul.mubr.msk.bf16.vlgmr.msra.gmra.mxu1 %vm6536_vm3, %v13085_v61 }
 0x6b5   :  { %10827 = vmatprep.mubr.msk.bf16.mxu1 %vm12621_vm2, %v12620_v56 }
 0x71c   :  { %v10737_v41 = vpop.f32.mrf.mxu1 }
 0x71e   :  { %v7063_v50 = vpop.f32.mrf.mxu1 }
 0x720   :  { %v10738_v3 = vpop.f32.mrf.mxu1 }
 0x722   :  { %v7066_v2 = vpop.f32.mrf.mxu1 }
 0x72c   :  { %v10741_v34 = vpop.f32.mrf.mxu1 }
 0x72e   :  { %v7079_v8 = vpop.f32.mrf.mxu1 }
 0x730   :  { %v10742_v10 = vpop.f32.mrf.mxu1 }
 0x732   :  { %v7082_v54 = vpop.f32.mrf.mxu1 }
 0x73c   :  { %v10745_v19 = vpop.f32.mrf.mxu1 }
 0x73e   :  { %v13376_v16 = vpop.f32.mrf.mxu1 }
 0x740   :  { %v13378_v22 = vpop.f32.mrf.mxu1 }
 0x742   :  { %v13380_v51 = vpop.f32.mrf.mxu1 }
 0x744   :  { %v10753_v1 = vpop.f32.mrf.mxu1 }
 0x745   :  { %v7191_v37 = vadd.f32 %v10753_v1, %v10737_v41 }
 0x746   :  { %v7182_v32 = vpop.f32.mrf.mxu1 }
 0x747   :  { %v7183_v11 = vadd.f32 %v7182_v32, %v7063_v50 }
 0x748   :  { %v10754_v49 = vpop.f32.mrf.mxu1 }
 0x749   :  { %v7194_v44 = vadd.f32 %v10754_v49, %v10738_v3 }
 0x74a   :  { %v7185_v27 = vpop.f32.mrf.mxu1 }
 0x74b   :  { %v7186_v53 = vadd.f32 %v7185_v27, %v7066_v2  ;;  %v12301_v2 = vld [vmem:[%s13997_s9 + $0x58] sm:$0xff]  }
 0x74c   :  { %v10757_v28 = vpop.f32.mrf.mxu1 }
 0x74d   :  { %v7207_v23 = vadd.f32 %v10757_v28, %v10741_v34 }
 0x74e   :  { %v7198_v4 = vpop.f32.mrf.mxu1 }
 0x74f   :  { %v7199_v15 = vadd.f32 %v7198_v4, %v7079_v8 }
 0x750   :  { %v10758_v43 = vpop.f32.mrf.mxu1 }
 0x751   :  { %v7210_v50 = vadd.f32 %v10758_v43, %v10742_v10 }
 0x752   :  { %v7201_v39 = vpop.f32.mrf.mxu1 }
 0x753   :  { %v7202_v34 = vadd.f32 %v7201_v39, %v7082_v54 }
 0x754   :  { %v10761_v29 = vpop.f32.mrf.mxu1 }
 0x755   :  { %v7223_v49 = vadd.f32 %v10761_v29, %v10745_v19 }
 0x756   :  { %v7214_v7 = vpop.f32.mrf.mxu1 }
 0x758   :  { %v10762_v5 = vpop.f32.mrf.mxu1 }
 0x75a   :  { %v13382_v58 = vpop.f32.mrf.mxu1 }
 0x75c   :  { %v10769_v13 = vpop.f32.mrf.mxu1 }
 0x75d   :  { %v7335_v24 = vadd.f32 %v10769_v13, %v7191_v37 }
 0x75e   :  { %v7286_v40 = vpop.f32.mrf.mxu1 }
 0x75f   :  { %v7333_v36 = vadd.f32 %v7286_v40, %v7183_v11  ;;  %v7354_v57 = vadd.f32 %v13384_v35, %v7335_v24 }
 0x760   :  { %v10770_v25 = vpop.f32.mrf.mxu1 }
 0x761   :  { %v7352_v60 = vadd.f32 %v13384_v35, %v7333_v36  ;;  %v7336_v18 = vadd.f32 %v10770_v25, %v7194_v44  ;;  %v7366_v4 = vadd.f32 %v7354_v57, %v12987_v46  ;;  %v12302_v46 = vld [vmem:[%s13997_s9 + $0x50] sm:$0xff]  }
 0x762   :  { %v7289_v42 = vpop.f32.mrf.mxu1 }
 0x763   :  { %v7364_v14 = vadd.f32 %v7352_v60, %v12983_v17  ;;  %v7334_v20 = vadd.f32 %v7289_v42, %v7186_v53  ;;  %v7355_v55 = vadd.f32 %v13384_v35, %v7336_v18  ;;  %v7378_v36 = vmax.f32 %v7366_v4, 0.0  ;;  %v12307_v4 = vld [vmem:[#allocation15 + $0x10] sm:$0xff]  }
 0x764   :  { %v10773_v38 = vpop.f32.mrf.mxu1 }
 0x765   :  { %v7376_v30 = vmax.f32 %v7364_v14, 0.0  ;;  %v7353_v52 = vadd.f32 %v13384_v35, %v7334_v20  ;;  %v7339_v6 = vadd.f32 %v10773_v38, %v7207_v23 }
 0x766   :  { %v7302_v33 = vpop.f32.mrf.mxu1 }
 0x767   :  { %v7388_v47 = vpack.c.bf16 %v7376_v30, %v7376_v30  ;;  %v7365_v41 = vadd.f32 %v7353_v52, %v13096_v62  ;;  %v7358_v3 = vadd.f32 %v13384_v35, %v7339_v6  ;;  %v7337_v32 = vadd.f32 %v7302_v33, %v7199_v15 }
 0x768   :  { %v10774_v17 = vpop.f32.mrf.mxu1  ;;  %v7367_v62 = vadd.f32 %v7355_v55, %v13111_v31  ;;  %v7215_v31 = vadd.f32 %v7214_v7, %v13376_v16 }
 0x769   :  { %v10181_v1 = vcombine.low %v12619_v0, %v7388_v47  ;;  %v7377_v8 = vmax.f32 %v7365_v41, 0.0  ;;  %v7340_v27 = vadd.f32 %v10774_v17, %v7210_v50  ;;  %v13403_v13 = vadd.f32 %v7358_v3, %v13037_v63 }
 0x76a   :  { %v7305_v28 = vpop.f32.mrf.mxu1  ;;  %v7356_v19 = vadd.f32 %v13384_v35, %v7337_v32  ;;  %v7226_v63 = vadd.f32 %v10762_v5, %v13378_v22  ;;  %v7379_v25 = vmax.f32 %v7367_v62, 0.0  ;;  %v7218_v47 = vadd.f32 %v13382_v58, %v13380_v51  ;;  %v12308_v62 = vld [vmem:[#allocation15 + $0x20] sm:$0xff]  }
 0x76b   :  { %v13399_v10 = vpack.c.bf16 %v7377_v8, %v7376_v30  ;;  %v7338_v43 = vadd.f32 %v7305_v28, %v7202_v34  ;;  %10788 = vmatmul.mubr.msk.bf16.vlgmr.msra.gmra.mxu0 %vm6536_vm3, %v10181_v1  ;;  %v7359_v54 = vadd.f32 %v13384_v35, %v7340_v27  ;;  %v7382_v37 = vmax.f32 %v13403_v13, 0.0  ;;  %v12305_v27 = vld [vmem:[#allocation15 + $0x18] sm:$0xff]   ;;  %v12306_v28 = vld [vmem:[#allocation15 + $0x28] sm:$0xff]  }
 0x76c   :  { %10852 = vmatpush3.bf16.msra.mxu0 %v12301_v2  ;;  %v10777_v39 = vpop.f32.mrf.mxu1  ;;  %10791 = vmatprep.mubr.msk.bf16.mxu0 %vm12621_vm2, %v12620_v56  ;;  %v10401_v22 = vpack.c.bf16 %v7378_v36, %v7377_v8  ;;  %v7368_v5 = vadd.f32 %v7356_v19, %v13033_v45  ;;  %v10407_v14 = vpack.c.bf16 %v7379_v25, %v7378_v36  ;;  %v12304_v45 = vld [vmem:[%s13997_s9 + $0x40] sm:$0xff]  }
 0x76d   :  { %v7343_v29 = vadd.f32 %v10777_v39, %v7223_v49  ;;  %10828 = vmatmul.mubr.msk.bf16.gmra.mxu1 %vm6536_vm3, %v13399_v10  ;;  %10853 = vmatprep.subr.bf16.mxu0 %v12620_v56  ;;  %v7371_v11 = vadd.f32 %v7359_v54, %v13141_v48  ;;  %v7357_v16 = vadd.f32 %v13384_v35, %v7338_v43  ;;  %v12303_v48 = vld [vmem:[%s13997_s9 + $0x48] sm:$0xff]  }
 0x76e   :  { %v7318_v40 = vpop.f32.mrf.mxu1  ;;  %10831 = vmatprep.mubr.msk.bf16.mxu1 %vm12621_vm2, %v12620_v56  ;;  %v7380_v52 = vmax.f32 %v7368_v5, 0.0  ;;  %10887 = vmatprep.subr.bf16.mxu1 %v12305_v27 }
 0x76f   :  { %v7341_v7 = vadd.f32 %v7318_v40, %v7215_v31  ;;  %v7383_v44 = vmax.f32 %v7371_v11, 0.0  ;;  %v7362_v53 = vadd.f32 %v13384_v35, %v7343_v29  ;;  %v7369_v18 = vadd.f32 %v7357_v16, %v13126_v59  ;;  %10888 = vmatpush3.bf16.msra.mxu1 %v12305_v27 }
 0x770   :  { %v10778_v60 = vpop.f32.mrf.mxu1  ;;  %10854 = vmatpush3.bf16.msra.mxu0 %v12302_v46  ;;  %v10402_v55 = vpack.c.bf16 %v7380_v52, %v7379_v25  ;;  %10889 = vmatprep.subr.bf16.mxu1 %v12307_v4 }
 0x771   :  { %v7360_v23 = vadd.f32 %v13384_v35, %v7341_v7  ;;  %v7344_v42 = vadd.f32 %v10778_v60, %v7226_v63  ;;  %10855 = vmatprep.subr.bf16.mxu0 %v12620_v56  ;;  %v10409_v24 = vpack.c.bf16 %v7383_v44, %v7382_v37  ;;  %v7374_v38 = vadd.f32 %v7362_v53, %v13169_v12 }
 0x772   :  { %v7321_v57 = vpop.f32.mrf.mxu1 }
 0x773   :  { %v7372_v20 = vadd.f32 %v7360_v23, %v13167_v9  ;;  %10792 = vmatmul.mubr.msk.bf16.gmra.mxu0 %vm6536_vm3, %v10401_v22  ;;  %v7363_v30 = vadd.f32 %v13384_v35, %v7344_v42  ;;  %v7381_v9 = vmax.f32 %v7369_v18, 0.0  ;;  %v7386_v15 = vmax.f32 %v7374_v38, 0.0  ;;  %10890 = vmatpush3.bf16.msra.mxu1 %v12307_v4 }
 0x774   :  { %10795 = vmatprep.mubr.msk.bf16.mxu0 %vm12621_vm2, %v12620_v56  ;;  %10856 = vmatpush3.bf16.msra.mxu0 %v12303_v48  ;;  %v7342_v3 = vadd.f32 %v7321_v57, %v7218_v47  ;;  %v13478_v1 = vpop.f32.mrf.mxu1 }
 0x775   :  { %v7384_v6 = vmax.f32 %v7372_v20, 0.0  ;;  %10832 = vmatmul.mubr.msk.bf16.gmra.mxu1 %vm6536_vm3, %v10407_v14  ;;  %10857 = vmatprep.subr.bf16.mxu0 %v12620_v56  ;;  %v7375_v59 = vadd.f32 %v7363_v30, %v13206_v26  ;;  %v10408_v50 = vpack.c.bf16 %v7381_v9, %v7380_v52  ;;  %v10403_v17 = vpack.c.bf16 %v7382_v37, %v7381_v9 }
 0x776   :  { %10835 = vmatprep.mubr.msk.bf16.mxu1 %vm12621_vm2, %v12620_v56  ;;  %v7361_v26 = vadd.f32 %v13384_v35, %v7342_v3  ;;  %v10825_v8 = vpop.f32.mrf.mxu1 }
 0x777   :  { %v10404_v12 = vpack.c.bf16 %v7384_v6, %v7383_v44  ;;  %v7387_v33 = vmax.f32 %v7375_v59, 0.0 }
 0x778   :  { %10858 = vmatpush3.bf16.msra.mxu0 %v12304_v45  ;;  %v7373_v2 = vadd.f32 %v7361_v26, %v13200_v21  ;;  %v13481_v32 = vpop.f32.mrf.mxu1 }
 0x779   :  { %v10411_v41 = vpack.c.bf16 %v7387_v33, %v7386_v15  ;;  %v7399_v35 = vpack.c.bf16 %v7387_v33, %v7387_v33  ;;  %10919 = vmatprep.subr.bf16.mxu0 %v12306_v28 }
 0x77a   :  { %v7385_v51 = vmax.f32 %v7373_v2, 0.0  ;;  %v10826_v49 = vpop.f32.mrf.mxu1 }
 0x77b   :  { %10796 = vmatmul.mubr.msk.bf16.gmra.mxu0 %vm6536_vm3, %v10402_v55  ;;  %v10187_v34 = vcombine.low %v7399_v35, %v12619_v0 }
 0x77c   :  { %10799 = vmatprep.mubr.msk.bf16.mxu0 %vm12621_vm2, %v12620_v56  ;;  %v10410_v58 = vpack.c.bf16 %v7385_v51, %v7384_v6  ;;  %v10405_v21 = vpack.c.bf16 %v7386_v15, %v7385_v51 }
 0x77d   :  { %10836 = vmatmul.mubr.msk.bf16.gmra.mxu1 %vm6536_vm3, %v10408_v50 }
 0x77e   :  { %10839 = vmatprep.mubr.msk.bf16.mxu1 %vm12621_vm2, %v12620_v56 }
 0x783   :  { %10800 = vmatmul.mubr.msk.bf16.gmra.mxu0 %vm6536_vm3, %v10403_v17 }
 0x784   :  { %10803 = vmatprep.mubr.msk.bf16.mxu0 %vm12621_vm2, %v12620_v56 }
 0x785   :  { %10840 = vmatmul.mubr.msk.bf16.gmra.mxu1 %vm6536_vm3, %v10409_v24 }
 0x786   :  { %10843 = vmatprep.mubr.msk.bf16.mxu1 %vm12621_vm2, %v12620_v56 }
 0x78b   :  { %10804 = vmatmul.mubr.msk.bf16.gmra.mxu0 %vm6536_vm3, %v10404_v12 }
 0x78c   :  { %10807 = vmatprep.mubr.msk.bf16.mxu0 %vm12621_vm2, %v12620_v56 }
 0x78d   :  { %10844 = vmatmul.mubr.msk.bf16.gmra.mxu1 %vm6536_vm3, %v10410_v58 }
 0x78e   :  { %10847 = vmatprep.mubr.msk.bf16.mxu1 %vm12621_vm2, %v12620_v56 }
 0x793   :  { %10808 = vmatmul.mubr.msk.bf16.gmra.mxu0 %vm6536_vm3, %v10405_v21 }
 0x794   :  { %10811 = vmatprep.mubr.msk.bf16.mxu0 %vm12621_vm2, %v12620_v56 }
 0x795   :  { %10848 = vmatmul.mubr.msk.bf16.gmra.mxu1 %vm6536_vm3, %v10411_v41 }
 0x79b   :  { %10812 = vmatmul.mubr.msk.bf16.gmra.mxu0 %vm6536_vm3, %v10187_v34 }
 0x79c   :  { %10859 = vmatprep.mubr.msk.bf16.mxu0 %vm12621_vm2, %v12620_v56 }
 0x7a3   :  { %10860 = vmatmul.mubr.msk.bf16.vlgmr.msra.gmra.mxu0 %vm6536_vm3, %v13399_v10  ;;  %v13500_v10 = vld [vmem:[#allocation15 + $0x8] sm:$0xff]  }
 0x7a4   :  { %10863 = vmatprep.mubr.msk.bf16.mxu0 %vm12621_vm2, %v12620_v56  ;;  %10920 = vmatpush3.bf16.msra.mxu0 %v12306_v28 }
 0x7a5   :  { %10921 = vmatprep.subr.bf16.mxu0 %v12308_v62  ;;  %10903 = vmatprep.subr.bf16.mxu1 %v13500_v10 }
 0x7a8   :  { %10922 = vmatpush3.bf16.msra.mxu0 %v12308_v62 }
 0x7a9   :  { %10971 = vmatprep.subr.bf16.mxu0 %v12620_v56 }
 0x7ab   :  { %10864 = vmatmul.mubr.msk.bf16.gmra.mxu0 %vm6536_vm3, %v10407_v14 }
 0x7ac   :  { %10867 = vmatprep.mubr.msk.bf16.mxu0 %vm12621_vm2, %v12620_v56 }
 0x7b3   :  { %10868 = vmatmul.mubr.msk.bf16.gmra.mxu0 %vm6536_vm3, %v10408_v50 }
 0x7b4   :  { %10871 = vmatprep.mubr.msk.bf16.mxu0 %vm12621_vm2, %v12620_v56 }
 0x7bb   :  { %10872 = vmatmul.mubr.msk.bf16.gmra.mxu0 %vm6536_vm3, %v10409_v24 }
 0x7bc   :  { %10875 = vmatprep.mubr.msk.bf16.mxu0 %vm12621_vm2, %v12620_v56 }
 0x7c3   :  { %10876 = vmatmul.mubr.msk.bf16.gmra.mxu0 %vm6536_vm3, %v10410_v58 }
 0x7c4   :  { %10879 = vmatprep.mubr.msk.bf16.mxu0 %vm12621_vm2, %v12620_v56 }
 0x7cb   :  { %10880 = vmatmul.mubr.msk.bf16.gmra.mxu0 %vm6536_vm3, %v10411_v41 }
 0x7cc   :  { %10883 = vmatprep.mubr.msk.bf16.mxu0 %vm12621_vm2, %v12620_v56 }
 0x7d3   :  { %10884 = vmatmul.mubr.msk.bf16.gmra.mxu0 %vm6536_vm3, %v13085_v61 }
 0x82b   :  { %v13503_v43 = vpop.f32.mrf.mxu0 }
 0x82d   :  { %v10789_v13 = vpop.f32.mrf.mxu0  ;;  %v7672_v54 = vpop.f32.mrf.mxu1 }
 0x82f   :  { %v7530_v39 = vpop.f32.mrf.mxu0  ;;  %v10829_v46 = vpop.f32.mrf.mxu1 }
 0x830   :  { %v7668_v28 = vadd.f32 %v13481_v32, %v7530_v39 }
 0x831   :  { %v10790_v31 = vpop.f32.mrf.mxu0  ;;  %v7675_v19 = vpop.f32.mrf.mxu1 }
 0x833   :  { %v7535_v29 = vpop.f32.mrf.mxu0  ;;  %v10830_v63 = vpop.f32.mrf.mxu1 }
 0x834   :  { %v7673_v62 = vadd.f32 %v7672_v54, %v7535_v29  ;;  %v13540_v63 = vld [vmem:[#allocation13] ss:$0 sm:$0xff] }
 0x835   :  { %v10793_v11 = vpop.f32.mrf.mxu0  ;;  %v7680_v40 = vpop.f32.mrf.mxu1 }
 0x837   :  { %v7538_v36 = vpop.f32.mrf.mxu0  ;;  %v10833_v25 = vpop.f32.mrf.mxu1 }
 0x838   :  { %v7676_v25 = vadd.f32 %v7675_v19, %v7538_v36 }
 0x839   :  { %v10794_v16 = vpop.f32.mrf.mxu0  ;;  %v13505_v7 = vpop.f32.mrf.mxu1 }
 0x83b   :  { %v7543_v37 = vpop.f32.mrf.mxu0  ;;  %v10834_v44 = vpop.f32.mrf.mxu1 }
 0x83c   :  { %v7681_v32 = vadd.f32 %v7680_v40, %v7543_v37  ;;  %v12310_v40 = vld [vmem:[#allocation15] sm:$0xff]  }
 0x83d   :  { %v10797_v53 = vpop.f32.mrf.mxu0  ;;  %v13507_v60 = vpop.f32.mrf.mxu1 }
 0x83f   :  { %v7546_v48 = vpop.f32.mrf.mxu0  ;;  %v10837_v22 = vpop.f32.mrf.mxu1 }
 0x840   :  { %v7684_v36 = vadd.f32 %v13505_v7, %v7546_v48 }
 0x841   :  { %v10798_v5 = vpop.f32.mrf.mxu0  ;;  %v13509_v23 = vpop.f32.mrf.mxu1 }
 0x843   :  { %v7551_v42 = vpop.f32.mrf.mxu0  ;;  %v10838_v24 = vpop.f32.mrf.mxu1 }
 0x845   :  { %v10801_v14 = vpop.f32.mrf.mxu0  ;;  %v13511_v18 = vpop.f32.mrf.mxu1 }
 0x847   :  { %v13513_v20 = vpop.f32.mrf.mxu0  ;;  %v10841_v38 = vpop.f32.mrf.mxu1 }
 0x849   :  { %v10802_v30 = vpop.f32.mrf.mxu0  ;;  %v13515_v45 = vpop.f32.mrf.mxu1 }
 0x84b   :  { %v13517_v52 = vpop.f32.mrf.mxu0  ;;  %v10842_v6 = vpop.f32.mrf.mxu1 }
 0x84d   :  { %v10805_v59 = vpop.f32.mrf.mxu0  ;;  %v13519_v9 = vpop.f32.mrf.mxu1 }
 0x84f   :  { %v13521_v12 = vpop.f32.mrf.mxu0  ;;  %v10845_v15 = vpop.f32.mrf.mxu1 }
 0x850   :  { %v7689_v15 = vadd.f32 %v13507_v60, %v7551_v42 }
 0x851   :  { %v10806_v33 = vpop.f32.mrf.mxu0  ;;  %v13523_v57 = vpop.f32.mrf.mxu1 }
 0x853   :  { %v13525_v47 = vpop.f32.mrf.mxu0  ;;  %v10846_v55 = vpop.f32.mrf.mxu1 }
 0x855   :  { %v10809_v41 = vpop.f32.mrf.mxu0  ;;  %v13527_v50 = vpop.f32.mrf.mxu1 }
 0x857   :  { %v13529_v3 = vpop.f32.mrf.mxu0  ;;  %v10849_v26 = vpop.f32.mrf.mxu1 }
 0x858   :  { %v7692_v26 = vadd.f32 %v13509_v23, %v13513_v20 }
 0x859   :  { %v10810_v17 = vpop.f32.mrf.mxu0  ;;  %v13531_v2 = vpop.f32.mrf.mxu1 }
 0x85b   :  { %v13533_v51 = vpop.f32.mrf.mxu0  ;;  %v10850_v58 = vpop.f32.mrf.mxu1 }
 0x85d   :  { %v10813_v21 = vpop.f32.mrf.mxu0 }
 0x85e   :  { %v7697_v21 = vadd.f32 %v13511_v18, %v13517_v52  ;;  %v7705_v18 = vadd.f32 %v13519_v9, %v13525_v47  ;;  %v7665_v9 = vadd.f32 %v13478_v1, %v13503_v43 }
 0x85f   :  { %v13535_v35 = vpop.f32.mrf.mxu0 }
 0x861   :  { %v10814_v34 = vpop.f32.mrf.mxu0 }
 0x863   :  { %v13537_v8 = vpop.f32.mrf.mxu0 }
 0x865   :  { %v10861_v49 = vpop.f32.mrf.mxu0 }
 0x867   :  { %v7789_v27 = vpop.f32.mrf.mxu0 }
 0x868   :  { %v7842_v13 = vadd.f32 %v7789_v27, %v7668_v28  ;;  %v7700_v28 = vadd.f32 %v13515_v45, %v13521_v12  ;;  %v7708_v45 = vadd.f32 %v13523_v57, %v13529_v3  ;;  %v7841_v57 = vadd.f32 %v13537_v8, %v7665_v9 }
 0x869   :  { %v10862_v4 = vpop.f32.mrf.mxu0 }
 0x86a   :  { %v13543_v16 = vadd.f32 %v13540_v63, %v7842_v13  ;;  %v7862_v1 = vadd.f32 %v13540_v63, %v7841_v57  ;;  %v12319_v57 = vld [vmem:[%s14001_s13 + $0x58] sm:$0xff]  }
 0x86b   :  { %v7794_v46 = vpop.f32.mrf.mxu0 }
 0x86c   :  { %v7843_v31 = vadd.f32 %v7794_v46, %v7673_v62 }
 0x86d   :  { %v10865_v11 = vpop.f32.mrf.mxu0 }
 0x86e   :  { %v7864_v44 = vadd.f32 %v13540_v63, %v7843_v31 }
 0x86f   :  { %v7797_v53 = vpop.f32.mrf.mxu0 }
 0x870   :  { %v10412_v22 = vpack.c.bf16 %v7864_v44, %v13543_v16  ;;  %v7844_v5 = vadd.f32 %v7797_v53, %v7676_v25 }
 0x871   :  { %v10866_v24 = vpop.f32.mrf.mxu0 }
 0x872   :  { %v7865_v54 = vadd.f32 %v13540_v63, %v7844_v5  ;;  %10891 = vmatprep.mubr.msk.bf16.mxu1 %vm7010_vm4, %v10412_v22 }
 0x873   :  { %v7802_v39 = vpop.f32.mrf.mxu0 }
 0x874   :  { %v13549_v29 = vpack.c.bf16 %v7865_v54, %v7864_v44  ;;  %v7845_v14 = vadd.f32 %v7802_v39, %v7681_v32  ;;  %v7713_v32 = vadd.f32 %v13527_v50, %v13533_v51 }
 0x875   :  { %v10869_v19 = vpop.f32.mrf.mxu0 }
 0x876   :  { %v7866_v38 = vadd.f32 %v13540_v63, %v7845_v14  ;;  %10923 = vmatprep.mubr.msk.bf16.mxu0 %vm7010_vm4, %v13549_v29 }
 0x877   :  { %v7805_v30 = vpop.f32.mrf.mxu0 }
 0x878   :  { %v10413_v6 = vpack.c.bf16 %v7866_v38, %v7865_v54  ;;  %v7846_v59 = vadd.f32 %v7805_v30, %v7684_v36  ;;  %v7716_v36 = vadd.f32 %v13531_v2, %v13535_v35  ;;  %v10418_v30 = vpack.c.bf16 %v13543_v16, %v7862_v1  ;;  %v12311_v2 = vld [vmem:[%s14001_s13 + $0x38] sm:$0xff]   ;;  %v12314_v16 = vld [vmem:[%s14001_s13 + $0x10] sm:$0xff]  }
 0x879   :  { %v10870_v37 = vpop.f32.mrf.mxu0  ;;  %v12312_v35 = vld [vmem:[%s14001_s13 + $0x18] sm:$0xff]  }
 0x87a   :  { %v7867_v33 = vadd.f32 %v13540_v63, %v7846_v59  ;;  %10892 = vmatmul.mubr.msk.bf16.vlgmr.msra.gmra.mxu1 %vm7010_vm4, %v10413_v6  ;;  %v12316_v37 = vld [vmem:[%s14001_s13 + $0x28] sm:$0xff]  }
 0x87b   :  { %v7810_v55 = vpop.f32.mrf.mxu0  ;;  %10904 = vmatpush3.bf16.msra.mxu1 %v13500_v10 }
 0x87c   :  { %v13559_v7 = vpack.c.bf16 %v7867_v33, %v7866_v38  ;;  %v7847_v48 = vadd.f32 %v7810_v55, %v7689_v15  ;;  %10905 = vmatprep.subr.bf16.mxu1 %v12310_v40  ;;  %v12318_v15 = vld [vmem:[%s14001_s13 + $0x20] sm:$0xff]  }
 0x87d   :  { %v10873_v41 = vpop.f32.mrf.mxu0 }
 0x87e   :  { %v7868_v17 = vadd.f32 %v13540_v63, %v7847_v48  ;;  %10924 = vmatmul.mubr.msk.bf16.vlgmr.msra.gmra.mxu0 %vm7010_vm4, %v13559_v7 }
 0x87f   :  { %v7813_v60 = vpop.f32.mrf.mxu0  ;;  %10906 = vmatpush3.bf16.msra.mxu1 %v12310_v40  ;;  %10972 = vmatpush3.bf16.msra.mxu0 %v12312_v35  ;;  %v12317_v40 = vld [vmem:[%s14001_s13] sm:$0xff]  }
 0x880   :  { %v10414_v42 = vpack.c.bf16 %v7868_v17, %v7867_v33  ;;  %v7848_v58 = vadd.f32 %v7813_v60, %v7692_v26  ;;  %10935 = vmatprep.subr.bf16.mxu1 %v12620_v56  ;;  %10973 = vmatprep.subr.bf16.mxu0 %v12620_v56 }
 0x881   :  { %v10874_v10 = vpop.f32.mrf.mxu0 }
 0x882   :  { %v7869_v34 = vadd.f32 %v13540_v63, %v7848_v58  ;;  %10895 = vmatprep.mubr.msk.bf16.mxu1 %vm7010_vm4, %v10414_v42 }
 0x883   :  { %v7818_v23 = vpop.f32.mrf.mxu0  ;;  %10974 = vmatpush3.bf16.msra.mxu0 %v12314_v16  ;;  %v12321_v16 = vld [vmem:[%s14001_s13 + $0x48] sm:$0xff]  }
 0x884   :  { %v10421_v20 = vpack.c.bf16 %v7869_v34, %v7868_v17  ;;  %v7849_v49 = vadd.f32 %v7818_v23, %v7697_v21  ;;  %10975 = vmatprep.subr.bf16.mxu0 %v12620_v56 }
 0x885   :  { %v10877_v27 = vpop.f32.mrf.mxu0 }
 0x886   :  { %v7870_v4 = vadd.f32 %v13540_v63, %v7849_v49  ;;  %10927 = vmatprep.mubr.msk.bf16.mxu0 %vm7010_vm4, %v10421_v20 }
 0x887   :  { %v7821_v62 = vpop.f32.mrf.mxu0 }
 0x888   :  { %v10415_v13 = vpack.c.bf16 %v7870_v4, %v7869_v34  ;;  %v7850_v46 = vadd.f32 %v7821_v62, %v7700_v28 }
 0x889   :  { %v10878_v31 = vpop.f32.mrf.mxu0 }
 0x88a   :  { %v7871_v52 = vadd.f32 %v13540_v63, %v7850_v46  ;;  %10896 = vmatmul.mubr.msk.bf16.gmra.mxu1 %vm7010_vm4, %v10415_v13  ;;  %v13658_v31 = vld [vmem:[#allocation16] ss:$0 sm:$0xff] }
 0x88b   :  { %v7826_v11 = vpop.f32.mrf.mxu0 }
 0x88c   :  { %v10422_v25 = vpack.c.bf16 %v7871_v52, %v7870_v4  ;;  %v7851_v44 = vadd.f32 %v7826_v11, %v7705_v18 }
 0x88d   :  { %v10881_v53 = vpop.f32.mrf.mxu0 }
 0x88e   :  { %v7872_v12 = vadd.f32 %v13540_v63, %v7851_v44  ;;  %10928 = vmatmul.mubr.msk.bf16.gmra.mxu0 %vm7010_vm4, %v10422_v25 }
 0x88f   :  { %v7829_v22 = vpop.f32.mrf.mxu0 }
 0x890   :  { %v10416_v5 = vpack.c.bf16 %v7872_v12, %v7871_v52  ;;  %v7852_v24 = vadd.f32 %v7829_v22, %v7708_v45 }
 0x891   :  { %v10882_v47 = vpop.f32.mrf.mxu0 }
 0x892   :  { %v7873_v54 = vadd.f32 %v13540_v63, %v7852_v24  ;;  %10899 = vmatprep.mubr.msk.bf16.mxu1 %vm7010_vm4, %v10416_v5 }
 0x893   :  { %v7834_v3 = vpop.f32.mrf.mxu0 }
 0x894   :  { %v10423_v39 = vpack.c.bf16 %v7873_v54, %v7872_v12  ;;  %v7853_v14 = vadd.f32 %v7834_v3, %v7713_v32 }
 0x895   :  { %v10885_v19 = vpop.f32.mrf.mxu0 }
 0x896   :  { %v7874_v38 = vadd.f32 %v13540_v63, %v7853_v14  ;;  %10931 = vmatprep.mubr.msk.bf16.mxu0 %vm7010_vm4, %v10423_v39 }
 0x897   :  { %v7837_v43 = vpop.f32.mrf.mxu0 }
 0x898   :  { %v10417_v50 = vpack.c.bf16 %v7874_v38, %v7873_v54  ;;  %v7854_v51 = vadd.f32 %v7837_v43, %v7716_v36 }
 0x899   :  { %v10886_v6 = vpop.f32.mrf.mxu0 }
 0x89a   :  { %v7875_v8 = vadd.f32 %v13540_v63, %v7854_v51  ;;  %10900 = vmatmul.mubr.msk.bf16.gmra.mxu1 %vm7010_vm4, %v10417_v50  ;;  %v12313_v63 = vld [vmem:[%s14001_s13 + $0x30] sm:$0xff]  }
 0x89b   :  { %10907 = vmatprep.mubr.msk.bf16.mxu1 %vm7010_vm4, %v10418_v30  ;;  %v12320_v30 = vld [vmem:[%s14001_s13 + $0x50] sm:$0xff]  }
 0x89c   :  { %v10424_v59 = vpack.c.bf16 %v7875_v8, %v7874_v38 }
 0x89e   :  { %10932 = vmatmul.mubr.msk.bf16.gmra.mxu0 %vm7010_vm4, %v10424_v59 }
 0x89f   :  { %10979 = vmatprep.mubr.msk.bf16.mxu0 %vm12621_vm2, %v12620_v56 }
 0x8a2   :  { %10908 = vmatmul.mubr.msk.bf16.vlgmr.msra.gmra.mxu1 %vm7010_vm4, %v13549_v29  ;;  %v12315_v29 = vld [vmem:[%s14001_s13 + $0x8] sm:$0xff]  }
 0x8a3   :  { %10911 = vmatprep.mubr.msk.bf16.mxu1 %vm7010_vm4, %v13559_v7  ;;  %10936 = vmatpush3.bf16.msra.mxu1 %v12311_v2 }
 0x8a4   :  { %10937 = vmatprep.subr.bf16.mxu1 %v12620_v56  ;;  %10976 = vmatpush3.bf16.msra.mxu0 %v12315_v29 }
 0x8a5   :  { %10977 = vmatprep.subr.bf16.mxu0 %v12620_v56 }
 0x8a7   :  { %10938 = vmatpush3.bf16.msra.mxu1 %v12313_v63 }
 0x8a8   :  { %10939 = vmatprep.subr.bf16.mxu1 %v12620_v56  ;;  %10978 = vmatpush3.bf16.msra.mxu0 %v12317_v40 }
 0x8aa   :  { %10912 = vmatmul.mubr.msk.bf16.gmra.mxu1 %vm7010_vm4, %v10421_v20 }
 0x8ab   :  { %10915 = vmatprep.mubr.msk.bf16.mxu1 %vm7010_vm4, %v10422_v25  ;;  %10940 = vmatpush3.bf16.msra.mxu1 %v12316_v37 }
 0x8ac   :  { %10941 = vmatprep.subr.bf16.mxu1 %v12620_v56  ;;  %10980 = vmatmul.mubr.msk.bf16.vlgmr.msra.gmra.mxu0 %vm6536_vm3, %v13085_v61 }
 0x8ad   :  { %10983 = vmatprep.mubr.msk.bf16.mxu0 %vm12621_vm2, %v12620_v56 }
 0x8af   :  { %10942 = vmatpush3.bf16.msra.mxu1 %v12318_v15 }
 0x8b0   :  { %11007 = vmatprep.subr.bf16.mxu1 %v12620_v56 }
 0x8b2   :  { %10916 = vmatmul.mubr.msk.bf16.gmra.mxu1 %vm7010_vm4, %v10423_v39 }
 0x8b3   :  { %10943 = vmatprep.mubr.msk.bf16.mxu1 %vm12621_vm2, %v12620_v56 }
 0x93a   :  { %v10893_v33 = vpop.f32.mrf.mxu1 }
 0x93c   :  { %v7993_v55 = vpop.f32.mrf.mxu1 }
 0x93e   :  { %v10894_v7 = vpop.f32.mrf.mxu1  ;;  %v10925_v42 = vpop.f32.mrf.mxu0 }
 0x940   :  { %v7996_v48 = vpop.f32.mrf.mxu1  ;;  %v8216_v21 = vpop.f32.mrf.mxu0 }
 0x942   :  { %v10926_v20 = vpop.f32.mrf.mxu0 }
 0x944   :  { %v8219_v4 = vpop.f32.mrf.mxu0 }
 0x94a   :  { %v13646_v41 = vpop.f32.mrf.mxu1 }
 0x94c   :  { %v8009_v26 = vpop.f32.mrf.mxu1 }
 0x94e   :  { %v13648_v17 = vpop.f32.mrf.mxu1  ;;  %v10929_v46 = vpop.f32.mrf.mxu0 }
 0x950   :  { %v8012_v60 = vpop.f32.mrf.mxu1  ;;  %v8232_v22 = vpop.f32.mrf.mxu0 }
 0x952   :  { %v10930_v19 = vpop.f32.mrf.mxu0 }
 0x954   :  { %v8235_v8 = vpop.f32.mrf.mxu0 }
 0x95a   :  { %v13650_v58 = vpop.f32.mrf.mxu1 }
 0x95c   :  { %v13652_v10 = vpop.f32.mrf.mxu1 }
 0x95e   :  { %v13654_v34 = vpop.f32.mrf.mxu1  ;;  %v10933_v37 = vpop.f32.mrf.mxu0 }
 0x960   :  { %v13656_v23 = vpop.f32.mrf.mxu1 }
 0x962   :  { %v10909_v49 = vpop.f32.mrf.mxu1 }
 0x963   :  { %v8121_v52 = vadd.f32 %v10909_v49, %v10893_v33 }
 0x964   :  { %v8112_v27 = vpop.f32.mrf.mxu1 }
 0x965   :  { %v8113_v28 = vadd.f32 %v8112_v27, %v7993_v55  ;;  %v8265_v24 = vadd.f32 %v10925_v42, %v8121_v52 }
 0x966   :  { %v10910_v62 = vpop.f32.mrf.mxu1 }
 0x967   :  { %v8263_v13 = vadd.f32 %v8216_v21, %v8113_v28  ;;  %v8124_v25 = vadd.f32 %v10910_v62, %v10894_v7  ;;  %v8284_v38 = vadd.f32 %v13658_v31, %v8265_v24 }
 0x968   :  { %v8115_v18 = vpop.f32.mrf.mxu1 }
 0x969   :  { %v8282_v11 = vadd.f32 %v13658_v31, %v8263_v13  ;;  %v8116_v44 = vadd.f32 %v8115_v18, %v7996_v48  ;;  %v8266_v47 = vadd.f32 %v10926_v20, %v8124_v25  ;;  %v8296_v59 = vmax.f32 %v8284_v38, 0.0 }
 0x96a   :  { %v10913_v53 = vpop.f32.mrf.mxu1 }
 0x96b   :  { %v8294_v45 = vmax.f32 %v8282_v11, 0.0  ;;  %v8264_v12 = vadd.f32 %v8219_v4, %v8116_v44  ;;  %v8285_v1 = vadd.f32 %v13658_v31, %v8266_v47  ;;  %v8137_v33 = vadd.f32 %v10913_v53, %v13646_v41  ;;  %v8248_v41 = vpop.f32.mrf.mxu0 }
 0x96c   :  { %v8128_v5 = vpop.f32.mrf.mxu1 }
 0x96d   :  { %v8306_v9 = vpack.c.bf16 %v8294_v45, %v8294_v45  ;;  %v8283_v32 = vadd.f32 %v13658_v31, %v8264_v12  ;;  %v8129_v14 = vadd.f32 %v8128_v5, %v8009_v26  ;;  %v8297_v2 = vmax.f32 %v8285_v1, 0.0  ;;  %v12322_v26 = vld [vmem:[%s14001_s13 + $0x40] sm:$0xff]   ;;  %v10934_v28 = vpop.f32.mrf.mxu0 }
 0x96e   :  { %v10914_v54 = vpop.f32.mrf.mxu1 }
 0x96f   :  { %v10282_v3 = vcombine.low %v12619_v0, %v8306_v9  ;;  %v8295_v39 = vmax.f32 %v8283_v32, 0.0  ;;  %v8267_v6 = vadd.f32 %v8232_v22, %v8129_v14  ;;  %v13686_v15 = vpack.c.bf16 %v8297_v2, %v8296_v59  ;;  %v8251_v52 = vpop.f32.mrf.mxu0 }
 0x970   :  { %v8131_v36 = vpop.f32.mrf.mxu1  ;;  %v8140_v55 = vadd.f32 %v10914_v54, %v13648_v17  ;;  %v8269_v17 = vadd.f32 %v10929_v46, %v8137_v33 }
 0x971   :  { %v13668_v43 = vpack.c.bf16 %v8295_v39, %v8294_v45  ;;  %v8132_v50 = vadd.f32 %v8131_v36, %v8012_v60  ;;  %10944 = vmatmul.mubr.msk.bf16.vlgmr.msra.gmra.mxu1 %vm6536_vm3, %v10282_v3  ;;  %v10425_v29 = vpack.c.bf16 %v8296_v59, %v8295_v39  ;;  %v8286_v40 = vadd.f32 %v13658_v31, %v8267_v6  ;;  %v13742_v36 = vpop.f32.mrf.mxu0 }
 0x972   :  { %11008 = vmatpush3.bf16.msra.mxu1 %v12319_v57  ;;  %v10917_v51 = vpop.f32.mrf.mxu1  ;;  %10947 = vmatprep.mubr.msk.bf16.mxu1 %vm12621_vm2, %v12620_v56  ;;  %v8270_v42 = vadd.f32 %v10930_v19, %v8140_v55  ;;  %v8288_v4 = vadd.f32 %v13658_v31, %v8269_v17 }
 0x973   :  { %10984 = vmatmul.mubr.msk.bf16.gmra.mxu0 %vm6536_vm3, %v13668_v43  ;;  %11009 = vmatprep.subr.bf16.mxu1 %v12620_v56  ;;  %v8268_v35 = vadd.f32 %v8235_v8, %v8132_v50  ;;  %v8298_v60 = vmax.f32 %v8286_v40, 0.0  ;;  %v10981_v38 = vpop.f32.mrf.mxu0  ;;  %v8808_v8 = vld [vmem:[#allocation19] sm:$0x3] }
 0x974   :  { %10987 = vmatprep.mubr.msk.bf16.mxu0 %vm12621_vm2, %v12620_v56  ;;  %v8144_v63 = vpop.f32.mrf.mxu1  ;;  %v8289_v62 = vadd.f32 %v13658_v31, %v8270_v42  ;;  %v13764_v59 = vsel %vm8872_vm5, %v8808_v8, 0 }
 0x975   :  { %v8287_v7 = vadd.f32 %v13658_v31, %v8268_v35  ;;  %v10426_v49 = vpack.c.bf16 %v8298_v60, %v8297_v2  ;;  %v8145_v27 = vadd.f32 %v8144_v63, %v13652_v10  ;;  %v8300_v10 = vmax.f32 %v8288_v4, 0.0  ;;  %v13746_v1 = vpop.f32.mrf.mxu0 }
 0x976   :  { %11010 = vmatpush3.bf16.msra.mxu1 %v12320_v30  ;;  %v10918_v48 = vpop.f32.mrf.mxu1  ;;  %v8301_v11 = vmax.f32 %v8289_v62, 0.0  ;;  %v9104_v30 = vld [vmem:[#allocation19 + $0x4] sm:$0x3] }
 0x977   :  { %11011 = vmatprep.subr.bf16.mxu1 %v12620_v56  ;;  %v8299_v21 = vmax.f32 %v8287_v7, 0.0  ;;  %v8271_v46 = vadd.f32 %v8248_v41, %v8145_v27  ;;  %v8156_v12 = vadd.f32 %v10918_v48, %v13654_v34  ;;  %v10982_v50 = vpop.f32.mrf.mxu0  ;;  %v9106_v6 = vsel %vm8872_vm5, %v9104_v30, 0 }
 0x978   :  { %v8147_v20 = vpop.f32.mrf.mxu1  ;;  %v10433_v45 = vpack.c.bf16 %v8301_v11, %v8300_v10 }
 0x979   :  { %10948 = vmatmul.mubr.msk.bf16.gmra.mxu1 %vm6536_vm3, %v10425_v29  ;;  %v10432_v13 = vpack.c.bf16 %v8299_v21, %v8298_v60  ;;  %v8148_v18 = vadd.f32 %v8147_v20, %v13656_v23  ;;  %v10427_v44 = vpack.c.bf16 %v8300_v10, %v8299_v21  ;;  %v8290_v53 = vadd.f32 %v13658_v31, %v8271_v46 }
 0x97a   :  { %10951 = vmatprep.mubr.msk.bf16.mxu1 %vm12621_vm2, %v12620_v56  ;;  %11012 = vmatpush3.bf16.msra.mxu1 %v12321_v16  ;;  %v8153_v23 = vadd.f32 %v10917_v51, %v13650_v58  ;;  %v8274_v9 = vadd.f32 %v10934_v28, %v8156_v12 }
 0x97b   :  { %10988 = vmatmul.mubr.msk.bf16.gmra.mxu0 %vm6536_vm3, %v13686_v15  ;;  %11013 = vmatprep.subr.bf16.mxu1 %v12620_v56  ;;  %v8272_v25 = vadd.f32 %v8251_v52, %v8148_v18  ;;  %v8302_v5 = vmax.f32 %v8290_v53, 0.0 }
 0x97c   :  { %10991 = vmatprep.mubr.msk.bf16.mxu0 %vm12621_vm2, %v12620_v56  ;;  %v8273_v24 = vadd.f32 %v10933_v37, %v8153_v23  ;;  %v8293_v34 = vadd.f32 %v13658_v31, %v8274_v9 }
 0x97d   :  { %v8291_v22 = vadd.f32 %v13658_v31, %v8272_v25  ;;  %v10428_v32 = vpack.c.bf16 %v8302_v5, %v8301_v11 }
 0x97e   :  { %11014 = vmatpush3.bf16.msra.mxu1 %v12322_v26  ;;  %v8292_v58 = vadd.f32 %v13658_v31, %v8273_v24  ;;  %v8305_v3 = vmax.f32 %v8293_v34, 0.0 }
 0x97f   :  { %v8303_v47 = vmax.f32 %v8291_v22, 0.0  ;;  %11099 = vmatprep.subr.msk.bf16.mxu1 %vm8872_vm5, %v9104_v30 }
 0x980   :  { %v8304_v57 = vmax.f32 %v8292_v58, 0.0  ;;  %v8317_v31 = vpack.c.bf16 %v8305_v3, %v8305_v3 }
 0x981   :  { %10952 = vmatmul.mubr.msk.bf16.gmra.mxu1 %vm6536_vm3, %v10426_v49  ;;  %v10434_v54 = vpack.c.bf16 %v8303_v47, %v8302_v5 }
 0x982   :  { %10955 = vmatprep.mubr.msk.bf16.mxu1 %vm12621_vm2, %v12620_v56  ;;  %v10429_v39 = vpack.c.bf16 %v8304_v57, %v8303_v47  ;;  %v10435_v14 = vpack.c.bf16 %v8305_v3, %v8304_v57  ;;  %v10288_v19 = vcombine.low %v8317_v31, %v12619_v0 }
 0x983   :  { %10992 = vmatmul.mubr.msk.bf16.gmra.mxu0 %vm6536_vm3, %v10432_v13 }
 0x984   :  { %10995 = vmatprep.mubr.msk.bf16.mxu0 %vm12621_vm2, %v12620_v56 }
 0x989   :  { %10956 = vmatmul.mubr.msk.bf16.gmra.mxu1 %vm6536_vm3, %v10427_v44 }
 0x98a   :  { %10959 = vmatprep.mubr.msk.bf16.mxu1 %vm12621_vm2, %v12620_v56 }
 0x98b   :  { %10996 = vmatmul.mubr.msk.bf16.gmra.mxu0 %vm6536_vm3, %v10433_v45 }
 0x98c   :  { %10999 = vmatprep.mubr.msk.bf16.mxu0 %vm12621_vm2, %v12620_v56 }
 0x991   :  { %10960 = vmatmul.mubr.msk.bf16.gmra.mxu1 %vm6536_vm3, %v10428_v32 }
 0x992   :  { %10963 = vmatprep.mubr.msk.bf16.mxu1 %vm12621_vm2, %v12620_v56 }
 0x993   :  { %11000 = vmatmul.mubr.msk.bf16.gmra.mxu0 %vm6536_vm3, %v10434_v54 }
 0x994   :  { %11003 = vmatprep.mubr.msk.bf16.mxu0 %vm12621_vm2, %v12620_v56 }
 0x999   :  { %10964 = vmatmul.mubr.msk.bf16.gmra.mxu1 %vm6536_vm3, %v10429_v39 }
 0x99a   :  { %10967 = vmatprep.mubr.msk.bf16.mxu1 %vm12621_vm2, %v12620_v56 }
 0x99b   :  { %11004 = vmatmul.mubr.msk.bf16.gmra.mxu0 %vm6536_vm3, %v10435_v14 }
 0x9a1   :  { %10968 = vmatmul.mubr.msk.bf16.gmra.mxu1 %vm6536_vm3, %v10288_v19 }
 0x9a2   :  { %11015 = vmatprep.mubr.msk.bf16.mxu1 %vm12621_vm2, %v12620_v56 }
 0x9a9   :  { %11016 = vmatmul.mubr.msk.bf16.vlgmr.msra.gmra.mxu1 %vm6536_vm3, %v13668_v43  ;;  %v8810_v43 = vld [vmem:[#allocation19 + $0x2] sm:$0x3] }
 0x9aa   :  { %11019 = vmatprep.mubr.msk.bf16.mxu1 %vm12621_vm2, %v12620_v56  ;;  %11097 = vmatprep.subr.msk.bf16.mxu0 %vm8872_vm5, %v8810_v43  ;;  %v8874_v51 = vsel %vm8872_vm5, %v8810_v43, 0  ;;  %v13809_v43 = vld [vmem:[#allocation18] ss:$0 sm:$0xff] }
 0x9ab   :  { %11044 = vmatpush3.bf16.msra.mxu0 %v8874_v51  ;;  %11080 = vmatpush3.bf16.msra.mxu1 %v9106_v6 }
 0x9ac   :  { %11098 = vmatprep.subr.msk.bf16.mxu0 %vm8872_vm5, %v8808_v8 }
 0x9b1   :  { %11020 = vmatmul.mubr.msk.bf16.gmra.mxu1 %vm6536_vm3, %v13686_v15 }
 0x9b2   :  { %11023 = vmatprep.mubr.msk.bf16.mxu1 %vm12621_vm2, %v12620_v56 }
 0x9b9   :  { %11024 = vmatmul.mubr.msk.bf16.gmra.mxu1 %vm6536_vm3, %v10432_v13 }
 0x9ba   :  { %11027 = vmatprep.mubr.msk.bf16.mxu1 %vm12621_vm2, %v12620_v56 }
 0x9c1   :  { %11028 = vmatmul.mubr.msk.bf16.gmra.mxu1 %vm6536_vm3, %v10433_v45 }
 0x9c2   :  { %11031 = vmatprep.mubr.msk.bf16.mxu1 %vm12621_vm2, %v12620_v56 }
 0x9c9   :  { %11032 = vmatmul.mubr.msk.bf16.gmra.mxu1 %vm6536_vm3, %v10434_v54 }
 0x9ca   :  { %11035 = vmatprep.mubr.msk.bf16.mxu1 %vm12621_vm2, %v12620_v56 }
 0x9d1   :  { %11036 = vmatmul.mubr.msk.bf16.gmra.mxu1 %vm6536_vm3, %v10435_v14 }
 0x9d2   :  { %11039 = vmatprep.mubr.msk.bf16.mxu1 %vm12621_vm2, %v12620_v56 }
 0x9d9   :  { %11040 = vmatmul.mubr.msk.bf16.gmra.mxu1 %vm6536_vm3, %v13085_v61 }
 0xa31   :  { %v8445_v2 = vpop.f32.mrf.mxu1 }
 0xa32   :  { %v8583_v38 = vadd.f32 %v13742_v36, %v8445_v2 }
 0xa33   :  { %v10945_v35 = vpop.f32.mrf.mxu1  ;;  %v8590_v63 = vpop.f32.mrf.mxu0 }
 0xa35   :  { %v8448_v56 = vpop.f32.mrf.mxu1  ;;  %v10985_v16 = vpop.f32.mrf.mxu0 }
 0xa36   :  { %v8586_v6 = vadd.f32 %v13746_v1, %v8448_v56 }
 0xa37   :  { %v10946_v29 = vpop.f32.mrf.mxu1  ;;  %v13766_v40 = vpop.f32.mrf.mxu0 }
 0xa39   :  { %v8453_v37 = vpop.f32.mrf.mxu1  ;;  %v10986_v15 = vpop.f32.mrf.mxu0 }
 0xa3b   :  { %v10949_v33 = vpop.f32.mrf.mxu1  ;;  %v13768_v55 = vpop.f32.mrf.mxu0 }
 0xa3c   :  { %v8591_v33 = vadd.f32 %v8590_v63, %v8453_v37 }
 0xa3d   :  { %v8456_v7 = vpop.f32.mrf.mxu1  ;;  %v10989_v48 = vpop.f32.mrf.mxu0 }
 0xa3e   :  { %v8594_v1 = vadd.f32 %v13766_v40, %v8456_v7 }
 0xa3f   :  { %v10950_v26 = vpop.f32.mrf.mxu1  ;;  %v13770_v60 = vpop.f32.mrf.mxu0 }
 0xa41   :  { %v13772_v41 = vpop.f32.mrf.mxu1  ;;  %v10990_v17 = vpop.f32.mrf.mxu0 }
 0xa43   :  { %v10953_v42 = vpop.f32.mrf.mxu1  ;;  %v13774_v21 = vpop.f32.mrf.mxu0 }
 0xa45   :  { %v13776_v20 = vpop.f32.mrf.mxu1  ;;  %v10993_v49 = vpop.f32.mrf.mxu0 }
 0xa47   :  { %v10954_v27 = vpop.f32.mrf.mxu1  ;;  %v13778_v28 = vpop.f32.mrf.mxu0 }
 0xa49   :  { %v13780_v4 = vpop.f32.mrf.mxu1  ;;  %v10994_v62 = vpop.f32.mrf.mxu0 }
 0xa4a   :  { %v8599_v62 = vadd.f32 %v13768_v55, %v13772_v41 }
 0xa4b   :  { %v10957_v13 = vpop.f32.mrf.mxu1  ;;  %v13782_v18 = vpop.f32.mrf.mxu0 }
 0xa4d   :  { %v13784_v46 = vpop.f32.mrf.mxu1  ;;  %v10997_v52 = vpop.f32.mrf.mxu0 }
 0xa4f   :  { %v10958_v10 = vpop.f32.mrf.mxu1  ;;  %v13786_v11 = vpop.f32.mrf.mxu0 }
 0xa51   :  { %v13788_v25 = vpop.f32.mrf.mxu1  ;;  %v10998_v44 = vpop.f32.mrf.mxu0 }
 0xa52   :  { %v8602_v44 = vadd.f32 %v13770_v60, %v13776_v20 }
 0xa53   :  { %v10961_v53 = vpop.f32.mrf.mxu1  ;;  %v13790_v45 = vpop.f32.mrf.mxu0 }
 0xa55   :  { %v13792_v23 = vpop.f32.mrf.mxu1  ;;  %v11001_v12 = vpop.f32.mrf.mxu0 }
 0xa57   :  { %v10962_v22 = vpop.f32.mrf.mxu1  ;;  %v13794_v5 = vpop.f32.mrf.mxu0 }
 0xa59   :  { %v13796_v24 = vpop.f32.mrf.mxu1  ;;  %v11002_v9 = vpop.f32.mrf.mxu0 }
 0xa5a   :  { %v8607_v9 = vadd.f32 %v13774_v21, %v13780_v4 }
 0xa5b   :  { %v10965_v47 = vpop.f32.mrf.mxu1  ;;  %v13798_v32 = vpop.f32.mrf.mxu0 }
 0xa5d   :  { %v13800_v58 = vpop.f32.mrf.mxu1  ;;  %v11005_v34 = vpop.f32.mrf.mxu0 }
 0xa5f   :  { %v10966_v54 = vpop.f32.mrf.mxu1  ;;  %v13802_v57 = vpop.f32.mrf.mxu0 }
 0xa60   :  { %v8610_v54 = vadd.f32 %v13778_v28, %v13784_v46  ;;  %v8618_v46 = vadd.f32 %v13786_v11, %v13792_v23  ;;  %v8626_v11 = vadd.f32 %v13794_v5, %v13800_v58 }
 0xa61   :  { %v13804_v3 = vpop.f32.mrf.mxu1  ;;  %v11006_v39 = vpop.f32.mrf.mxu0 }
 0xa63   :  { %v10969_v14 = vpop.f32.mrf.mxu1 }
 0xa65   :  { %v13806_v31 = vpop.f32.mrf.mxu1 }
 0xa66   :  { %v8634_v5 = vadd.f32 %v13802_v57, %v13806_v31 }
 0xa67   :  { %v10970_v19 = vpop.f32.mrf.mxu1 }
 0xa69   :  { %v8704_v50 = vpop.f32.mrf.mxu1 }
 0xa6a   :  { %v8759_v51 = vadd.f32 %v8704_v50, %v8583_v38  ;;  %v8615_v38 = vadd.f32 %v13782_v18, %v13788_v25  ;;  %v8623_v18 = vadd.f32 %v13790_v45, %v13796_v24  ;;  %v8631_v45 = vadd.f32 %v13798_v32, %v13804_v3 }
 0xa6b   :  { %v11017_v30 = vpop.f32.mrf.mxu1 }
 0xa6c   :  { %v8780_v8 = vadd.f32 %v13809_v43, %v8759_v51 }
 0xa6d   :  { %v8707_v35 = vpop.f32.mrf.mxu1 }
 0xa6e   :  { %v8794_v16 = vpack.c.bf16 %v8780_v8, %v8780_v8  ;;  %v8760_v29 = vadd.f32 %v8707_v35, %v8586_v6 }
 0xa6f   :  { %v11018_v15 = vpop.f32.mrf.mxu1 }
 0xa70   :  { %v10337_v48 = vcombine.low %v12619_v0, %v8794_v16  ;;  %v8781_v26 = vadd.f32 %v13809_v43, %v8760_v29 }
 0xa71   :  { %v8712_v36 = vpop.f32.mrf.mxu1 }
 0xa72   :  { %v13815_v2 = vpack.c.bf16 %v8781_v26, %v8780_v8  ;;  %v8761_v17 = vadd.f32 %v8712_v36, %v8591_v33  ;;  %11045 = vmatprep.mubr.msk.bf16.mxu0 %vm8847_vm6, %v10337_v48 }
 0xa73   :  { %v11021_v42 = vpop.f32.mrf.mxu1 }
 0xa74   :  { %v8782_v56 = vadd.f32 %v13809_v43, %v8761_v17  ;;  %11081 = vmatprep.mubr.msk.bf16.mxu1 %vm8847_vm6, %v13815_v2 }
 0xa75   :  { %v8715_v49 = vpop.f32.mrf.mxu1 }
 0xa76   :  { %v10436_v63 = vpack.c.bf16 %v8782_v56, %v8781_v26  ;;  %v8762_v37 = vadd.f32 %v8715_v49, %v8594_v1 }
 0xa77   :  { %v11022_v27 = vpop.f32.mrf.mxu1 }
 0xa78   :  { %v8783_v13 = vadd.f32 %v13809_v43, %v8762_v37  ;;  %11046 = vmatmul.mubr.msk.bf16.vlgmr.msra.gmra.mxu0 %vm8847_vm6, %v10436_v63 }
 0xa79   :  { %v8720_v52 = vpop.f32.mrf.mxu1  ;;  %11062 = vmatpush3.bf16.msra.mxu0 %v13764_v59 }
 0xa7a   :  { %v13827_v40 = vpack.c.bf16 %v8783_v13, %v8782_v56  ;;  %v8763_v7 = vadd.f32 %v8720_v52, %v8599_v62 }
 0xa7b   :  { %v11025_v10 = vpop.f32.mrf.mxu1 }
 0xa7c   :  { %v8784_v53 = vadd.f32 %v13809_v43, %v8763_v7  ;;  %11082 = vmatmul.mubr.msk.bf16.vlgmr.msra.gmra.mxu1 %vm8847_vm6, %v13827_v40 }
 0xa7d   :  { %v8723_v55 = vpop.f32.mrf.mxu1 }
 0xa7e   :  { %v10437_v41 = vpack.c.bf16 %v8784_v53, %v8783_v13  ;;  %v8764_v12 = vadd.f32 %v8723_v55, %v8602_v44 }
 0xa7f   :  { %v11026_v22 = vpop.f32.mrf.mxu1 }
 0xa80   :  { %v8785_v59 = vadd.f32 %v13809_v43, %v8764_v12  ;;  %11049 = vmatprep.mubr.msk.bf16.mxu0 %vm8847_vm6, %v10437_v41 }
 0xa81   :  { %v8728_v47 = vpop.f32.mrf.mxu1 }
 0xa82   :  { %v13838_v34 = vpack.c.bf16 %v8785_v59, %v8784_v53  ;;  %v8765_v60 = vadd.f32 %v8728_v47, %v8607_v9 }
 0xa83   :  { %v11029_v20 = vpop.f32.mrf.mxu1 }
 0xa84   :  { %v8786_v39 = vadd.f32 %v13809_v43, %v8765_v60  ;;  %11085 = vmatprep.mubr.msk.bf16.mxu1 %vm8847_vm6, %v13838_v34 }
 0xa85   :  { %v8731_v14 = vpop.f32.mrf.mxu1 }
 0xa86   :  { %v10438_v19 = vpack.c.bf16 %v8786_v39, %v8785_v59  ;;  %v8766_v21 = vadd.f32 %v8731_v14, %v8610_v54 }
 0xa87   :  { %v11030_v4 = vpop.f32.mrf.mxu1 }
 0xa88   :  { %v8787_v50 = vadd.f32 %v13809_v43, %v8766_v21  ;;  %11050 = vmatmul.mubr.msk.bf16.gmra.mxu0 %vm8847_vm6, %v10438_v19 }
 0xa89   :  { %v8736_v51 = vpop.f32.mrf.mxu1 }
 0xa8a   :  { %v10445_v30 = vpack.c.bf16 %v8787_v50, %v8786_v39  ;;  %v8767_v6 = vadd.f32 %v8736_v51, %v8615_v38 }
 0xa8b   :  { %v11033_v28 = vpop.f32.mrf.mxu1 }
 0xa8c   :  { %v8788_v8 = vadd.f32 %v13809_v43, %v8767_v6  ;;  %11086 = vmatmul.mubr.msk.bf16.gmra.mxu1 %vm8847_vm6, %v10445_v30 }
 0xa8d   :  { %v8739_v35 = vpop.f32.mrf.mxu1 }
 0xa8e   :  { %v10439_v16 = vpack.c.bf16 %v8788_v8, %v8787_v50  ;;  %v8768_v29 = vadd.f32 %v8739_v35, %v8618_v46  ;;  %v13900_v50 = vld [vmem:[#allocation21] ss:$0 sm:$0xff] }
 0xa8f   :  { %v11034_v15 = vpop.f32.mrf.mxu1 }
 0xa90   :  { %v8789_v25 = vadd.f32 %v13809_v43, %v8768_v29  ;;  %11053 = vmatprep.mubr.msk.bf16.mxu0 %vm8847_vm6, %v10439_v16 }
 0xa91   :  { %v8744_v33 = vpop.f32.mrf.mxu1 }
 0xa92   :  { %v10446_v48 = vpack.c.bf16 %v8789_v25, %v8788_v8  ;;  %v8769_v26 = vadd.f32 %v8744_v33, %v8623_v18 }
 0xa93   :  { %v11037_v36 = vpop.f32.mrf.mxu1 }
 0xa94   :  { %v8790_v23 = vadd.f32 %v13809_v43, %v8769_v26  ;;  %11089 = vmatprep.mubr.msk.bf16.mxu1 %vm8847_vm6, %v10446_v48 }
 0xa95   :  { %v8747_v17 = vpop.f32.mrf.mxu1 }
 0xa96   :  { %v10440_v42 = vpack.c.bf16 %v8790_v23, %v8789_v25  ;;  %v8770_v1 = vadd.f32 %v8747_v17, %v8626_v11 }
 0xa97   :  { %v11038_v56 = vpop.f32.mrf.mxu1 }
 0xa98   :  { %v8791_v24 = vadd.f32 %v13809_v43, %v8770_v1  ;;  %11054 = vmatmul.mubr.msk.bf16.gmra.mxu0 %vm8847_vm6, %v10440_v42 }
 0xa99   :  { %v8752_v49 = vpop.f32.mrf.mxu1 }
 0xa9a   :  { %v10447_v63 = vpack.c.bf16 %v8791_v24, %v8790_v23  ;;  %v8771_v37 = vadd.f32 %v8752_v49, %v8631_v45 }
 0xa9b   :  { %v11041_v27 = vpop.f32.mrf.mxu1 }
 0xa9c   :  { %v8792_v58 = vadd.f32 %v13809_v43, %v8771_v37  ;;  %11090 = vmatmul.mubr.msk.bf16.gmra.mxu1 %vm8847_vm6, %v10447_v63 }
 0xa9d   :  { %v8755_v62 = vpop.f32.mrf.mxu1 }
 0xa9e   :  { %v10441_v13 = vpack.c.bf16 %v8792_v58, %v8791_v24  ;;  %v8772_v52 = vadd.f32 %v8755_v62, %v8634_v5 }
 0xa9f   :  { %v11042_v7 = vpop.f32.mrf.mxu1 }
 0xaa0   :  { %v8793_v32 = vadd.f32 %v13809_v43, %v8772_v52  ;;  %11057 = vmatprep.mubr.msk.bf16.mxu0 %vm8847_vm6, %v10441_v13 }
 0xaa2   :  { %v8807_v3 = vpack.c.bf16 %v8793_v32, %v8793_v32  ;;  %v10448_v10 = vpack.c.bf16 %v8793_v32, %v8792_v58 }
 0xaa4   :  { %v10344_v44 = vcombine.low %v8807_v3, %v12619_v0  ;;  %11093 = vmatprep.mubr.msk.bf16.mxu1 %vm8847_vm6, %v10448_v10 }
 0xaa5   :  { %11094 = vmatmul.mubr.msk.bf16.gmra.mxu1 %vm8847_vm6, %v13085_v61 }
 0xaa6   :  { %11058 = vmatmul.mubr.msk.bf16.gmra.mxu0 %vm8847_vm6, %v10344_v44 }
 0xaa7   :  { %11063 = vmatprep.mubr.msk.bf16.mxu0 %vm8847_vm6, %v13085_v61 }
 0xaae   :  { %11064 = vmatmul.mubr.msk.bf16.vlgmr.msra.gmra.mxu0 %vm8847_vm6, %v13815_v2 }
 0xaaf   :  { %11067 = vmatprep.mubr.msk.bf16.mxu0 %vm8847_vm6, %v13827_v40 }
 0xab6   :  { %11068 = vmatmul.mubr.msk.bf16.gmra.mxu0 %vm8847_vm6, %v13838_v34 }
 0xab7   :  { %11071 = vmatprep.mubr.msk.bf16.mxu0 %vm8847_vm6, %v10445_v30 }
 0xabe   :  { %11072 = vmatmul.mubr.msk.bf16.gmra.mxu0 %vm8847_vm6, %v10446_v48 }
 0xabf   :  { %11075 = vmatprep.mubr.msk.bf16.mxu0 %vm8847_vm6, %v10447_v63 }
 0xac6   :  { %11076 = vmatmul.mubr.msk.bf16.gmra.mxu0 %vm8847_vm6, %v10448_v10 }
 0xb38   :  { %v11047_v0 = vpop.f32.mrf.mxu0 }
 0xb3a   :  { %v8910_v57 = vpop.f32.mrf.mxu0 }
 0xb3c   :  { %v11048_v61 = vpop.f32.mrf.mxu0  ;;  %v11083_v40 = vpop.f32.mrf.mxu1 }
 0xb3e   :  { %v8913_v31 = vpop.f32.mrf.mxu0  ;;  %v9142_v12 = vpop.f32.mrf.mxu1 }
 0xb40   :  { %v11084_v9 = vpop.f32.mrf.mxu1 }
 0xb42   :  { %v9145_v47 = vpop.f32.mrf.mxu1 }
 0xb48   :  { %v11051_v43 = vpop.f32.mrf.mxu0 }
 0xb4a   :  { %v8926_v2 = vpop.f32.mrf.mxu0 }
 0xb4c   :  { %v11052_v53 = vpop.f32.mrf.mxu0  ;;  %v11087_v60 = vpop.f32.mrf.mxu1 }
 0xb4e   :  { %v8929_v55 = vpop.f32.mrf.mxu0  ;;  %v9158_v39 = vpop.f32.mrf.mxu1 }
 0xb50   :  { %v11088_v21 = vpop.f32.mrf.mxu1 }
 0xb52   :  { %v9161_v28 = vpop.f32.mrf.mxu1 }
 0xb58   :  { %v11055_v41 = vpop.f32.mrf.mxu0 }
 0xb5a   :  { %v8942_v22 = vpop.f32.mrf.mxu0 }
 0xb5c   :  { %v13888_v59 = vpop.f32.mrf.mxu0  ;;  %v11091_v29 = vpop.f32.mrf.mxu1 }
 0xb5e   :  { %v13890_v34 = vpop.f32.mrf.mxu0  ;;  %v9174_v23 = vpop.f32.mrf.mxu1 }
 0xb60   :  { %v11092_v37 = vpop.f32.mrf.mxu1 }
 0xb62   :  { %v9177_v3 = vpop.f32.mrf.mxu1 }
 0xb66   :  { %v13892_v20 = vpop.f32.mrf.mxu0 }
 0xb68   :  { %v13894_v54 = vpop.f32.mrf.mxu0 }
 0xb6a   :  { %v13896_v14 = vpop.f32.mrf.mxu0 }
 0xb6c   :  { %v13898_v19 = vpop.f32.mrf.mxu0 }
 0xb6e   :  { %v11065_v4 = vpop.f32.mrf.mxu0 }
 0xb6f   :  { %v9049_v38 = vadd.f32 %v11065_v4, %v11047_v0 }
 0xb70   :  { %v9040_v51 = vpop.f32.mrf.mxu0 }
 0xb71   :  { %v9207_v30 = vadd.f32 %v11083_v40, %v9049_v38  ;;  %v9041_v6 = vadd.f32 %v9040_v51, %v8910_v57 }
 0xb72   :  { %v11066_v46 = vpop.f32.mrf.mxu0 }
 0xb73   :  { %v9230_v8 = vadd.f32 %v13900_v50, %v9207_v30  ;;  %v9205_v35 = vadd.f32 %v9142_v12, %v9041_v6  ;;  %v9052_v16 = vadd.f32 %v11066_v46, %v11048_v61 }
 0xb74   :  { %v9043_v15 = vpop.f32.mrf.mxu0 }
 0xb75   :  { %9246 = vst.msk [vmem:[%s14005_s17 + $0x10] sm:$0xff] %vm8847_vm6, %v9230_v8  ;;  %v9228_v18 = vadd.f32 %v13900_v50, %v9205_v35  ;;  %v9208_v25 = vadd.f32 %v11084_v9, %v9052_v16  ;;  %v9044_v33 = vadd.f32 %v9043_v15, %v8913_v31  ;;  %v11095_v31 = vpop.f32.mrf.mxu1 }
 0xb76   :  { %v11069_v48 = vpop.f32.mrf.mxu0 }
 0xb77   :  { %9244 = vst.msk [vmem:[%s14005_s17] sm:$0xff] %vm8847_vm6, %v9228_v18  ;;  %v9231_v26 = vadd.f32 %v13900_v50, %v9208_v25  ;;  %v9206_v36 = vadd.f32 %v9145_v47, %v9044_v33  ;;  %v9065_v11 = vadd.f32 %v11069_v48, %v11051_v43 }
 0xb78   :  { %v9056_v17 = vpop.f32.mrf.mxu0 }
 0xb79   :  { %9247 = vst.msk [vmem:[%s14005_s17 + $0x18] sm:$0xff] %vm8847_vm6, %v9231_v26  ;;  %v9229_v42 = vadd.f32 %v13900_v50, %v9206_v36  ;;  %v9211_v1 = vadd.f32 %v11087_v60, %v9065_v11  ;;  %v9057_v56 = vadd.f32 %v9056_v17, %v8926_v2 }
 0xb7a   :  { %v11070_v45 = vpop.f32.mrf.mxu0 }
 0xb7b   :  { %9245 = vst.msk [vmem:[%s14005_s17 + $0x8] sm:$0xff] %vm8847_vm6, %v9229_v42  ;;  %v9234_v24 = vadd.f32 %v13900_v50, %v9211_v1  ;;  %v9209_v49 = vadd.f32 %v9158_v39, %v9057_v56  ;;  %v9068_v63 = vadd.f32 %v11070_v45, %v11052_v53 }
 0xb7c   :  { %v9059_v27 = vpop.f32.mrf.mxu0 }
 0xb7d   :  { %9250 = vst.msk [vmem:[%s14005_s17 + $0x30] sm:$0xff] %vm8847_vm6, %v9234_v24  ;;  %v9232_v5 = vadd.f32 %v13900_v50, %v9209_v49  ;;  %v9212_v58 = vadd.f32 %v11088_v21, %v9068_v63  ;;  %v9060_v62 = vadd.f32 %v9059_v27, %v8929_v55 }
 0xb7e   :  { %v11073_v13 = vpop.f32.mrf.mxu0 }
 0xb7f   :  { %9248 = vst.msk [vmem:[%s14005_s17 + $0x20] sm:$0xff] %vm8847_vm6, %v9232_v5  ;;  %v9235_v52 = vadd.f32 %v13900_v50, %v9212_v58  ;;  %v9210_v7 = vadd.f32 %v9161_v28, %v9060_v62  ;;  %v9081_v32 = vadd.f32 %v11073_v13, %v11055_v41 }
 0xb80   :  { %v9072_v10 = vpop.f32.mrf.mxu0 }
 0xb81   :  { %9251 = vst.msk [vmem:[%s14005_s17 + $0x38] sm:$0xff] %vm8847_vm6, %v9235_v52  ;;  %v9233_v44 = vadd.f32 %v13900_v50, %v9210_v7  ;;  %v9215_v0 = vadd.f32 %v11091_v29, %v9081_v32  ;;  %v9073_v57 = vadd.f32 %v9072_v10, %v8942_v22  ;;  %v9190_v22 = vpop.f32.mrf.mxu1 }
 0xb82   :  { %v11074_v61 = vpop.f32.mrf.mxu0 }
 0xb83   :  { %9249 = vst.msk [vmem:[%s14005_s17 + $0x28] sm:$0xff] %vm8847_vm6, %v9233_v44  ;;  %v9238_v43 = vadd.f32 %v13900_v50, %v9215_v0  ;;  %v9213_v2 = vadd.f32 %v9174_v23, %v9073_v57  ;;  %v9084_v53 = vadd.f32 %v11074_v61, %v13888_v59  ;;  %v11096_v38 = vpop.f32.mrf.mxu1 }
 0xb84   :  { %v9075_v55 = vpop.f32.mrf.mxu0 }
 0xb85   :  { %9254 = vst.msk [vmem:[%s14005_s17 + $0x50] sm:$0xff] %vm8847_vm6, %v9238_v43  ;;  %v9236_v40 = vadd.f32 %v13900_v50, %v9213_v2  ;;  %v9216_v41 = vadd.f32 %v11092_v37, %v9084_v53  ;;  %v9076_v12 = vadd.f32 %v9075_v55, %v13890_v34  ;;  %v9193_v35 = vpop.f32.mrf.mxu1 }
 0xb86   :  { %v11077_v9 = vpop.f32.mrf.mxu0 }
 0xb87   :  { %9252 = vst.msk [vmem:[%s14005_s17 + $0x40] sm:$0xff] %vm8847_vm6, %v9236_v40  ;;  %v9239_v59 = vadd.f32 %v13900_v50, %v9216_v41  ;;  %v9214_v47 = vadd.f32 %v9177_v3, %v9076_v12  ;;  %v9097_v60 = vadd.f32 %v11077_v9, %v13892_v20 }
 0xb88   :  { %v9088_v39 = vpop.f32.mrf.mxu0 }
 0xb89   :  { %9255 = vst.msk [vmem:[%s14005_s17 + $0x58] sm:$0xff] %vm8847_vm6, %v9239_v59  ;;  %v9237_v34 = vadd.f32 %v13900_v50, %v9214_v47  ;;  %v9219_v21 = vadd.f32 %v11095_v31, %v9097_v60  ;;  %v9089_v4 = vadd.f32 %v9088_v39, %v13894_v54 }
 0xb8a   :  { %v11078_v51 = vpop.f32.mrf.mxu0 }
 0xb8b   :  { %9253 = vst.msk [vmem:[%s14005_s17 + $0x48] sm:$0xff] %vm8847_vm6, %v9237_v34  ;;  %v9242_v20 = vadd.f32 %v13900_v50, %v9219_v21  ;;  %v9217_v30 = vadd.f32 %v9190_v22, %v9089_v4  ;;  %v9100_v6 = vadd.f32 %v11078_v51, %v13896_v14 }
 0xb8c   :  { %v9091_v28 = vpop.f32.mrf.mxu0 }
 0xb8d   :  { %9258 = vst.msk [vmem:[%s14005_s17 + $0x70] sm:$0xff] %vm8847_vm6, %v9242_v20  ;;  %v9240_v54 = vadd.f32 %v13900_v50, %v9217_v30  ;;  %v9220_v46 = vadd.f32 %v11096_v38, %v9100_v6  ;;  %v9092_v8 = vadd.f32 %v9091_v28, %v13898_v19 }
 0xb8f   :  { %9256 = vst.msk [vmem:[%s14005_s17 + $0x60] sm:$0xff] %vm8847_vm6, %v9240_v54  ;;  %v9243_v16 = vadd.f32 %v13900_v50, %v9220_v46  ;;  %v9218_v14 = vadd.f32 %v9193_v35, %v9092_v8 }
 0xb91   :  { %9259 = vst.msk [vmem:[%s14005_s17 + $0x78] sm:$0xff] %vm8847_vm6, %v9243_v16  ;;  %v9241_v29 = vadd.f32 %v13900_v50, %v9218_v14 }
 0xb93   :  { %9257 = vst.msk [vmem:[%s14005_s17 + $0x68] sm:$0xff] %vm8847_vm6, %v9241_v29 }
 0xb94   :  { %9264 = vsyncpa [#allocation3], 1 }
 0xb95   :  { %9265 = vsyncpa [#allocation5], 1 }
 0xb96   :  { %9266 = vsyncpa [#allocation8], 1 }
 0xb97   :  { %9267 = vsyncpa [#allocation11], 1 }
 0xb98   :  { %9268 = vsyncpa [#allocation14], 1 }
 0xb99   :  { %9269 = vsyncpa [#allocation17], 1 }
 0xb9a   :  { %9270 = vsyncpa [#allocation20], 1 }

</bundles_post_ra>
